<compile_context>
chip_gen: v7x
topology: tpu7x:2x2x1
jax: 0.10.0
libtpu: 0.0.40
codegen_flags: <defaults>
</compile_context>

<pallas_src>
from functools import partial

import numpy as np
import jax
import jax.numpy as jnp
from jax.experimental import pallas as pl
from jax.experimental.pallas import tpu as pltpu


# ----------------------------- in-kernel helpers ----------------------------

def _ln(z, g, b):
    # LayerNorm, eps=1e-6, biased variance, affine.  rsqrt -> EUP slot.
    mean = jnp.mean(z, axis=-1, keepdims=True)
    var = jnp.mean(jnp.square(z - mean), axis=-1, keepdims=True)
    return (z - mean) * jax.lax.rsqrt(var + 1e-6) * g + b


# ----------------------------- fused layer kernel ---------------------------

def _decoder_layer_kernel(x_ref, enc_ref, m1_ref, m2_ref,
                          wq_ref, wk_ref, wv_ref, wo_ref,
                          ln_g_ref, ln_b_ref,
                          fw1_ref, fb1_ref, fw2_ref, fb2_ref,
                          out3_ref, att1_ref, att2_ref,
                          qf_s, kf_s, vf_s, qp_s, kp_s, vp_s, op_s, cat_s,
                          *, n_heads):
    _, s, d = x_ref.shape
    sk = enc_ref.shape[1]
    H = n_heads
    dh = d // H
    rq = s // H

    x = x_ref[0]                 # (S, D)
    enc = enc_ref[0]             # (Sk, D)
    m1 = m1_ref[0]               # (Sq|1, S)  permuted look-ahead mask
    m2 = m2_ref[0]               # (Sq|1, Sk) permuted padding mask
    wq = wq_ref[...]
    wk = wk_ref[...]
    wv = wv_ref[...]
    wo = wo_ref[...]
    g = ln_g_ref[...]
    beta = ln_b_ref[...]

    def mha(skk, msk, att_out_ref):
        # Multi-head attention over torch's flat-view head split, computed
        # head-by-head in a permuted (slab-stacked) row order so the split /
        # merge is just contiguous VMEM slice copies (no reshapes).
        rk = skk // H
        for h in range(H):
            # gather the per-head (permuted) q/k/v tiles from the full
            # projections sitting in VMEM scratch
            for j in range(H):
                qp_s[j * rq:(j + 1) * rq, :] = qf_s[h * rq:(h + 1) * rq,
                                                    j * dh:(j + 1) * dh]
                kp_s[j * rk:(j + 1) * rk, :] = kf_s[h * rk:(h + 1) * rk,
                                                    j * dh:(j + 1) * dh]
                vp_s[j * rk:(j + 1) * rk, :] = vf_s[h * rk:(h + 1) * rk,
                                                    j * dh:(j + 1) * dh]
            qp = qp_s[...]                 # (S, dh)
            kp = kp_s[0:skk, :]            # (Sk, dh)
            vp = vp_s[0:skk, :]            # (Sk, dh)
            qk = jax.lax.dot_general(qp, kp, (((1,), (1,)), ((), ())),
                                     preferred_element_type=jnp.float32)
            # == torch.pow(qk, 0.5) for the non-negative logits of the test
            att = jnp.sqrt(qk) + msk * (-1e9)
            amax = jnp.max(att, axis=-1, keepdims=True)
            e = jnp.exp(att - amax)
            att = e * pl.reciprocal(jnp.sum(e, axis=-1, keepdims=True),
                                    approx=False)
            # lane-concatenated attention-weight output (un-permuted in the
            # wrapper); denser store than a (.., Sk)-minor layout
            att_out_ref[0, :, h * skk:(h + 1) * skk] = att
            op_s[...] = jnp.dot(att, vp, preferred_element_type=jnp.float32)
            # scatter back into concat-heads layout (inverse flat .view())
            for j in range(H):
                cat_s[h * rq:(h + 1) * rq, j * dh:(j + 1) * dh] = \
                    op_s[j * rq:(j + 1) * rq, :]
        return cat_s[...]                  # (S, D)

    # ---- residual block 1: masked self-attention ----------------------------
    qf_s[...] = jnp.dot(x, wq, preferred_element_type=jnp.float32)
    kf_s[0:s, :] = jnp.dot(x, wk, preferred_element_type=jnp.float32)
    vf_s[0:s, :] = jnp.dot(x, wv, preferred_element_type=jnp.float32)
    concat1 = mha(s, m1, att1_ref)
    out1 = _ln(x + jnp.dot(concat1, wo, preferred_element_type=jnp.float32),
               g, beta)

    # ---- residual block 2: cross-attention over the encoder output ----------
    qf_s[...] = jnp.dot(out1, wq, preferred_element_type=jnp.float32)
    kf_s[0:sk, :] = jnp.dot(enc, wk, preferred_element_type=jnp.float32)
    vf_s[0:sk, :] = jnp.dot(enc, wv, preferred_element_type=jnp.float32)
    concat2 = mha(sk, m2, att2_ref)
    out2 = _ln(out1 + jnp.dot(concat2, wo, preferred_element_type=jnp.float32),
               g, beta)

    # ---- residual block 3: position-wise FFN ---------------------------------
    hdn = jnp.maximum(
        jnp.dot(out2, fw1_ref[...], preferred_element_type=jnp.float32)
        + fb1_ref[...], 0.0)
    ffn = (jnp.dot(hdn, fw2_ref[...], preferred_element_type=jnp.float32)
           + fb2_ref[...])
    out3_ref[0] = _ln(out2 + ffn, g, beta)


# ----------------------------- wrapper ---------------------------------------

_PARALLEL = pltpu.CompilerParams(dimension_semantics=("parallel",))


def _prep_mask_permuted(msk, sq, sk, pi_q, pi_k):
    # Drop the (size-1) head axis, keep the native batch/query dims and permute
    # query/key axes into the kernel's slab-stacked head order.  Only a tiny
    # (<= (B, Sq, Sk)) array is touched -- no B*H-fold HBM broadcast.
    if msk is None:
        return jnp.zeros((1, 1, sk), jnp.float32)
    m = jnp.asarray(msk, jnp.float32)
    if m.ndim == 4:
        assert m.shape[1] == 1, "per-head masks are not supported"
        m = m[:, 0]
    elif m.ndim == 2:
        m = m[None]
    assert m.ndim == 3 and m.shape[-1] == sk
    m = jnp.take(m, pi_k, axis=2)
    if m.shape[1] == sq:
        m = jnp.take(m, pi_q, axis=1)
    return m


def _mask_spec(m):
    # batch broadcast handled by the index_map (free), not by an HBM copy
    if m.shape[0] == 1:
        return pl.BlockSpec((1,) + m.shape[1:], lambda i: (0, 0, 0))
    return pl.BlockSpec((1,) + m.shape[1:], lambda i: (i, 0, 0))


def _attw_to_headspace(acat, n_heads, skk, sig_q, sig_k):
    # (B, Sq, H*Sk) lane-concatenated, permuted  ->  (B, H, Sq, Sk) head-space
    b, s, _ = acat.shape
    w = acat.reshape(b, s, n_heads, skk)       # [b, p, h, p2]
    w = jnp.transpose(w, (0, 2, 1, 3))         # [b, h, p, p2]
    w = jnp.take(w, sig_q, axis=2)             # head-space query order
    w = jnp.take(w, sig_k, axis=3)             # head-space key order
    return w


def decoder_layer(x, enc_output, look_ahead_mask, padding_mask, params, n_heads):
    b, s, d = x.shape
    sk = enc_output.shape[1]
    H = n_heads
    assert d % H == 0
    dh = d // H
    # TODO(synk): the slab-wise flat head split needs seq % n_heads == 0
    # (torch's flat .view() itself has no such restriction).
    assert s % H == 0 and sk % H == 0
    rq, rk = s // H, sk // H
    skm = max(s, sk)

    # permutations between torch's flat head-split index (i*H + j) and the
    # kernel's slab-stacked index (j*r + i)
    sig_q = jnp.asarray(np.arange(s).reshape(H, rq).T.reshape(-1), jnp.int32)
    sig_k = jnp.asarray(np.arange(sk).reshape(H, rk).T.reshape(-1), jnp.int32)
    pi_q = jnp.asarray(np.arange(s).reshape(rq, H).T.reshape(-1), jnp.int32)
    pi_k = jnp.asarray(np.arange(sk).reshape(rk, H).T.reshape(-1), jnp.int32)

    m1 = _prep_mask_permuted(look_ahead_mask, s, s, pi_q, pi_q)
    m2 = _prep_mask_permuted(padding_mask, s, sk, pi_q, pi_k)

    mha_p = params["mha"]
    ffn_p = params["ffn"]
    dff = ffn_p["w1"].shape[1]
    g = params["ln_g"].reshape(1, d)
    beta = params["ln_b"].reshape(1, d)
    fb1 = ffn_p["b1"].reshape(1, dff)
    fb2 = ffn_p["b2"].reshape(1, d)

    f32 = jnp.float32
    out3, a1, a2 = pl.pallas_call(
        partial(_decoder_layer_kernel, n_heads=H),
        grid=(b,),
        out_shape=(jax.ShapeDtypeStruct((b, s, d), f32),
                   jax.ShapeDtypeStruct((b, s, H * s), f32),
                   jax.ShapeDtypeStruct((b, s, H * sk), f32)),
        in_specs=[
            pl.BlockSpec((1, s, d), lambda i: (i, 0, 0)),      # x
            pl.BlockSpec((1, sk, d), lambda i: (i, 0, 0)),     # enc_output
            _mask_spec(m1),                                    # look-ahead mask
            _mask_spec(m2),                                    # padding mask
            pl.BlockSpec((d, d), lambda i: (0, 0)),            # wq
            pl.BlockSpec((d, d), lambda i: (0, 0)),            # wk
            pl.BlockSpec((d, d), lambda i: (0, 0)),            # wv
            pl.BlockSpec((d, d), lambda i: (0, 0)),            # wo
            pl.BlockSpec((1, d), lambda i: (0, 0)),            # ln gamma
            pl.BlockSpec((1, d), lambda i: (0, 0)),            # ln beta
            pl.BlockSpec((d, dff), lambda i: (0, 0)),          # ffn w1
            pl.BlockSpec((1, dff), lambda i: (0, 0)),          # ffn b1
            pl.BlockSpec((dff, d), lambda i: (0, 0)),          # ffn w2
            pl.BlockSpec((1, d), lambda i: (0, 0)),            # ffn b2
        ],
        out_specs=(pl.BlockSpec((1, s, d), lambda i: (i, 0, 0)),
                   pl.BlockSpec((1, s, H * s), lambda i: (i, 0, 0)),
                   pl.BlockSpec((1, s, H * sk), lambda i: (i, 0, 0))),
        scratch_shapes=[
            pltpu.VMEM((s, d), f32),       # qf_s  (q projection)
            pltpu.VMEM((skm, d), f32),     # kf_s  (k projection)
            pltpu.VMEM((skm, d), f32),     # vf_s  (v projection)
            pltpu.VMEM((s, dh), f32),      # qp_s  (per-head q, permuted)
            pltpu.VMEM((skm, dh), f32),    # kp_s
            pltpu.VMEM((skm, dh), f32),    # vp_s
            pltpu.VMEM((s, dh), f32),      # op_s  (per-head attn output)
            pltpu.VMEM((s, d), f32),       # cat_s (concat-heads assembly)
        ],
        compiler_params=_PARALLEL,
    )(x, enc_output, m1, m2,
      mha_p["wq"], mha_p["wk"], mha_p["wv"], mha_p["wo"],
      g, beta, ffn_p["w1"], fb1, ffn_p["w2"], fb2)

    w1 = _attw_to_headspace(a1, H, s, sig_q, sig_q)
    w2 = _attw_to_headspace(a2, H, sk, sig_q, sig_k)
    # dropout == identity in eval mode
    return out3, w1, w2


# ----------------------------- pure-JAX reference ----------------------------

def _ref_mha(v, k, q, msk, p, n_heads):
    b, sq, d = q.shape
    sk = k.shape[1]
    depth = d // n_heads
    qp, kp, vp = q @ p["wq"], k @ p["wk"], v @ p["wv"]
    qh = qp.reshape(b, n_heads, sq, depth)      # flat .view(), as in torch
    kh = kp.reshape(b, n_heads, sk, depth)
    vh = vp.reshape(b, n_heads, sk, depth)
    qk = jnp.einsum("bhqd,bhkd->bhqk", qh, kh)
    att = jnp.power(qk, 0.5)                    # faithful to torch.pow(qk, 0.5)
    if msk is not None:
        att = att + msk * (-1e9)
    att = jax.nn.softmax(att, axis=-1)
    out = jnp.einsum("bhqk,bhkd->bhqd", att, vh)
    return out.reshape(b, sq, d) @ p["wo"], att


def _ref_ln(z, g, b):
    mean = jnp.mean(z, axis=-1, keepdims=True)
    var = jnp.mean((z - mean) ** 2, axis=-1, keepdims=True)
    return (z - mean) / jnp.sqrt(var + 1e-6) * g + b


def _ref_decoder(x, enc, lam, pad, params, n_heads):
    a1, w1 = _ref_mha(x, x, x, lam, params["mha"], n_heads)
    o1 = _ref_ln(x + a1, params["ln_g"], params["ln_b"])
    a2, w2 = _ref_mha(enc, enc, o1, pad, params["mha"], n_heads)
    o2 = _ref_ln(o1 + a2, params["ln_g"], params["ln_b"])
    f = params["ffn"]
    ff = jnp.maximum(o2 @ f["w1"] + f["b1"], 0.0) @ f["w2"] + f["b2"]
    o3 = _ref_ln(o2 + ff, params["ln_g"], params["ln_b"])
    return o3, w1, w2


# ----------------------------- main ------------------------------------------

if __name__ == "__main__":
    B, S, D, H, DFF = 2, 8, 32, 4, 64

    keys = jax.random.split(jax.random.PRNGKey(0), 12)

    def u(key, shape, lo, hi):
        return jax.random.uniform(key, shape, jnp.float32, lo, hi)

    # Non-negative weights/inputs plus a positive LayerNorm shift (ln_b >= 3,
    # small ln_g) keep every attention logit qk >= 0, so torch.pow(qk, 0.5)
    # (== sqrt) stays finite for BOTH attention blocks.  (The reference op is
    # undefined for negative logits -- a fragility of the spec, not the kernel.)
    params = {
        "mha": {
            "wq": u(keys[0], (D, D), 0.0, 0.1),
            "wk": u(keys[1], (D, D), 0.0, 0.1),
            "wv": u(keys[2], (D, D), 0.0, 0.1),
            "wo": u(keys[3], (D, D), 0.0, 0.1),
        },
        "ffn": {
            "w1": u(keys[4], (D, DFF), 0.0, 0.1),
            "b1": u(keys[5], (DFF,), 0.0, 0.05),
            "w2": u(keys[6], (DFF, D), 0.0, 0.1),
            "b2": u(keys[7], (D,), 0.0, 0.05),
        },
        "ln_g": u(keys[8], (D,), 0.3, 0.6),
        "ln_b": u(keys[9], (D,), 3.0, 3.5),
    }

    x = u(keys[10], (B, S, D), 0.0, 1.0)
    enc_output = u(keys[11], (B, S, D), 0.0, 1.0)

    look_ahead_mask = jnp.triu(jnp.ones((S, S), jnp.float32), k=1)[None, None]  # (1,1,S,S)
    padding_mask = jnp.zeros((B, 1, 1, S), jnp.float32).at[1, 0, 0, S - 2:].set(1.0)

    run = jax.jit(partial(decoder_layer, n_heads=H))
    out3, w1, w2 = run(x, enc_output, look_ahead_mask, padding_mask, params)
    jax.block_until_ready((out3, w1, w2))

    ref3, rw1, rw2 = _ref_decoder(x, enc_output, look_ahead_mask, padding_mask,
                                  params, H)
    np.testing.assert_allclose(np.asarray(out3), np.asarray(ref3),
                               rtol=1e-4, atol=1e-4)
    np.testing.assert_allclose(np.asarray(w1), np.asarray(rw1),
                               rtol=1e-4, atol=1e-4)
    np.testing.assert_allclose(np.asarray(w2), np.asarray(rw2),
                               rtol=1e-4, atol=1e-4)

    assert out3.shape == (B, S, D) and w1.shape == (B, H, S, S) and w2.shape == (B, H, S, S)
    print("KERNEL_OK")
</pallas_src>

<mosaic_0001>
module attributes {stable_mosaic.version = 11 : i64} {
  func.func @_decoder_layer_kernel(%arg0: i32, %arg1: memref<1x8x32xf32, #tpu.memory_space<vmem>>, %arg2: memref<1x8x32xf32, #tpu.memory_space<vmem>>, %arg3: memref<1x8x8xf32, #tpu.memory_space<vmem>>, %arg4: memref<1x1x8xf32, #tpu.memory_space<vmem>>, %arg5: memref<32x32xf32, #tpu.memory_space<vmem>>, %arg6: memref<32x32xf32, #tpu.memory_space<vmem>>, %arg7: memref<32x32xf32, #tpu.memory_space<vmem>>, %arg8: memref<32x32xf32, #tpu.memory_space<vmem>>, %arg9: memref<1x32xf32, #tpu.memory_space<vmem>>, %arg10: memref<1x32xf32, #tpu.memory_space<vmem>>, %arg11: memref<32x64xf32, #tpu.memory_space<vmem>>, %arg12: memref<1x64xf32, #tpu.memory_space<vmem>>, %arg13: memref<64x32xf32, #tpu.memory_space<vmem>>, %arg14: memref<1x32xf32, #tpu.memory_space<vmem>>, %arg15: memref<1x8x32xf32, #tpu.memory_space<vmem>>, %arg16: memref<1x8x32xf32, #tpu.memory_space<vmem>>, %arg17: memref<1x8x32xf32, #tpu.memory_space<vmem>>, %arg18: memref<8x32xf32, #tpu.memory_space<vmem>>, %arg19: memref<8x32xf32, #tpu.memory_space<vmem>>, %arg20: memref<8x32xf32, #tpu.memory_space<vmem>>, %arg21: memref<8x8xf32, #tpu.memory_space<vmem>>, %arg22: memref<8x8xf32, #tpu.memory_space<vmem>>, %arg23: memref<8x8xf32, #tpu.memory_space<vmem>>, %arg24: memref<8x8xf32, #tpu.memory_space<vmem>>, %arg25: memref<8x32xf32, #tpu.memory_space<vmem>>) attributes {dimension_semantics = [#tpu.dimension_semantics<parallel>], iteration_bounds = array<i64: 2>, scalar_prefetch = 0 : i64, scratch_operands = 8 : i64, tpu.core_type = #tpu.core_type<tc>, window_params = [{transform_indices = @transform_0, window_bounds = array<i64: 1, 8, 32>}, {transform_indices = @transform_1, window_bounds = array<i64: 1, 8, 32>}, {pipeline_mode = #tpu.pipeline_mode<synchronous>, transform_indices = @transform_2, window_bounds = array<i64: 1, 8, 8>}, {transform_indices = @transform_3, window_bounds = array<i64: 1, 1, 8>}, {pipeline_mode = #tpu.pipeline_mode<synchronous>, transform_indices = @transform_4, window_bounds = array<i64: 32, 32>}, {pipeline_mode = #tpu.pipeline_mode<synchronous>, transform_indices = @transform_5, window_bounds = array<i64: 32, 32>}, {pipeline_mode = #tpu.pipeline_mode<synchronous>, transform_indices = @transform_6, window_bounds = array<i64: 32, 32>}, {pipeline_mode = #tpu.pipeline_mode<synchronous>, transform_indices = @transform_7, window_bounds = array<i64: 32, 32>}, {pipeline_mode = #tpu.pipeline_mode<synchronous>, transform_indices = @transform_8, window_bounds = array<i64: 1, 32>}, {pipeline_mode = #tpu.pipeline_mode<synchronous>, transform_indices = @transform_9, window_bounds = array<i64: 1, 32>}, {pipeline_mode = #tpu.pipeline_mode<synchronous>, transform_indices = @transform_10, window_bounds = array<i64: 32, 64>}, {pipeline_mode = #tpu.pipeline_mode<synchronous>, transform_indices = @transform_11, window_bounds = array<i64: 1, 64>}, {pipeline_mode = #tpu.pipeline_mode<synchronous>, transform_indices = @transform_12, window_bounds = array<i64: 64, 32>}, {pipeline_mode = #tpu.pipeline_mode<synchronous>, transform_indices = @transform_13, window_bounds = array<i64: 1, 32>}, {transform_indices = @transform_14, window_bounds = array<i64: 1, 8, 32>}, {transform_indices = @transform_15, window_bounds = array<i64: 1, 8, 32>}, {transform_indices = @transform_16, window_bounds = array<i64: 1, 8, 32>}]} {
    %c0 = arith.constant 0 : index
    %c0_0 = arith.constant 0 : index
    %c0_1 = arith.constant 0 : index
    %0 = vector.load %arg1[%c0, %c0_0, %c0_1] : memref<1x8x32xf32, #tpu.memory_space<vmem>>, vector<1x8x32xf32>
    %1 = vector.shape_cast %0 : vector<1x8x32xf32> to vector<8x32xf32>
    %c0_2 = arith.constant 0 : index
    %c0_3 = arith.constant 0 : index
    %c0_4 = arith.constant 0 : index
    %2 = vector.load %arg2[%c0_2, %c0_3, %c0_4] : memref<1x8x32xf32, #tpu.memory_space<vmem>>, vector<1x8x32xf32>
    %3 = vector.shape_cast %2 : vector<1x8x32xf32> to vector<8x32xf32>
    %c0_5 = arith.constant 0 : index
    %c0_6 = arith.constant 0 : index
    %c0_7 = arith.constant 0 : index
    %4 = vector.load %arg3[%c0_5, %c0_6, %c0_7] : memref<1x8x8xf32, #tpu.memory_space<vmem>>, vector<1x8x8xf32>
    %5 = vector.shape_cast %4 : vector<1x8x8xf32> to vector<8x8xf32>
    %c0_8 = arith.constant 0 : index
    %c0_9 = arith.constant 0 : index
    %c0_10 = arith.constant 0 : index
    %6 = vector.load %arg4[%c0_8, %c0_9, %c0_10] : memref<1x1x8xf32, #tpu.memory_space<vmem>>, vector<1x1x8xf32>
    %7 = vector.shape_cast %6 : vector<1x1x8xf32> to vector<1x8xf32>
    %c0_11 = arith.constant 0 : index
    %c0_12 = arith.constant 0 : index
    %8 = vector.load %arg5[%c0_11, %c0_12] : memref<32x32xf32, #tpu.memory_space<vmem>>, vector<32x32xf32>
    %c0_13 = arith.constant 0 : index
    %c0_14 = arith.constant 0 : index
    %9 = vector.load %arg6[%c0_13, %c0_14] : memref<32x32xf32, #tpu.memory_space<vmem>>, vector<32x32xf32>
    %c0_15 = arith.constant 0 : index
    %c0_16 = arith.constant 0 : index
    %10 = vector.load %arg7[%c0_15, %c0_16] : memref<32x32xf32, #tpu.memory_space<vmem>>, vector<32x32xf32>
    %c0_17 = arith.constant 0 : index
    %c0_18 = arith.constant 0 : index
    %11 = vector.load %arg8[%c0_17, %c0_18] : memref<32x32xf32, #tpu.memory_space<vmem>>, vector<32x32xf32>
    %c0_19 = arith.constant 0 : index
    %c0_20 = arith.constant 0 : index
    %12 = vector.load %arg9[%c0_19, %c0_20] : memref<1x32xf32, #tpu.memory_space<vmem>>, vector<1x32xf32>
    %c0_21 = arith.constant 0 : index
    %c0_22 = arith.constant 0 : index
    %13 = vector.load %arg10[%c0_21, %c0_22] : memref<1x32xf32, #tpu.memory_space<vmem>>, vector<1x32xf32>
    %cst = arith.constant dense<0.000000e+00> : vector<8x32xf32>
    %14 = tpu.matmul %1, %8, %cst {dimension_numbers = #tpu.dot_dimension_numbers<[1], [0], [0], [1], [0, 0, 1, 1], [], []>} : vector<8x32xf32>, vector<32x32xf32>, vector<8x32xf32> -> vector<8x32xf32>
    %c0_23 = arith.constant 0 : index
    %c0_24 = arith.constant 0 : index
    %15 = vector.load %arg18[%c0_23, %c0_24] : memref<8x32xf32, #tpu.memory_space<vmem>>, vector<8x32xf32>
    tpu.vector_store %arg18[%c0_23, %c0_24], %14 {strides = array<i32>} : memref<8x32xf32, #tpu.memory_space<vmem>>, vector<8x32xf32>,
    %cst_25 = arith.constant dense<0.000000e+00> : vector<8x32xf32>
    %16 = tpu.matmul %1, %9, %cst_25 {dimension_numbers = #tpu.dot_dimension_numbers<[1], [0], [0], [1], [0, 0, 1, 1], [], []>} : vector<8x32xf32>, vector<32x32xf32>, vector<8x32xf32> -> vector<8x32xf32>
    %c0_26 = arith.constant 0 : index
    %c0_27 = arith.constant 0 : index
    %17 = vector.load %arg19[%c0_26, %c0_27] : memref<8x32xf32, #tpu.memory_space<vmem>>, vector<8x32xf32>
    tpu.vector_store %arg19[%c0_26, %c0_27], %16 {strides = array<i32>} : memref<8x32xf32, #tpu.memory_space<vmem>>, vector<8x32xf32>,
    %cst_28 = arith.constant dense<0.000000e+00> : vector<8x32xf32>
    %18 = tpu.matmul %1, %10, %cst_28 {dimension_numbers = #tpu.dot_dimension_numbers<[1], [0], [0], [1], [0, 0, 1, 1], [], []>} : vector<8x32xf32>, vector<32x32xf32>, vector<8x32xf32> -> vector<8x32xf32>
    %c0_29 = arith.constant 0 : index
    %c0_30 = arith.constant 0 : index
    %19 = vector.load %arg20[%c0_29, %c0_30] : memref<8x32xf32, #tpu.memory_space<vmem>>, vector<8x32xf32>
    tpu.vector_store %arg20[%c0_29, %c0_30], %18 {strides = array<i32>} : memref<8x32xf32, #tpu.memory_space<vmem>>, vector<8x32xf32>,
    %c0_31 = arith.constant 0 : index
    %c0_32 = arith.constant 0 : index
    %20 = vector.load %arg18[%c0_31, %c0_32] : memref<8x32xf32, #tpu.memory_space<vmem>>, vector<2x8xf32>
    %c0_33 = arith.constant 0 : index
    %c0_34 = arith.constant 0 : index
    %21 = vector.load %arg21[%c0_33, %c0_34] : memref<8x8xf32, #tpu.memory_space<vmem>>, vector<2x8xf32>
    tpu.vector_store %arg21[%c0_33, %c0_34], %20 {strides = array<i32>} : memref<8x8xf32, #tpu.memory_space<vmem>>, vector<2x8xf32>,
    %c0_35 = arith.constant 0 : index
    %c0_36 = arith.constant 0 : index
    %22 = vector.load %arg19[%c0_35, %c0_36] : memref<8x32xf32, #tpu.memory_space<vmem>>, vector<2x8xf32>
    %c0_37 = arith.constant 0 : index
    %c0_38 = arith.constant 0 : index
    %23 = vector.load %arg22[%c0_37, %c0_38] : memref<8x8xf32, #tpu.memory_space<vmem>>, vector<2x8xf32>
    tpu.vector_store %arg22[%c0_37, %c0_38], %22 {strides = array<i32>} : memref<8x8xf32, #tpu.memory_space<vmem>>, vector<2x8xf32>,
    %c0_39 = arith.constant 0 : index
    %c0_40 = arith.constant 0 : index
    %24 = vector.load %arg20[%c0_39, %c0_40] : memref<8x32xf32, #tpu.memory_space<vmem>>, vector<2x8xf32>
    %c0_41 = arith.constant 0 : index
    %c0_42 = arith.constant 0 : index
    %25 = vector.load %arg23[%c0_41, %c0_42] : memref<8x8xf32, #tpu.memory_space<vmem>>, vector<2x8xf32>
    tpu.vector_store %arg23[%c0_41, %c0_42], %24 {strides = array<i32>} : memref<8x8xf32, #tpu.memory_space<vmem>>, vector<2x8xf32>,
    %c0_43 = arith.constant 0 : index
    %c8 = arith.constant 8 : index
    %26 = vector.load %arg18[%c0_43, %c8] : memref<8x32xf32, #tpu.memory_space<vmem>>, vector<2x8xf32>
    %c2 = arith.constant 2 : index
    %c0_44 = arith.constant 0 : index
    %27 = vector.load %arg21[%c2, %c0_44] : memref<8x8xf32, #tpu.memory_space<vmem>>, vector<2x8xf32>
    tpu.vector_store %arg21[%c2, %c0_44], %26 {strides = array<i32>} : memref<8x8xf32, #tpu.memory_space<vmem>>, vector<2x8xf32>,
    %c0_45 = arith.constant 0 : index
    %c8_46 = arith.constant 8 : index
    %28 = vector.load %arg19[%c0_45, %c8_46] : memref<8x32xf32, #tpu.memory_space<vmem>>, vector<2x8xf32>
    %c2_47 = arith.constant 2 : index
    %c0_48 = arith.constant 0 : index
    %29 = vector.load %arg22[%c2_47, %c0_48] : memref<8x8xf32, #tpu.memory_space<vmem>>, vector<2x8xf32>
    tpu.vector_store %arg22[%c2_47, %c0_48], %28 {strides = array<i32>} : memref<8x8xf32, #tpu.memory_space<vmem>>, vector<2x8xf32>,
    %c0_49 = arith.constant 0 : index
    %c8_50 = arith.constant 8 : index
    %30 = vector.load %arg20[%c0_49, %c8_50] : memref<8x32xf32, #tpu.memory_space<vmem>>, vector<2x8xf32>
    %c2_51 = arith.constant 2 : index
    %c0_52 = arith.constant 0 : index
    %31 = vector.load %arg23[%c2_51, %c0_52] : memref<8x8xf32, #tpu.memory_space<vmem>>, vector<2x8xf32>
    tpu.vector_store %arg23[%c2_51, %c0_52], %30 {strides = array<i32>} : memref<8x8xf32, #tpu.memory_space<vmem>>, vector<2x8xf32>,
    %c0_53 = arith.constant 0 : index
    %c16 = arith.constant 16 : index
    %32 = vector.load %arg18[%c0_53, %c16] : memref<8x32xf32, #tpu.memory_space<vmem>>, vector<2x8xf32>
    %c4 = arith.constant 4 : index
    %c0_54 = arith.constant 0 : index
    %33 = vector.load %arg21[%c4, %c0_54] : memref<8x8xf32, #tpu.memory_space<vmem>>, vector<2x8xf32>
    tpu.vector_store %arg21[%c4, %c0_54], %32 {strides = array<i32>} : memref<8x8xf32, #tpu.memory_space<vmem>>, vector<2x8xf32>,
    %c0_55 = arith.constant 0 : index
    %c16_56 = arith.constant 16 : index
    %34 = vector.load %arg19[%c0_55, %c16_56] : memref<8x32xf32, #tpu.memory_space<vmem>>, vector<2x8xf32>
    %c4_57 = arith.constant 4 : index
    %c0_58 = arith.constant 0 : index
    %35 = vector.load %arg22[%c4_57, %c0_58] : memref<8x8xf32, #tpu.memory_space<vmem>>, vector<2x8xf32>
    tpu.vector_store %arg22[%c4_57, %c0_58], %34 {strides = array<i32>} : memref<8x8xf32, #tpu.memory_space<vmem>>, vector<2x8xf32>,
    %c0_59 = arith.constant 0 : index
    %c16_60 = arith.constant 16 : index
    %36 = vector.load %arg20[%c0_59, %c16_60] : memref<8x32xf32, #tpu.memory_space<vmem>>, vector<2x8xf32>
    %c4_61 = arith.constant 4 : index
    %c0_62 = arith.constant 0 : index
    %37 = vector.load %arg23[%c4_61, %c0_62] : memref<8x8xf32, #tpu.memory_space<vmem>>, vector<2x8xf32>
    tpu.vector_store %arg23[%c4_61, %c0_62], %36 {strides = array<i32>} : memref<8x8xf32, #tpu.memory_space<vmem>>, vector<2x8xf32>,
    %c0_63 = arith.constant 0 : index
    %c24 = arith.constant 24 : index
    %38 = vector.load %arg18[%c0_63, %c24] : memref<8x32xf32, #tpu.memory_space<vmem>>, vector<2x8xf32>
    %c6 = arith.constant 6 : index
    %c0_64 = arith.constant 0 : index
    %39 = vector.load %arg21[%c6, %c0_64] : memref<8x8xf32, #tpu.memory_space<vmem>>, vector<2x8xf32>
    tpu.vector_store %arg21[%c6, %c0_64], %38 {strides = array<i32>} : memref<8x8xf32, #tpu.memory_space<vmem>>, vector<2x8xf32>,
    %c0_65 = arith.constant 0 : index
    %c24_66 = arith.constant 24 : index
    %40 = vector.load %arg19[%c0_65, %c24_66] : memref<8x32xf32, #tpu.memory_space<vmem>>, vector<2x8xf32>
    %c6_67 = arith.constant 6 : index
    %c0_68 = arith.constant 0 : index
    %41 = vector.load %arg22[%c6_67, %c0_68] : memref<8x8xf32, #tpu.memory_space<vmem>>, vector<2x8xf32>
    tpu.vector_store %arg22[%c6_67, %c0_68], %40 {strides = array<i32>} : memref<8x8xf32, #tpu.memory_space<vmem>>, vector<2x8xf32>,
    %c0_69 = arith.constant 0 : index
    %c24_70 = arith.constant 24 : index
    %42 = vector.load %arg20[%c0_69, %c24_70] : memref<8x32xf32, #tpu.memory_space<vmem>>, vector<2x8xf32>
    %c6_71 = arith.constant 6 : index
    %c0_72 = arith.constant 0 : index
    %43 = vector.load %arg23[%c6_71, %c0_72] : memref<8x8xf32, #tpu.memory_space<vmem>>, vector<2x8xf32>
    tpu.vector_store %arg23[%c6_71, %c0_72], %42 {strides = array<i32>} : memref<8x8xf32, #tpu.memory_space<vmem>>, vector<2x8xf32>,
    %c0_73 = arith.constant 0 : index
    %c0_74 = arith.constant 0 : index
    %44 = vector.load %arg21[%c0_73, %c0_74] : memref<8x8xf32, #tpu.memory_space<vmem>>, vector<8x8xf32>
    %c0_75 = arith.constant 0 : index
    %c0_76 = arith.constant 0 : index
    %45 = vector.load %arg22[%c0_75, %c0_76] : memref<8x8xf32, #tpu.memory_space<vmem>>, vector<8x8xf32>
    %c0_77 = arith.constant 0 : index
    %c0_78 = arith.constant 0 : index
    %46 = vector.load %arg23[%c0_77, %c0_78] : memref<8x8xf32, #tpu.memory_space<vmem>>, vector<8x8xf32>
    %cst_79 = arith.constant dense<0.000000e+00> : vector<8x8xf32>
    %47 = tpu.matmul %44, %45, %cst_79 {dimension_numbers = #tpu.dot_dimension_numbers<[1], [1], [0], [0], [0, 0, 1, 0], [], []>} : vector<8x8xf32>, vector<8x8xf32>, vector<8x8xf32> -> vector<8x8xf32>
    %48 = math.sqrt %47 : vector<8x8xf32>
    %cst_80 = arith.constant -1.000000e+09 : f32
    %49 = vector.broadcast %cst_80 : f32 to vector<8x8xf32>
    %50 = arith.mulf %5, %49 : vector<8x8xf32>
    %51 = arith.addf %48, %50 : vector<8x8xf32>
    %cst_81 = arith.constant dense<0xFF800000> : vector<8xf32>
    %52 = vector.multi_reduction <maximumf>, %51, %cst_81 [1] : vector<8x8xf32> to vector<8xf32>
    %53 = vector.shape_cast %52 : vector<8xf32> to vector<8x1xf32>
    %54 = vector.broadcast %53 : vector<8x1xf32> to vector<8x8xf32>
    %55 = arith.subf %51, %54 : vector<8x8xf32>
    %56 = math.exp %55 : vector<8x8xf32>
    %cst_82 = arith.constant dense<0.000000e+00> : vector<8xf32>
    %57 = vector.multi_reduction <add>, %56, %cst_82 [1] : vector<8x8xf32> to vector<8xf32>
    %58 = vector.shape_cast %57 : vector<8xf32> to vector<8x1xf32>
    %59 = tpu.reciprocal %58 : vector<8x1xf32> -> vector<8x1xf32>
    %60 = vector.broadcast %59 : vector<8x1xf32> to vector<8x8xf32>
    %61 = arith.mulf %56, %60 : vector<8x8xf32>
    %c0_83 = arith.constant 0 : index
    %c0_84 = arith.constant 0 : index
    %c0_85 = arith.constant 0 : index
    %62 = vector.load %arg16[%c0_83, %c0_84, %c0_85] : memref<1x8x32xf32, #tpu.memory_space<vmem>>, vector<1x8x8xf32>
    %63 = vector.shape_cast %62 : vector<1x8x8xf32> to vector<8x8xf32>
    %64 = vector.shape_cast %61 : vector<8x8xf32> to vector<1x8x8xf32>
    tpu.vector_store %arg16[%c0_83, %c0_84, %c0_85], %64 {strides = array<i32>} : memref<1x8x32xf32, #tpu.memory_space<vmem>>, vector<1x8x8xf32>,
    %cst_86 = arith.constant dense<0.000000e+00> : vector<8x8xf32>
    %65 = tpu.matmul %61, %46, %cst_86 {dimension_numbers = #tpu.dot_dimension_numbers<[1], [0], [0], [1], [0, 0, 1, 1], [], []>} : vector<8x8xf32>, vector<8x8xf32>, vector<8x8xf32> -> vector<8x8xf32>
    %c0_87 = arith.constant 0 : index
    %c0_88 = arith.constant 0 : index
    %66 = vector.load %arg24[%c0_87, %c0_88] : memref<8x8xf32, #tpu.memory_space<vmem>>, vector<8x8xf32>
    tpu.vector_store %arg24[%c0_87, %c0_88], %65 {strides = array<i32>} : memref<8x8xf32, #tpu.memory_space<vmem>>, vector<8x8xf32>,
    %c0_89 = arith.constant 0 : index
    %c0_90 = arith.constant 0 : index
    %67 = vector.load %arg24[%c0_89, %c0_90] : memref<8x8xf32, #tpu.memory_space<vmem>>, vector<2x8xf32>
    %c0_91 = arith.constant 0 : index
    %c0_92 = arith.constant 0 : index
    %68 = vector.load %arg25[%c0_91, %c0_92] : memref<8x32xf32, #tpu.memory_space<vmem>>, vector<2x8xf32>
    tpu.vector_store %arg25[%c0_91, %c0_92], %67 {strides = array<i32>} : memref<8x32xf32, #tpu.memory_space<vmem>>, vector<2x8xf32>,
    %c2_93 = arith.constant 2 : index
    %c0_94 = arith.constant 0 : index
    %69 = vector.load %arg24[%c2_93, %c0_94] : memref<8x8xf32, #tpu.memory_space<vmem>>, vector<2x8xf32>
    %c0_95 = arith.constant 0 : index
    %c8_96 = arith.constant 8 : index
    %70 = vector.load %arg25[%c0_95, %c8_96] : memref<8x32xf32, #tpu.memory_space<vmem>>, vector<2x8xf32>
    tpu.vector_store %arg25[%c0_95, %c8_96], %69 {strides = array<i32>} : memref<8x32xf32, #tpu.memory_space<vmem>>, vector<2x8xf32>,
    %c4_97 = arith.constant 4 : index
    %c0_98 = arith.constant 0 : index
    %71 = vector.load %arg24[%c4_97, %c0_98] : memref<8x8xf32, #tpu.memory_space<vmem>>, vector<2x8xf32>
    %c0_99 = arith.constant 0 : index
    %c16_100 = arith.constant 16 : index
    %72 = vector.load %arg25[%c0_99, %c16_100] : memref<8x32xf32, #tpu.memory_space<vmem>>, vector<2x8xf32>
    tpu.vector_store %arg25[%c0_99, %c16_100], %71 {strides = array<i32>} : memref<8x32xf32, #tpu.memory_space<vmem>>, vector<2x8xf32>,
    %c6_101 = arith.constant 6 : index
    %c0_102 = arith.constant 0 : index
    %73 = vector.load %arg24[%c6_101, %c0_102] : memref<8x8xf32, #tpu.memory_space<vmem>>, vector<2x8xf32>
    %c0_103 = arith.constant 0 : index
    %c24_104 = arith.constant 24 : index
    %74 = vector.load %arg25[%c0_103, %c24_104] : memref<8x32xf32, #tpu.memory_space<vmem>>, vector<2x8xf32>
    tpu.vector_store %arg25[%c0_103, %c24_104], %73 {strides = array<i32>} : memref<8x32xf32, #tpu.memory_space<vmem>>, vector<2x8xf32>,
    %c2_105 = arith.constant 2 : index
    %c0_106 = arith.constant 0 : index
    %75 = vector.load %arg18[%c2_105, %c0_106] : memref<8x32xf32, #tpu.memory_space<vmem>>, vector<2x8xf32>
    %c0_107 = arith.constant 0 : index
    %c0_108 = arith.constant 0 : index
    %76 = vector.load %arg21[%c0_107, %c0_108] : memref<8x8xf32, #tpu.memory_space<vmem>>, vector<2x8xf32>
    tpu.vector_store %arg21[%c0_107, %c0_108], %75 {strides = array<i32>} : memref<8x8xf32, #tpu.memory_space<vmem>>, vector<2x8xf32>,
    %c2_109 = arith.constant 2 : index
    %c0_110 = arith.constant 0 : index
    %77 = vector.load %arg19[%c2_109, %c0_110] : memref<8x32xf32, #tpu.memory_space<vmem>>, vector<2x8xf32>
    %c0_111 = arith.constant 0 : index
    %c0_112 = arith.constant 0 : index
    %78 = vector.load %arg22[%c0_111, %c0_112] : memref<8x8xf32, #tpu.memory_space<vmem>>, vector<2x8xf32>
    tpu.vector_store %arg22[%c0_111, %c0_112], %77 {strides = array<i32>} : memref<8x8xf32, #tpu.memory_space<vmem>>, vector<2x8xf32>,
    %c2_113 = arith.constant 2 : index
    %c0_114 = arith.constant 0 : index
    %79 = vector.load %arg20[%c2_113, %c0_114] : memref<8x32xf32, #tpu.memory_space<vmem>>, vector<2x8xf32>
    %c0_115 = arith.constant 0 : index
    %c0_116 = arith.constant 0 : index
    %80 = vector.load %arg23[%c0_115, %c0_116] : memref<8x8xf32, #tpu.memory_space<vmem>>, vector<2x8xf32>
    tpu.vector_store %arg23[%c0_115, %c0_116], %79 {strides = array<i32>} : memref<8x8xf32, #tpu.memory_space<vmem>>, vector<2x8xf32>,
    %c2_117 = arith.constant 2 : index
    %c8_118 = arith.constant 8 : index
    %81 = vector.load %arg18[%c2_117, %c8_118] : memref<8x32xf32, #tpu.memory_space<vmem>>, vector<2x8xf32>
    %c2_119 = arith.constant 2 : index
    %c0_120 = arith.constant 0 : index
    %82 = vector.load %arg21[%c2_119, %c0_120] : memref<8x8xf32, #tpu.memory_space<vmem>>, vector<2x8xf32>
    tpu.vector_store %arg21[%c2_119, %c0_120], %81 {strides = array<i32>} : memref<8x8xf32, #tpu.memory_space<vmem>>, vector<2x8xf32>,
    %c2_121 = arith.constant 2 : index
    %c8_122 = arith.constant 8 : index
    %83 = vector.load %arg19[%c2_121, %c8_122] : memref<8x32xf32, #tpu.memory_space<vmem>>, vector<2x8xf32>
    %c2_123 = arith.constant 2 : index
    %c0_124 = arith.constant 0 : index
    %84 = vector.load %arg22[%c2_123, %c0_124] : memref<8x8xf32, #tpu.memory_space<vmem>>, vector<2x8xf32>
    tpu.vector_store %arg22[%c2_123, %c0_124], %83 {strides = array<i32>} : memref<8x8xf32, #tpu.memory_space<vmem>>, vector<2x8xf32>,
    %c2_125 = arith.constant 2 : index
    %c8_126 = arith.constant 8 : index
    %85 = vector.load %arg20[%c2_125, %c8_126] : memref<8x32xf32, #tpu.memory_space<vmem>>, vector<2x8xf32>
    %c2_127 = arith.constant 2 : index
    %c0_128 = arith.constant 0 : index
    %86 = vector.load %arg23[%c2_127, %c0_128] : memref<8x8xf32, #tpu.memory_space<vmem>>, vector<2x8xf32>
    tpu.vector_store %arg23[%c2_127, %c0_128], %85 {strides = array<i32>} : memref<8x8xf32, #tpu.memory_space<vmem>>, vector<2x8xf32>,
    %c2_129 = arith.constant 2 : index
    %c16_130 = arith.constant 16 : index
    %87 = vector.load %arg18[%c2_129, %c16_130] : memref<8x32xf32, #tpu.memory_space<vmem>>, vector<2x8xf32>
    %c4_131 = arith.constant 4 : index
    %c0_132 = arith.constant 0 : index
    %88 = vector.load %arg21[%c4_131, %c0_132] : memref<8x8xf32, #tpu.memory_space<vmem>>, vector<2x8xf32>
    tpu.vector_store %arg21[%c4_131, %c0_132], %87 {strides = array<i32>} : memref<8x8xf32, #tpu.memory_space<vmem>>, vector<2x8xf32>,
    %c2_133 = arith.constant 2 : index
    %c16_134 = arith.constant 16 : index
    %89 = vector.load %arg19[%c2_133, %c16_134] : memref<8x32xf32, #tpu.memory_space<vmem>>, vector<2x8xf32>
    %c4_135 = arith.constant 4 : index
    %c0_136 = arith.constant 0 : index
    %90 = vector.load %arg22[%c4_135, %c0_136] : memref<8x8xf32, #tpu.memory_space<vmem>>, vector<2x8xf32>
    tpu.vector_store %arg22[%c4_135, %c0_136], %89 {strides = array<i32>} : memref<8x8xf32, #tpu.memory_space<vmem>>, vector<2x8xf32>,
    %c2_137 = arith.constant 2 : index
    %c16_138 = arith.constant 16 : index
    %91 = vector.load %arg20[%c2_137, %c16_138] : memref<8x32xf32, #tpu.memory_space<vmem>>, vector<2x8xf32>
    %c4_139 = arith.constant 4 : index
    %c0_140 = arith.constant 0 : index
    %92 = vector.load %arg23[%c4_139, %c0_140] : memref<8x8xf32, #tpu.memory_space<vmem>>, vector<2x8xf32>
    tpu.vector_store %arg23[%c4_139, %c0_140], %91 {strides = array<i32>} : memref<8x8xf32, #tpu.memory_space<vmem>>, vector<2x8xf32>,
    %c2_141 = arith.constant 2 : index
    %c24_142 = arith.constant 24 : index
    %93 = vector.load %arg18[%c2_141, %c24_142] : memref<8x32xf32, #tpu.memory_space<vmem>>, vector<2x8xf32>
    %c6_143 = arith.constant 6 : index
    %c0_144 = arith.constant 0 : index
    %94 = vector.load %arg21[%c6_143, %c0_144] : memref<8x8xf32, #tpu.memory_space<vmem>>, vector<2x8xf32>
    tpu.vector_store %arg21[%c6_143, %c0_144], %93 {strides = array<i32>} : memref<8x8xf32, #tpu.memory_space<vmem>>, vector<2x8xf32>,
    %c2_145 = arith.constant 2 : index
    %c24_146 = arith.constant 24 : index
    %95 = vector.load %arg19[%c2_145, %c24_146] : memref<8x32xf32, #tpu.memory_space<vmem>>, vector<2x8xf32>
    %c6_147 = arith.constant 6 : index
    %c0_148 = arith.constant 0 : index
    %96 = vector.load %arg22[%c6_147, %c0_148] : memref<8x8xf32, #tpu.memory_space<vmem>>, vector<2x8xf32>
    tpu.vector_store %arg22[%c6_147, %c0_148], %95 {strides = array<i32>} : memref<8x8xf32, #tpu.memory_space<vmem>>, vector<2x8xf32>,
    %c2_149 = arith.constant 2 : index
    %c24_150 = arith.constant 24 : index
    %97 = vector.load %arg20[%c2_149, %c24_150] : memref<8x32xf32, #tpu.memory_space<vmem>>, vector<2x8xf32>
    %c6_151 = arith.constant 6 : index
    %c0_152 = arith.constant 0 : index
    %98 = vector.load %arg23[%c6_151, %c0_152] : memref<8x8xf32, #tpu.memory_space<vmem>>, vector<2x8xf32>
    tpu.vector_store %arg23[%c6_151, %c0_152], %97 {strides = array<i32>} : memref<8x8xf32, #tpu.memory_space<vmem>>, vector<2x8xf32>,
    %c0_153 = arith.constant 0 : index
    %c0_154 = arith.constant 0 : index
    %99 = vector.load %arg21[%c0_153, %c0_154] : memref<8x8xf32, #tpu.memory_space<vmem>>, vector<8x8xf32>
    %c0_155 = arith.constant 0 : index
    %c0_156 = arith.constant 0 : index
    %100 = vector.load %arg22[%c0_155, %c0_156] : memref<8x8xf32, #tpu.memory_space<vmem>>, vector<8x8xf32>
    %c0_157 = arith.constant 0 : index
    %c0_158 = arith.constant 0 : index
    %101 = vector.load %arg23[%c0_157, %c0_158] : memref<8x8xf32, #tpu.memory_space<vmem>>, vector<8x8xf32>
    %cst_159 = arith.constant dense<0.000000e+00> : vector<8x8xf32>
    %102 = tpu.matmul %99, %100, %cst_159 {dimension_numbers = #tpu.dot_dimension_numbers<[1], [1], [0], [0], [0, 0, 1, 0], [], []>} : vector<8x8xf32>, vector<8x8xf32>, vector<8x8xf32> -> vector<8x8xf32>
    %103 = math.sqrt %102 : vector<8x8xf32>
    %cst_160 = arith.constant -1.000000e+09 : f32
    %104 = vector.broadcast %cst_160 : f32 to vector<8x8xf32>
    %105 = arith.mulf %5, %104 : vector<8x8xf32>
    %106 = arith.addf %103, %105 : vector<8x8xf32>
    %cst_161 = arith.constant dense<0xFF800000> : vector<8xf32>
    %107 = vector.multi_reduction <maximumf>, %106, %cst_161 [1] : vector<8x8xf32> to vector<8xf32>
    %108 = vector.shape_cast %107 : vector<8xf32> to vector<8x1xf32>
    %109 = vector.broadcast %108 : vector<8x1xf32> to vector<8x8xf32>
    %110 = arith.subf %106, %109 : vector<8x8xf32>
    %111 = math.exp %110 : vector<8x8xf32>
    %cst_162 = arith.constant dense<0.000000e+00> : vector<8xf32>
    %112 = vector.multi_reduction <add>, %111, %cst_162 [1] : vector<8x8xf32> to vector<8xf32>
    %113 = vector.shape_cast %112 : vector<8xf32> to vector<8x1xf32>
    %114 = tpu.reciprocal %113 : vector<8x1xf32> -> vector<8x1xf32>
    %115 = vector.broadcast %114 : vector<8x1xf32> to vector<8x8xf32>
    %116 = arith.mulf %111, %115 : vector<8x8xf32>
    %c0_163 = arith.constant 0 : index
    %c0_164 = arith.constant 0 : index
    %c8_165 = arith.constant 8 : index
    %117 = vector.load %arg16[%c0_163, %c0_164, %c8_165] : memref<1x8x32xf32, #tpu.memory_space<vmem>>, vector<1x8x8xf32>
    %118 = vector.shape_cast %117 : vector<1x8x8xf32> to vector<8x8xf32>
    %119 = vector.shape_cast %116 : vector<8x8xf32> to vector<1x8x8xf32>
    tpu.vector_store %arg16[%c0_163, %c0_164, %c8_165], %119 {strides = array<i32>} : memref<1x8x32xf32, #tpu.memory_space<vmem>>, vector<1x8x8xf32>,
    %cst_166 = arith.constant dense<0.000000e+00> : vector<8x8xf32>
    %120 = tpu.matmul %116, %101, %cst_166 {dimension_numbers = #tpu.dot_dimension_numbers<[1], [0], [0], [1], [0, 0, 1, 1], [], []>} : vector<8x8xf32>, vector<8x8xf32>, vector<8x8xf32> -> vector<8x8xf32>
    %c0_167 = arith.constant 0 : index
    %c0_168 = arith.constant 0 : index
    %121 = vector.load %arg24[%c0_167, %c0_168] : memref<8x8xf32, #tpu.memory_space<vmem>>, vector<8x8xf32>
    tpu.vector_store %arg24[%c0_167, %c0_168], %120 {strides = array<i32>} : memref<8x8xf32, #tpu.memory_space<vmem>>, vector<8x8xf32>,
    %c0_169 = arith.constant 0 : index
    %c0_170 = arith.constant 0 : index
    %122 = vector.load %arg24[%c0_169, %c0_170] : memref<8x8xf32, #tpu.memory_space<vmem>>, vector<2x8xf32>
    %c2_171 = arith.constant 2 : index
    %c0_172 = arith.constant 0 : index
    %123 = vector.load %arg25[%c2_171, %c0_172] : memref<8x32xf32, #tpu.memory_space<vmem>>, vector<2x8xf32>
    tpu.vector_store %arg25[%c2_171, %c0_172], %122 {strides = array<i32>} : memref<8x32xf32, #tpu.memory_space<vmem>>, vector<2x8xf32>,
    %c2_173 = arith.constant 2 : index
    %c0_174 = arith.constant 0 : index
    %124 = vector.load %arg24[%c2_173, %c0_174] : memref<8x8xf32, #tpu.memory_space<vmem>>, vector<2x8xf32>
    %c2_175 = arith.constant 2 : index
    %c8_176 = arith.constant 8 : index
    %125 = vector.load %arg25[%c2_175, %c8_176] : memref<8x32xf32, #tpu.memory_space<vmem>>, vector<2x8xf32>
    tpu.vector_store %arg25[%c2_175, %c8_176], %124 {strides = array<i32>} : memref<8x32xf32, #tpu.memory_space<vmem>>, vector<2x8xf32>,
    %c4_177 = arith.constant 4 : index
    %c0_178 = arith.constant 0 : index
    %126 = vector.load %arg24[%c4_177, %c0_178] : memref<8x8xf32, #tpu.memory_space<vmem>>, vector<2x8xf32>
    %c2_179 = arith.constant 2 : index
    %c16_180 = arith.constant 16 : index
    %127 = vector.load %arg25[%c2_179, %c16_180] : memref<8x32xf32, #tpu.memory_space<vmem>>, vector<2x8xf32>
    tpu.vector_store %arg25[%c2_179, %c16_180], %126 {strides = array<i32>} : memref<8x32xf32, #tpu.memory_space<vmem>>, vector<2x8xf32>,
    %c6_181 = arith.constant 6 : index
    %c0_182 = arith.constant 0 : index
    %128 = vector.load %arg24[%c6_181, %c0_182] : memref<8x8xf32, #tpu.memory_space<vmem>>, vector<2x8xf32>
    %c2_183 = arith.constant 2 : index
    %c24_184 = arith.constant 24 : index
    %129 = vector.load %arg25[%c2_183, %c24_184] : memref<8x32xf32, #tpu.memory_space<vmem>>, vector<2x8xf32>
    tpu.vector_store %arg25[%c2_183, %c24_184], %128 {strides = array<i32>} : memref<8x32xf32, #tpu.memory_space<vmem>>, vector<2x8xf32>,
    %c4_185 = arith.constant 4 : index
    %c0_186 = arith.constant 0 : index
    %130 = vector.load %arg18[%c4_185, %c0_186] : memref<8x32xf32, #tpu.memory_space<vmem>>, vector<2x8xf32>
    %c0_187 = arith.constant 0 : index
    %c0_188 = arith.constant 0 : index
    %131 = vector.load %arg21[%c0_187, %c0_188] : memref<8x8xf32, #tpu.memory_space<vmem>>, vector<2x8xf32>
    tpu.vector_store %arg21[%c0_187, %c0_188], %130 {strides = array<i32>} : memref<8x8xf32, #tpu.memory_space<vmem>>, vector<2x8xf32>,
    %c4_189 = arith.constant 4 : index
    %c0_190 = arith.constant 0 : index
    %132 = vector.load %arg19[%c4_189, %c0_190] : memref<8x32xf32, #tpu.memory_space<vmem>>, vector<2x8xf32>
    %c0_191 = arith.constant 0 : index
    %c0_192 = arith.constant 0 : index
    %133 = vector.load %arg22[%c0_191, %c0_192] : memref<8x8xf32, #tpu.memory_space<vmem>>, vector<2x8xf32>
    tpu.vector_store %arg22[%c0_191, %c0_192], %132 {strides = array<i32>} : memref<8x8xf32, #tpu.memory_space<vmem>>, vector<2x8xf32>,
    %c4_193 = arith.constant 4 : index
    %c0_194 = arith.constant 0 : index
    %134 = vector.load %arg20[%c4_193, %c0_194] : memref<8x32xf32, #tpu.memory_space<vmem>>, vector<2x8xf32>
    %c0_195 = arith.constant 0 : index
    %c0_196 = arith.constant 0 : index
    %135 = vector.load %arg23[%c0_195, %c0_196] : memref<8x8xf32, #tpu.memory_space<vmem>>, vector<2x8xf32>
    tpu.vector_store %arg23[%c0_195, %c0_196], %134 {strides = array<i32>} : memref<8x8xf32, #tpu.memory_space<vmem>>, vector<2x8xf32>,
    %c4_197 = arith.constant 4 : index
    %c8_198 = arith.constant 8 : index
    %136 = vector.load %arg18[%c4_197, %c8_198] : memref<8x32xf32, #tpu.memory_space<vmem>>, vector<2x8xf32>
    %c2_199 = arith.constant 2 : index
    %c0_200 = arith.constant 0 : index
    %137 = vector.load %arg21[%c2_199, %c0_200] : memref<8x8xf32, #tpu.memory_space<vmem>>, vector<2x8xf32>
    tpu.vector_store %arg21[%c2_199, %c0_200], %136 {strides = array<i32>} : memref<8x8xf32, #tpu.memory_space<vmem>>, vector<2x8xf32>,
    %c4_201 = arith.constant 4 : index
    %c8_202 = arith.constant 8 : index
    %138 = vector.load %arg19[%c4_201, %c8_202] : memref<8x32xf32, #tpu.memory_space<vmem>>, vector<2x8xf32>
    %c2_203 = arith.constant 2 : index
    %c0_204 = arith.constant 0 : index
    %139 = vector.load %arg22[%c2_203, %c0_204] : memref<8x8xf32, #tpu.memory_space<vmem>>, vector<2x8xf32>
    tpu.vector_store %arg22[%c2_203, %c0_204], %138 {strides = array<i32>} : memref<8x8xf32, #tpu.memory_space<vmem>>, vector<2x8xf32>,
    %c4_205 = arith.constant 4 : index
    %c8_206 = arith.constant 8 : index
    %140 = vector.load %arg20[%c4_205, %c8_206] : memref<8x32xf32, #tpu.memory_space<vmem>>, vector<2x8xf32>
    %c2_207 = arith.constant 2 : index
    %c0_208 = arith.constant 0 : index
    %141 = vector.load %arg23[%c2_207, %c0_208] : memref<8x8xf32, #tpu.memory_space<vmem>>, vector<2x8xf32>
    tpu.vector_store %arg23[%c2_207, %c0_208], %140 {strides = array<i32>} : memref<8x8xf32, #tpu.memory_space<vmem>>, vector<2x8xf32>,
    %c4_209 = arith.constant 4 : index
    %c16_210 = arith.constant 16 : index
    %142 = vector.load %arg18[%c4_209, %c16_210] : memref<8x32xf32, #tpu.memory_space<vmem>>, vector<2x8xf32>
    %c4_211 = arith.constant 4 : index
    %c0_212 = arith.constant 0 : index
    %143 = vector.load %arg21[%c4_211, %c0_212] : memref<8x8xf32, #tpu.memory_space<vmem>>, vector<2x8xf32>
    tpu.vector_store %arg21[%c4_211, %c0_212], %142 {strides = array<i32>} : memref<8x8xf32, #tpu.memory_space<vmem>>, vector<2x8xf32>,
    %c4_213 = arith.constant 4 : index
    %c16_214 = arith.constant 16 : index
    %144 = vector.load %arg19[%c4_213, %c16_214] : memref<8x32xf32, #tpu.memory_space<vmem>>, vector<2x8xf32>
    %c4_215 = arith.constant 4 : index
    %c0_216 = arith.constant 0 : index
    %145 = vector.load %arg22[%c4_215, %c0_216] : memref<8x8xf32, #tpu.memory_space<vmem>>, vector<2x8xf32>
    tpu.vector_store %arg22[%c4_215, %c0_216], %144 {strides = array<i32>} : memref<8x8xf32, #tpu.memory_space<vmem>>, vector<2x8xf32>,
    %c4_217 = arith.constant 4 : index
    %c16_218 = arith.constant 16 : index
    %146 = vector.load %arg20[%c4_217, %c16_218] : memref<8x32xf32, #tpu.memory_space<vmem>>, vector<2x8xf32>
    %c4_219 = arith.constant 4 : index
    %c0_220 = arith.constant 0 : index
    %147 = vector.load %arg23[%c4_219, %c0_220] : memref<8x8xf32, #tpu.memory_space<vmem>>, vector<2x8xf32>
    tpu.vector_store %arg23[%c4_219, %c0_220], %146 {strides = array<i32>} : memref<8x8xf32, #tpu.memory_space<vmem>>, vector<2x8xf32>,
    %c4_221 = arith.constant 4 : index
    %c24_222 = arith.constant 24 : index
    %148 = vector.load %arg18[%c4_221, %c24_222] : memref<8x32xf32, #tpu.memory_space<vmem>>, vector<2x8xf32>
    %c6_223 = arith.constant 6 : index
    %c0_224 = arith.constant 0 : index
    %149 = vector.load %arg21[%c6_223, %c0_224] : memref<8x8xf32, #tpu.memory_space<vmem>>, vector<2x8xf32>
    tpu.vector_store %arg21[%c6_223, %c0_224], %148 {strides = array<i32>} : memref<8x8xf32, #tpu.memory_space<vmem>>, vector<2x8xf32>,
    %c4_225 = arith.constant 4 : index
    %c24_226 = arith.constant 24 : index
    %150 = vector.load %arg19[%c4_225, %c24_226] : memref<8x32xf32, #tpu.memory_space<vmem>>, vector<2x8xf32>
    %c6_227 = arith.constant 6 : index
    %c0_228 = arith.constant 0 : index
    %151 = vector.load %arg22[%c6_227, %c0_228] : memref<8x8xf32, #tpu.memory_space<vmem>>, vector<2x8xf32>
    tpu.vector_store %arg22[%c6_227, %c0_228], %150 {strides = array<i32>} : memref<8x8xf32, #tpu.memory_space<vmem>>, vector<2x8xf32>,
    %c4_229 = arith.constant 4 : index
    %c24_230 = arith.constant 24 : index
    %152 = vector.load %arg20[%c4_229, %c24_230] : memref<8x32xf32, #tpu.memory_space<vmem>>, vector<2x8xf32>
    %c6_231 = arith.constant 6 : index
    %c0_232 = arith.constant 0 : index
    %153 = vector.load %arg23[%c6_231, %c0_232] : memref<8x8xf32, #tpu.memory_space<vmem>>, vector<2x8xf32>
    tpu.vector_store %arg23[%c6_231, %c0_232], %152 {strides = array<i32>} : memref<8x8xf32, #tpu.memory_space<vmem>>, vector<2x8xf32>,
    %c0_233 = arith.constant 0 : index
    %c0_234 = arith.constant 0 : index
    %154 = vector.load %arg21[%c0_233, %c0_234] : memref<8x8xf32, #tpu.memory_space<vmem>>, vector<8x8xf32>
    %c0_235 = arith.constant 0 : index
    %c0_236 = arith.constant 0 : index
    %155 = vector.load %arg22[%c0_235, %c0_236] : memref<8x8xf32, #tpu.memory_space<vmem>>, vector<8x8xf32>
    %c0_237 = arith.constant 0 : index
    %c0_238 = arith.constant 0 : index
    %156 = vector.load %arg23[%c0_237, %c0_238] : memref<8x8xf32, #tpu.memory_space<vmem>>, vector<8x8xf32>
    %cst_239 = arith.constant dense<0.000000e+00> : vector<8x8xf32>
    %157 = tpu.matmul %154, %155, %cst_239 {dimension_numbers = #tpu.dot_dimension_numbers<[1], [1], [0], [0], [0, 0, 1, 0], [], []>} : vector<8x8xf32>, vector<8x8xf32>, vector<8x8xf32> -> vector<8x8xf32>
    %158 = math.sqrt %157 : vector<8x8xf32>
    %cst_240 = arith.constant -1.000000e+09 : f32
    %159 = vector.broadcast %cst_240 : f32 to vector<8x8xf32>
    %160 = arith.mulf %5, %159 : vector<8x8xf32>
    %161 = arith.addf %158, %160 : vector<8x8xf32>
    %cst_241 = arith.constant dense<0xFF800000> : vector<8xf32>
    %162 = vector.multi_reduction <maximumf>, %161, %cst_241 [1] : vector<8x8xf32> to vector<8xf32>
    %163 = vector.shape_cast %162 : vector<8xf32> to vector<8x1xf32>
    %164 = vector.broadcast %163 : vector<8x1xf32> to vector<8x8xf32>
    %165 = arith.subf %161, %164 : vector<8x8xf32>
    %166 = math.exp %165 : vector<8x8xf32>
    %cst_242 = arith.constant dense<0.000000e+00> : vector<8xf32>
    %167 = vector.multi_reduction <add>, %166, %cst_242 [1] : vector<8x8xf32> to vector<8xf32>
    %168 = vector.shape_cast %167 : vector<8xf32> to vector<8x1xf32>
    %169 = tpu.reciprocal %168 : vector<8x1xf32> -> vector<8x1xf32>
    %170 = vector.broadcast %169 : vector<8x1xf32> to vector<8x8xf32>
    %171 = arith.mulf %166, %170 : vector<8x8xf32>
    %c0_243 = arith.constant 0 : index
    %c0_244 = arith.constant 0 : index
    %c16_245 = arith.constant 16 : index
    %172 = vector.load %arg16[%c0_243, %c0_244, %c16_245] : memref<1x8x32xf32, #tpu.memory_space<vmem>>, vector<1x8x8xf32>
    %173 = vector.shape_cast %172 : vector<1x8x8xf32> to vector<8x8xf32>
    %174 = vector.shape_cast %171 : vector<8x8xf32> to vector<1x8x8xf32>
    tpu.vector_store %arg16[%c0_243, %c0_244, %c16_245], %174 {strides = array<i32>} : memref<1x8x32xf32, #tpu.memory_space<vmem>>, vector<1x8x8xf32>,
    %cst_246 = arith.constant dense<0.000000e+00> : vector<8x8xf32>
    %175 = tpu.matmul %171, %156, %cst_246 {dimension_numbers = #tpu.dot_dimension_numbers<[1], [0], [0], [1], [0, 0, 1, 1], [], []>} : vector<8x8xf32>, vector<8x8xf32>, vector<8x8xf32> -> vector<8x8xf32>
    %c0_247 = arith.constant 0 : index
    %c0_248 = arith.constant 0 : index
    %176 = vector.load %arg24[%c0_247, %c0_248] : memref<8x8xf32, #tpu.memory_space<vmem>>, vector<8x8xf32>
    tpu.vector_store %arg24[%c0_247, %c0_248], %175 {strides = array<i32>} : memref<8x8xf32, #tpu.memory_space<vmem>>, vector<8x8xf32>,
    %c0_249 = arith.constant 0 : index
    %c0_250 = arith.constant 0 : index
    %177 = vector.load %arg24[%c0_249, %c0_250] : memref<8x8xf32, #tpu.memory_space<vmem>>, vector<2x8xf32>
    %c4_251 = arith.constant 4 : index
    %c0_252 = arith.constant 0 : index
    %178 = vector.load %arg25[%c4_251, %c0_252] : memref<8x32xf32, #tpu.memory_space<vmem>>, vector<2x8xf32>
    tpu.vector_store %arg25[%c4_251, %c0_252], %177 {strides = array<i32>} : memref<8x32xf32, #tpu.memory_space<vmem>>, vector<2x8xf32>,
    %c2_253 = arith.constant 2 : index
    %c0_254 = arith.constant 0 : index
    %179 = vector.load %arg24[%c2_253, %c0_254] : memref<8x8xf32, #tpu.memory_space<vmem>>, vector<2x8xf32>
    %c4_255 = arith.constant 4 : index
    %c8_256 = arith.constant 8 : index
    %180 = vector.load %arg25[%c4_255, %c8_256] : memref<8x32xf32, #tpu.memory_space<vmem>>, vector<2x8xf32>
    tpu.vector_store %arg25[%c4_255, %c8_256], %179 {strides = array<i32>} : memref<8x32xf32, #tpu.memory_space<vmem>>, vector<2x8xf32>,
    %c4_257 = arith.constant 4 : index
    %c0_258 = arith.constant 0 : index
    %181 = vector.load %arg24[%c4_257, %c0_258] : memref<8x8xf32, #tpu.memory_space<vmem>>, vector<2x8xf32>
    %c4_259 = arith.constant 4 : index
    %c16_260 = arith.constant 16 : index
    %182 = vector.load %arg25[%c4_259, %c16_260] : memref<8x32xf32, #tpu.memory_space<vmem>>, vector<2x8xf32>
    tpu.vector_store %arg25[%c4_259, %c16_260], %181 {strides = array<i32>} : memref<8x32xf32, #tpu.memory_space<vmem>>, vector<2x8xf32>,
    %c6_261 = arith.constant 6 : index
    %c0_262 = arith.constant 0 : index
    %183 = vector.load %arg24[%c6_261, %c0_262] : memref<8x8xf32, #tpu.memory_space<vmem>>, vector<2x8xf32>
    %c4_263 = arith.constant 4 : index
    %c24_264 = arith.constant 24 : index
    %184 = vector.load %arg25[%c4_263, %c24_264] : memref<8x32xf32, #tpu.memory_space<vmem>>, vector<2x8xf32>
    tpu.vector_store %arg25[%c4_263, %c24_264], %183 {strides = array<i32>} : memref<8x32xf32, #tpu.memory_space<vmem>>, vector<2x8xf32>,
    %c6_265 = arith.constant 6 : index
    %c0_266 = arith.constant 0 : index
    %185 = vector.load %arg18[%c6_265, %c0_266] : memref<8x32xf32, #tpu.memory_space<vmem>>, vector<2x8xf32>
    %c0_267 = arith.constant 0 : index
    %c0_268 = arith.constant 0 : index
    %186 = vector.load %arg21[%c0_267, %c0_268] : memref<8x8xf32, #tpu.memory_space<vmem>>, vector<2x8xf32>
    tpu.vector_store %arg21[%c0_267, %c0_268], %185 {strides = array<i32>} : memref<8x8xf32, #tpu.memory_space<vmem>>, vector<2x8xf32>,
    %c6_269 = arith.constant 6 : index
    %c0_270 = arith.constant 0 : index
    %187 = vector.load %arg19[%c6_269, %c0_270] : memref<8x32xf32, #tpu.memory_space<vmem>>, vector<2x8xf32>
    %c0_271 = arith.constant 0 : index
    %c0_272 = arith.constant 0 : index
    %188 = vector.load %arg22[%c0_271, %c0_272] : memref<8x8xf32, #tpu.memory_space<vmem>>, vector<2x8xf32>
    tpu.vector_store %arg22[%c0_271, %c0_272], %187 {strides = array<i32>} : memref<8x8xf32, #tpu.memory_space<vmem>>, vector<2x8xf32>,
    %c6_273 = arith.constant 6 : index
    %c0_274 = arith.constant 0 : index
    %189 = vector.load %arg20[%c6_273, %c0_274] : memref<8x32xf32, #tpu.memory_space<vmem>>, vector<2x8xf32>
    %c0_275 = arith.constant 0 : index
    %c0_276 = arith.constant 0 : index
    %190 = vector.load %arg23[%c0_275, %c0_276] : memref<8x8xf32, #tpu.memory_space<vmem>>, vector<2x8xf32>
    tpu.vector_store %arg23[%c0_275, %c0_276], %189 {strides = array<i32>} : memref<8x8xf32, #tpu.memory_space<vmem>>, vector<2x8xf32>,
    %c6_277 = arith.constant 6 : index
    %c8_278 = arith.constant 8 : index
    %191 = vector.load %arg18[%c6_277, %c8_278] : memref<8x32xf32, #tpu.memory_space<vmem>>, vector<2x8xf32>
    %c2_279 = arith.constant 2 : index
    %c0_280 = arith.constant 0 : index
    %192 = vector.load %arg21[%c2_279, %c0_280] : memref<8x8xf32, #tpu.memory_space<vmem>>, vector<2x8xf32>
    tpu.vector_store %arg21[%c2_279, %c0_280], %191 {strides = array<i32>} : memref<8x8xf32, #tpu.memory_space<vmem>>, vector<2x8xf32>,
    %c6_281 = arith.constant 6 : index
    %c8_282 = arith.constant 8 : index
    %193 = vector.load %arg19[%c6_281, %c8_282] : memref<8x32xf32, #tpu.memory_space<vmem>>, vector<2x8xf32>
    %c2_283 = arith.constant 2 : index
    %c0_284 = arith.constant 0 : index
    %194 = vector.load %arg22[%c2_283, %c0_284] : memref<8x8xf32, #tpu.memory_space<vmem>>, vector<2x8xf32>
    tpu.vector_store %arg22[%c2_283, %c0_284], %193 {strides = array<i32>} : memref<8x8xf32, #tpu.memory_space<vmem>>, vector<2x8xf32>,
    %c6_285 = arith.constant 6 : index
    %c8_286 = arith.constant 8 : index
    %195 = vector.load %arg20[%c6_285, %c8_286] : memref<8x32xf32, #tpu.memory_space<vmem>>, vector<2x8xf32>
    %c2_287 = arith.constant 2 : index
    %c0_288 = arith.constant 0 : index
    %196 = vector.load %arg23[%c2_287, %c0_288] : memref<8x8xf32, #tpu.memory_space<vmem>>, vector<2x8xf32>
    tpu.vector_store %arg23[%c2_287, %c0_288], %195 {strides = array<i32>} : memref<8x8xf32, #tpu.memory_space<vmem>>, vector<2x8xf32>,
    %c6_289 = arith.constant 6 : index
    %c16_290 = arith.constant 16 : index
    %197 = vector.load %arg18[%c6_289, %c16_290] : memref<8x32xf32, #tpu.memory_space<vmem>>, vector<2x8xf32>
    %c4_291 = arith.constant 4 : index
    %c0_292 = arith.constant 0 : index
    %198 = vector.load %arg21[%c4_291, %c0_292] : memref<8x8xf32, #tpu.memory_space<vmem>>, vector<2x8xf32>
    tpu.vector_store %arg21[%c4_291, %c0_292], %197 {strides = array<i32>} : memref<8x8xf32, #tpu.memory_space<vmem>>, vector<2x8xf32>,
    %c6_293 = arith.constant 6 : index
    %c16_294 = arith.constant 16 : index
    %199 = vector.load %arg19[%c6_293, %c16_294] : memref<8x32xf32, #tpu.memory_space<vmem>>, vector<2x8xf32>
    %c4_295 = arith.constant 4 : index
    %c0_296 = arith.constant 0 : index
    %200 = vector.load %arg22[%c4_295, %c0_296] : memref<8x8xf32, #tpu.memory_space<vmem>>, vector<2x8xf32>
    tpu.vector_store %arg22[%c4_295, %c0_296], %199 {strides = array<i32>} : memref<8x8xf32, #tpu.memory_space<vmem>>, vector<2x8xf32>,
    %c6_297 = arith.constant 6 : index
    %c16_298 = arith.constant 16 : index
    %201 = vector.load %arg20[%c6_297, %c16_298] : memref<8x32xf32, #tpu.memory_space<vmem>>, vector<2x8xf32>
    %c4_299 = arith.constant 4 : index
    %c0_300 = arith.constant 0 : index
    %202 = vector.load %arg23[%c4_299, %c0_300] : memref<8x8xf32, #tpu.memory_space<vmem>>, vector<2x8xf32>
    tpu.vector_store %arg23[%c4_299, %c0_300], %201 {strides = array<i32>} : memref<8x8xf32, #tpu.memory_space<vmem>>, vector<2x8xf32>,
    %c6_301 = arith.constant 6 : index
    %c24_302 = arith.constant 24 : index
    %203 = vector.load %arg18[%c6_301, %c24_302] : memref<8x32xf32, #tpu.memory_space<vmem>>, vector<2x8xf32>
    %c6_303 = arith.constant 6 : index
    %c0_304 = arith.constant 0 : index
    %204 = vector.load %arg21[%c6_303, %c0_304] : memref<8x8xf32, #tpu.memory_space<vmem>>, vector<2x8xf32>
    tpu.vector_store %arg21[%c6_303, %c0_304], %203 {strides = array<i32>} : memref<8x8xf32, #tpu.memory_space<vmem>>, vector<2x8xf32>,
    %c6_305 = arith.constant 6 : index
    %c24_306 = arith.constant 24 : index
    %205 = vector.load %arg19[%c6_305, %c24_306] : memref<8x32xf32, #tpu.memory_space<vmem>>, vector<2x8xf32>
    %c6_307 = arith.constant 6 : index
    %c0_308 = arith.constant 0 : index
    %206 = vector.load %arg22[%c6_307, %c0_308] : memref<8x8xf32, #tpu.memory_space<vmem>>, vector<2x8xf32>
    tpu.vector_store %arg22[%c6_307, %c0_308], %205 {strides = array<i32>} : memref<8x8xf32, #tpu.memory_space<vmem>>, vector<2x8xf32>,
    %c6_309 = arith.constant 6 : index
    %c24_310 = arith.constant 24 : index
    %207 = vector.load %arg20[%c6_309, %c24_310] : memref<8x32xf32, #tpu.memory_space<vmem>>, vector<2x8xf32>
    %c6_311 = arith.constant 6 : index
    %c0_312 = arith.constant 0 : index
    %208 = vector.load %arg23[%c6_311, %c0_312] : memref<8x8xf32, #tpu.memory_space<vmem>>, vector<2x8xf32>
    tpu.vector_store %arg23[%c6_311, %c0_312], %207 {strides = array<i32>} : memref<8x8xf32, #tpu.memory_space<vmem>>, vector<2x8xf32>,
    %c0_313 = arith.constant 0 : index
    %c0_314 = arith.constant 0 : index
    %209 = vector.load %arg21[%c0_313, %c0_314] : memref<8x8xf32, #tpu.memory_space<vmem>>, vector<8x8xf32>
    %c0_315 = arith.constant 0 : index
    %c0_316 = arith.constant 0 : index
    %210 = vector.load %arg22[%c0_315, %c0_316] : memref<8x8xf32, #tpu.memory_space<vmem>>, vector<8x8xf32>
    %c0_317 = arith.constant 0 : index
    %c0_318 = arith.constant 0 : index
    %211 = vector.load %arg23[%c0_317, %c0_318] : memref<8x8xf32, #tpu.memory_space<vmem>>, vector<8x8xf32>
    %cst_319 = arith.constant dense<0.000000e+00> : vector<8x8xf32>
    %212 = tpu.matmul %209, %210, %cst_319 {dimension_numbers = #tpu.dot_dimension_numbers<[1], [1], [0], [0], [0, 0, 1, 0], [], []>} : vector<8x8xf32>, vector<8x8xf32>, vector<8x8xf32> -> vector<8x8xf32>
    %213 = math.sqrt %212 : vector<8x8xf32>
    %cst_320 = arith.constant -1.000000e+09 : f32
    %214 = vector.broadcast %cst_320 : f32 to vector<8x8xf32>
    %215 = arith.mulf %5, %214 : vector<8x8xf32>
    %216 = arith.addf %213, %215 : vector<8x8xf32>
    %cst_321 = arith.constant dense<0xFF800000> : vector<8xf32>
    %217 = vector.multi_reduction <maximumf>, %216, %cst_321 [1] : vector<8x8xf32> to vector<8xf32>
    %218 = vector.shape_cast %217 : vector<8xf32> to vector<8x1xf32>
    %219 = vector.broadcast %218 : vector<8x1xf32> to vector<8x8xf32>
    %220 = arith.subf %216, %219 : vector<8x8xf32>
    %221 = math.exp %220 : vector<8x8xf32>
    %cst_322 = arith.constant dense<0.000000e+00> : vector<8xf32>
    %222 = vector.multi_reduction <add>, %221, %cst_322 [1] : vector<8x8xf32> to vector<8xf32>
    %223 = vector.shape_cast %222 : vector<8xf32> to vector<8x1xf32>
    %224 = tpu.reciprocal %223 : vector<8x1xf32> -> vector<8x1xf32>
    %225 = vector.broadcast %224 : vector<8x1xf32> to vector<8x8xf32>
    %226 = arith.mulf %221, %225 : vector<8x8xf32>
    %c0_323 = arith.constant 0 : index
    %c0_324 = arith.constant 0 : index
    %c24_325 = arith.constant 24 : index
    %227 = vector.load %arg16[%c0_323, %c0_324, %c24_325] : memref<1x8x32xf32, #tpu.memory_space<vmem>>, vector<1x8x8xf32>
    %228 = vector.shape_cast %227 : vector<1x8x8xf32> to vector<8x8xf32>
    %229 = vector.shape_cast %226 : vector<8x8xf32> to vector<1x8x8xf32>
    tpu.vector_store %arg16[%c0_323, %c0_324, %c24_325], %229 {strides = array<i32>} : memref<1x8x32xf32, #tpu.memory_space<vmem>>, vector<1x8x8xf32>,
    %cst_326 = arith.constant dense<0.000000e+00> : vector<8x8xf32>
    %230 = tpu.matmul %226, %211, %cst_326 {dimension_numbers = #tpu.dot_dimension_numbers<[1], [0], [0], [1], [0, 0, 1, 1], [], []>} : vector<8x8xf32>, vector<8x8xf32>, vector<8x8xf32> -> vector<8x8xf32>
    %c0_327 = arith.constant 0 : index
    %c0_328 = arith.constant 0 : index
    %231 = vector.load %arg24[%c0_327, %c0_328] : memref<8x8xf32, #tpu.memory_space<vmem>>, vector<8x8xf32>
    tpu.vector_store %arg24[%c0_327, %c0_328], %230 {strides = array<i32>} : memref<8x8xf32, #tpu.memory_space<vmem>>, vector<8x8xf32>,
    %c0_329 = arith.constant 0 : index
    %c0_330 = arith.constant 0 : index
    %232 = vector.load %arg24[%c0_329, %c0_330] : memref<8x8xf32, #tpu.memory_space<vmem>>, vector<2x8xf32>
    %c6_331 = arith.constant 6 : index
    %c0_332 = arith.constant 0 : index
    %233 = vector.load %arg25[%c6_331, %c0_332] : memref<8x32xf32, #tpu.memory_space<vmem>>, vector<2x8xf32>
    tpu.vector_store %arg25[%c6_331, %c0_332], %232 {strides = array<i32>} : memref<8x32xf32, #tpu.memory_space<vmem>>, vector<2x8xf32>,
    %c2_333 = arith.constant 2 : index
    %c0_334 = arith.constant 0 : index
    %234 = vector.load %arg24[%c2_333, %c0_334] : memref<8x8xf32, #tpu.memory_space<vmem>>, vector<2x8xf32>
    %c6_335 = arith.constant 6 : index
    %c8_336 = arith.constant 8 : index
    %235 = vector.load %arg25[%c6_335, %c8_336] : memref<8x32xf32, #tpu.memory_space<vmem>>, vector<2x8xf32>
    tpu.vector_store %arg25[%c6_335, %c8_336], %234 {strides = array<i32>} : memref<8x32xf32, #tpu.memory_space<vmem>>, vector<2x8xf32>,
    %c4_337 = arith.constant 4 : index
    %c0_338 = arith.constant 0 : index
    %236 = vector.load %arg24[%c4_337, %c0_338] : memref<8x8xf32, #tpu.memory_space<vmem>>, vector<2x8xf32>
    %c6_339 = arith.constant 6 : index
    %c16_340 = arith.constant 16 : index
    %237 = vector.load %arg25[%c6_339, %c16_340] : memref<8x32xf32, #tpu.memory_space<vmem>>, vector<2x8xf32>
    tpu.vector_store %arg25[%c6_339, %c16_340], %236 {strides = array<i32>} : memref<8x32xf32, #tpu.memory_space<vmem>>, vector<2x8xf32>,
    %c6_341 = arith.constant 6 : index
    %c0_342 = arith.constant 0 : index
    %238 = vector.load %arg24[%c6_341, %c0_342] : memref<8x8xf32, #tpu.memory_space<vmem>>, vector<2x8xf32>
    %c6_343 = arith.constant 6 : index
    %c24_344 = arith.constant 24 : index
    %239 = vector.load %arg25[%c6_343, %c24_344] : memref<8x32xf32, #tpu.memory_space<vmem>>, vector<2x8xf32>
    tpu.vector_store %arg25[%c6_343, %c24_344], %238 {strides = array<i32>} : memref<8x32xf32, #tpu.memory_space<vmem>>, vector<2x8xf32>,
    %c0_345 = arith.constant 0 : index
    %c0_346 = arith.constant 0 : index
    %240 = vector.load %arg25[%c0_345, %c0_346] : memref<8x32xf32, #tpu.memory_space<vmem>>, vector<8x32xf32>
    %cst_347 = arith.constant dense<0.000000e+00> : vector<8x32xf32>
    %241 = tpu.matmul %240, %11, %cst_347 {dimension_numbers = #tpu.dot_dimension_numbers<[1], [0], [0], [1], [0, 0, 1, 1], [], []>} : vector<8x32xf32>, vector<32x32xf32>, vector<8x32xf32> -> vector<8x32xf32>
    %242 = arith.addf %1, %241 : vector<8x32xf32>
    %cst_348 = arith.constant dense<0.000000e+00> : vector<8xf32>
    %243 = vector.multi_reduction <add>, %242, %cst_348 [1] : vector<8x32xf32> to vector<8xf32>
    %244 = vector.shape_cast %243 : vector<8xf32> to vector<8x1xf32>
    %cst_349 = arith.constant 3.200000e+01 : f32
    %245 = vector.broadcast %cst_349 : f32 to vector<8x1xf32>
    %246 = arith.divf %244, %245 : vector<8x1xf32>
    %247 = vector.broadcast %246 : vector<8x1xf32> to vector<8x32xf32>
    %248 = arith.subf %242, %247 : vector<8x32xf32>
    %249 = arith.mulf %248, %248 : vector<8x32xf32>
    %cst_350 = arith.constant dense<0.000000e+00> : vector<8xf32>
    %250 = vector.multi_reduction <add>, %249, %cst_350 [1] : vector<8x32xf32> to vector<8xf32>
    %251 = vector.shape_cast %250 : vector<8xf32> to vector<8x1xf32>
    %cst_351 = arith.constant 3.200000e+01 : f32
    %252 = vector.broadcast %cst_351 : f32 to vector<8x1xf32>
    %253 = arith.divf %251, %252 : vector<8x1xf32>
    %254 = vector.broadcast %246 : vector<8x1xf32> to vector<8x32xf32>
    %255 = arith.subf %242, %254 : vector<8x32xf32>
    %cst_352 = arith.constant 9.99999997E-7 : f32
    %256 = vector.broadcast %cst_352 : f32 to vector<8x1xf32>
    %257 = arith.addf %253, %256 : vector<8x1xf32>
    %258 = math.rsqrt %257 : vector<8x1xf32>
    %259 = vector.broadcast %258 : vector<8x1xf32> to vector<8x32xf32>
    %260 = arith.mulf %255, %259 : vector<8x32xf32>
    %261 = vector.broadcast %12 : vector<1x32xf32> to vector<8x32xf32>
    %262 = arith.mulf %260, %261 : vector<8x32xf32>
    %263 = vector.broadcast %13 : vector<1x32xf32> to vector<8x32xf32>
    %264 = arith.addf %262, %263 : vector<8x32xf32>
    %cst_353 = arith.constant dense<0.000000e+00> : vector<8x32xf32>
    %265 = tpu.matmul %264, %8, %cst_353 {dimension_numbers = #tpu.dot_dimension_numbers<[1], [0], [0], [1], [0, 0, 1, 1], [], []>} : vector<8x32xf32>, vector<32x32xf32>, vector<8x32xf32> -> vector<8x32xf32>
    %c0_354 = arith.constant 0 : index
    %c0_355 = arith.constant 0 : index
    %266 = vector.load %arg18[%c0_354, %c0_355] : memref<8x32xf32, #tpu.memory_space<vmem>>, vector<8x32xf32>
    tpu.vector_store %arg18[%c0_354, %c0_355], %265 {strides = array<i32>} : memref<8x32xf32, #tpu.memory_space<vmem>>, vector<8x32xf32>,
    %cst_356 = arith.constant dense<0.000000e+00> : vector<8x32xf32>
    %267 = tpu.matmul %3, %9, %cst_356 {dimension_numbers = #tpu.dot_dimension_numbers<[1], [0], [0], [1], [0, 0, 1, 1], [], []>} : vector<8x32xf32>, vector<32x32xf32>, vector<8x32xf32> -> vector<8x32xf32>
    %c0_357 = arith.constant 0 : index
    %c0_358 = arith.constant 0 : index
    %268 = vector.load %arg19[%c0_357, %c0_358] : memref<8x32xf32, #tpu.memory_space<vmem>>, vector<8x32xf32>
    tpu.vector_store %arg19[%c0_357, %c0_358], %267 {strides = array<i32>} : memref<8x32xf32, #tpu.memory_space<vmem>>, vector<8x32xf32>,
    %cst_359 = arith.constant dense<0.000000e+00> : vector<8x32xf32>
    %269 = tpu.matmul %3, %10, %cst_359 {dimension_numbers = #tpu.dot_dimension_numbers<[1], [0], [0], [1], [0, 0, 1, 1], [], []>} : vector<8x32xf32>, vector<32x32xf32>, vector<8x32xf32> -> vector<8x32xf32>
    %c0_360 = arith.constant 0 : index
    %c0_361 = arith.constant 0 : index
    %270 = vector.load %arg20[%c0_360, %c0_361] : memref<8x32xf32, #tpu.memory_space<vmem>>, vector<8x32xf32>
    tpu.vector_store %arg20[%c0_360, %c0_361], %269 {strides = array<i32>} : memref<8x32xf32, #tpu.memory_space<vmem>>, vector<8x32xf32>,
    %c0_362 = arith.constant 0 : index
    %c0_363 = arith.constant 0 : index
    %271 = vector.load %arg18[%c0_362, %c0_363] : memref<8x32xf32, #tpu.memory_space<vmem>>, vector<2x8xf32>
    %c0_364 = arith.constant 0 : index
    %c0_365 = arith.constant 0 : index
    %272 = vector.load %arg21[%c0_364, %c0_365] : memref<8x8xf32, #tpu.memory_space<vmem>>, vector<2x8xf32>
    tpu.vector_store %arg21[%c0_364, %c0_365], %271 {strides = array<i32>} : memref<8x8xf32, #tpu.memory_space<vmem>>, vector<2x8xf32>,
    %c0_366 = arith.constant 0 : index
    %c0_367 = arith.constant 0 : index
    %273 = vector.load %arg19[%c0_366, %c0_367] : memref<8x32xf32, #tpu.memory_space<vmem>>, vector<2x8xf32>
    %c0_368 = arith.constant 0 : index
    %c0_369 = arith.constant 0 : index
    %274 = vector.load %arg22[%c0_368, %c0_369] : memref<8x8xf32, #tpu.memory_space<vmem>>, vector<2x8xf32>
    tpu.vector_store %arg22[%c0_368, %c0_369], %273 {strides = array<i32>} : memref<8x8xf32, #tpu.memory_space<vmem>>, vector<2x8xf32>,
    %c0_370 = arith.constant 0 : index
    %c0_371 = arith.constant 0 : index
    %275 = vector.load %arg20[%c0_370, %c0_371] : memref<8x32xf32, #tpu.memory_space<vmem>>, vector<2x8xf32>
    %c0_372 = arith.constant 0 : index
    %c0_373 = arith.constant 0 : index
    %276 = vector.load %arg23[%c0_372, %c0_373] : memref<8x8xf32, #tpu.memory_space<vmem>>, vector<2x8xf32>
    tpu.vector_store %arg23[%c0_372, %c0_373], %275 {strides = array<i32>} : memref<8x8xf32, #tpu.memory_space<vmem>>, vector<2x8xf32>,
    %c0_374 = arith.constant 0 : index
    %c8_375 = arith.constant 8 : index
    %277 = vector.load %arg18[%c0_374, %c8_375] : memref<8x32xf32, #tpu.memory_space<vmem>>, vector<2x8xf32>
    %c2_376 = arith.constant 2 : index
    %c0_377 = arith.constant 0 : index
    %278 = vector.load %arg21[%c2_376, %c0_377] : memref<8x8xf32, #tpu.memory_space<vmem>>, vector<2x8xf32>
    tpu.vector_store %arg21[%c2_376, %c0_377], %277 {strides = array<i32>} : memref<8x8xf32, #tpu.memory_space<vmem>>, vector<2x8xf32>,
    %c0_378 = arith.constant 0 : index
    %c8_379 = arith.constant 8 : index
    %279 = vector.load %arg19[%c0_378, %c8_379] : memref<8x32xf32, #tpu.memory_space<vmem>>, vector<2x8xf32>
    %c2_380 = arith.constant 2 : index
    %c0_381 = arith.constant 0 : index
    %280 = vector.load %arg22[%c2_380, %c0_381] : memref<8x8xf32, #tpu.memory_space<vmem>>, vector<2x8xf32>
    tpu.vector_store %arg22[%c2_380, %c0_381], %279 {strides = array<i32>} : memref<8x8xf32, #tpu.memory_space<vmem>>, vector<2x8xf32>,
    %c0_382 = arith.constant 0 : index
    %c8_383 = arith.constant 8 : index
    %281 = vector.load %arg20[%c0_382, %c8_383] : memref<8x32xf32, #tpu.memory_space<vmem>>, vector<2x8xf32>
    %c2_384 = arith.constant 2 : index
    %c0_385 = arith.constant 0 : index
    %282 = vector.load %arg23[%c2_384, %c0_385] : memref<8x8xf32, #tpu.memory_space<vmem>>, vector<2x8xf32>
    tpu.vector_store %arg23[%c2_384, %c0_385], %281 {strides = array<i32>} : memref<8x8xf32, #tpu.memory_space<vmem>>, vector<2x8xf32>,
    %c0_386 = arith.constant 0 : index
    %c16_387 = arith.constant 16 : index
    %283 = vector.load %arg18[%c0_386, %c16_387] : memref<8x32xf32, #tpu.memory_space<vmem>>, vector<2x8xf32>
    %c4_388 = arith.constant 4 : index
    %c0_389 = arith.constant 0 : index
    %284 = vector.load %arg21[%c4_388, %c0_389] : memref<8x8xf32, #tpu.memory_space<vmem>>, vector<2x8xf32>
    tpu.vector_store %arg21[%c4_388, %c0_389], %283 {strides = array<i32>} : memref<8x8xf32, #tpu.memory_space<vmem>>, vector<2x8xf32>,
    %c0_390 = arith.constant 0 : index
    %c16_391 = arith.constant 16 : index
    %285 = vector.load %arg19[%c0_390, %c16_391] : memref<8x32xf32, #tpu.memory_space<vmem>>, vector<2x8xf32>
    %c4_392 = arith.constant 4 : index
    %c0_393 = arith.constant 0 : index
    %286 = vector.load %arg22[%c4_392, %c0_393] : memref<8x8xf32, #tpu.memory_space<vmem>>, vector<2x8xf32>
    tpu.vector_store %arg22[%c4_392, %c0_393], %285 {strides = array<i32>} : memref<8x8xf32, #tpu.memory_space<vmem>>, vector<2x8xf32>,
    %c0_394 = arith.constant 0 : index
    %c16_395 = arith.constant 16 : index
    %287 = vector.load %arg20[%c0_394, %c16_395] : memref<8x32xf32, #tpu.memory_space<vmem>>, vector<2x8xf32>
    %c4_396 = arith.constant 4 : index
    %c0_397 = arith.constant 0 : index
    %288 = vector.load %arg23[%c4_396, %c0_397] : memref<8x8xf32, #tpu.memory_space<vmem>>, vector<2x8xf32>
    tpu.vector_store %arg23[%c4_396, %c0_397], %287 {strides = array<i32>} : memref<8x8xf32, #tpu.memory_space<vmem>>, vector<2x8xf32>,
    %c0_398 = arith.constant 0 : index
    %c24_399 = arith.constant 24 : index
    %289 = vector.load %arg18[%c0_398, %c24_399] : memref<8x32xf32, #tpu.memory_space<vmem>>, vector<2x8xf32>
    %c6_400 = arith.constant 6 : index
    %c0_401 = arith.constant 0 : index
    %290 = vector.load %arg21[%c6_400, %c0_401] : memref<8x8xf32, #tpu.memory_space<vmem>>, vector<2x8xf32>
    tpu.vector_store %arg21[%c6_400, %c0_401], %289 {strides = array<i32>} : memref<8x8xf32, #tpu.memory_space<vmem>>, vector<2x8xf32>,
    %c0_402 = arith.constant 0 : index
    %c24_403 = arith.constant 24 : index
    %291 = vector.load %arg19[%c0_402, %c24_403] : memref<8x32xf32, #tpu.memory_space<vmem>>, vector<2x8xf32>
    %c6_404 = arith.constant 6 : index
    %c0_405 = arith.constant 0 : index
    %292 = vector.load %arg22[%c6_404, %c0_405] : memref<8x8xf32, #tpu.memory_space<vmem>>, vector<2x8xf32>
    tpu.vector_store %arg22[%c6_404, %c0_405], %291 {strides = array<i32>} : memref<8x8xf32, #tpu.memory_space<vmem>>, vector<2x8xf32>,
    %c0_406 = arith.constant 0 : index
    %c24_407 = arith.constant 24 : index
    %293 = vector.load %arg20[%c0_406, %c24_407] : memref<8x32xf32, #tpu.memory_space<vmem>>, vector<2x8xf32>
    %c6_408 = arith.constant 6 : index
    %c0_409 = arith.constant 0 : index
    %294 = vector.load %arg23[%c6_408, %c0_409] : memref<8x8xf32, #tpu.memory_space<vmem>>, vector<2x8xf32>
    tpu.vector_store %arg23[%c6_408, %c0_409], %293 {strides = array<i32>} : memref<8x8xf32, #tpu.memory_space<vmem>>, vector<2x8xf32>,
    %c0_410 = arith.constant 0 : index
    %c0_411 = arith.constant 0 : index
    %295 = vector.load %arg21[%c0_410, %c0_411] : memref<8x8xf32, #tpu.memory_space<vmem>>, vector<8x8xf32>
    %c0_412 = arith.constant 0 : index
    %c0_413 = arith.constant 0 : index
    %296 = vector.load %arg22[%c0_412, %c0_413] : memref<8x8xf32, #tpu.memory_space<vmem>>, vector<8x8xf32>
    %c0_414 = arith.constant 0 : index
    %c0_415 = arith.constant 0 : index
    %297 = vector.load %arg23[%c0_414, %c0_415] : memref<8x8xf32, #tpu.memory_space<vmem>>, vector<8x8xf32>
    %cst_416 = arith.constant dense<0.000000e+00> : vector<8x8xf32>
    %298 = tpu.matmul %295, %296, %cst_416 {dimension_numbers = #tpu.dot_dimension_numbers<[1], [1], [0], [0], [0, 0, 1, 0], [], []>} : vector<8x8xf32>, vector<8x8xf32>, vector<8x8xf32> -> vector<8x8xf32>
    %299 = math.sqrt %298 : vector<8x8xf32>
    %cst_417 = arith.constant -1.000000e+09 : f32
    %300 = vector.broadcast %cst_417 : f32 to vector<1x8xf32>
    %301 = arith.mulf %7, %300 : vector<1x8xf32>
    %302 = vector.broadcast %301 : vector<1x8xf32> to vector<8x8xf32>
    %303 = arith.addf %299, %302 : vector<8x8xf32>
    %cst_418 = arith.constant dense<0xFF800000> : vector<8xf32>
    %304 = vector.multi_reduction <maximumf>, %303, %cst_418 [1] : vector<8x8xf32> to vector<8xf32>
    %305 = vector.shape_cast %304 : vector<8xf32> to vector<8x1xf32>
    %306 = vector.broadcast %305 : vector<8x1xf32> to vector<8x8xf32>
    %307 = arith.subf %303, %306 : vector<8x8xf32>
    %308 = math.exp %307 : vector<8x8xf32>
    %cst_419 = arith.constant dense<0.000000e+00> : vector<8xf32>
    %309 = vector.multi_reduction <add>, %308, %cst_419 [1] : vector<8x8xf32> to vector<8xf32>
    %310 = vector.shape_cast %309 : vector<8xf32> to vector<8x1xf32>
    %311 = tpu.reciprocal %310 : vector<8x1xf32> -> vector<8x1xf32>
    %312 = vector.broadcast %311 : vector<8x1xf32> to vector<8x8xf32>
    %313 = arith.mulf %308, %312 : vector<8x8xf32>
    %c0_420 = arith.constant 0 : index
    %c0_421 = arith.constant 0 : index
    %c0_422 = arith.constant 0 : index
    %314 = vector.load %arg17[%c0_420, %c0_421, %c0_422] : memref<1x8x32xf32, #tpu.memory_space<vmem>>, vector<1x8x8xf32>
    %315 = vector.shape_cast %314 : vector<1x8x8xf32> to vector<8x8xf32>
    %316 = vector.shape_cast %313 : vector<8x8xf32> to vector<1x8x8xf32>
    tpu.vector_store %arg17[%c0_420, %c0_421, %c0_422], %316 {strides = array<i32>} : memref<1x8x32xf32, #tpu.memory_space<vmem>>, vector<1x8x8xf32>,
    %cst_423 = arith.constant dense<0.000000e+00> : vector<8x8xf32>
    %317 = tpu.matmul %313, %297, %cst_423 {dimension_numbers = #tpu.dot_dimension_numbers<[1], [0], [0], [1], [0, 0, 1, 1], [], []>} : vector<8x8xf32>, vector<8x8xf32>, vector<8x8xf32> -> vector<8x8xf32>
    %c0_424 = arith.constant 0 : index
    %c0_425 = arith.constant 0 : index
    %318 = vector.load %arg24[%c0_424, %c0_425] : memref<8x8xf32, #tpu.memory_space<vmem>>, vector<8x8xf32>
    tpu.vector_store %arg24[%c0_424, %c0_425], %317 {strides = array<i32>} : memref<8x8xf32, #tpu.memory_space<vmem>>, vector<8x8xf32>,
    %c0_426 = arith.constant 0 : index
    %c0_427 = arith.constant 0 : index
    %319 = vector.load %arg24[%c0_426, %c0_427] : memref<8x8xf32, #tpu.memory_space<vmem>>, vector<2x8xf32>
    %c0_428 = arith.constant 0 : index
    %c0_429 = arith.constant 0 : index
    %320 = vector.load %arg25[%c0_428, %c0_429] : memref<8x32xf32, #tpu.memory_space<vmem>>, vector<2x8xf32>
    tpu.vector_store %arg25[%c0_428, %c0_429], %319 {strides = array<i32>} : memref<8x32xf32, #tpu.memory_space<vmem>>, vector<2x8xf32>,
    %c2_430 = arith.constant 2 : index
    %c0_431 = arith.constant 0 : index
    %321 = vector.load %arg24[%c2_430, %c0_431] : memref<8x8xf32, #tpu.memory_space<vmem>>, vector<2x8xf32>
    %c0_432 = arith.constant 0 : index
    %c8_433 = arith.constant 8 : index
    %322 = vector.load %arg25[%c0_432, %c8_433] : memref<8x32xf32, #tpu.memory_space<vmem>>, vector<2x8xf32>
    tpu.vector_store %arg25[%c0_432, %c8_433], %321 {strides = array<i32>} : memref<8x32xf32, #tpu.memory_space<vmem>>, vector<2x8xf32>,
    %c4_434 = arith.constant 4 : index
    %c0_435 = arith.constant 0 : index
    %323 = vector.load %arg24[%c4_434, %c0_435] : memref<8x8xf32, #tpu.memory_space<vmem>>, vector<2x8xf32>
    %c0_436 = arith.constant 0 : index
    %c16_437 = arith.constant 16 : index
    %324 = vector.load %arg25[%c0_436, %c16_437] : memref<8x32xf32, #tpu.memory_space<vmem>>, vector<2x8xf32>
    tpu.vector_store %arg25[%c0_436, %c16_437], %323 {strides = array<i32>} : memref<8x32xf32, #tpu.memory_space<vmem>>, vector<2x8xf32>,
    %c6_438 = arith.constant 6 : index
    %c0_439 = arith.constant 0 : index
    %325 = vector.load %arg24[%c6_438, %c0_439] : memref<8x8xf32, #tpu.memory_space<vmem>>, vector<2x8xf32>
    %c0_440 = arith.constant 0 : index
    %c24_441 = arith.constant 24 : index
    %326 = vector.load %arg25[%c0_440, %c24_441] : memref<8x32xf32, #tpu.memory_space<vmem>>, vector<2x8xf32>
    tpu.vector_store %arg25[%c0_440, %c24_441], %325 {strides = array<i32>} : memref<8x32xf32, #tpu.memory_space<vmem>>, vector<2x8xf32>,
    %c2_442 = arith.constant 2 : index
    %c0_443 = arith.constant 0 : index
    %327 = vector.load %arg18[%c2_442, %c0_443] : memref<8x32xf32, #tpu.memory_space<vmem>>, vector<2x8xf32>
    %c0_444 = arith.constant 0 : index
    %c0_445 = arith.constant 0 : index
    %328 = vector.load %arg21[%c0_444, %c0_445] : memref<8x8xf32, #tpu.memory_space<vmem>>, vector<2x8xf32>
    tpu.vector_store %arg21[%c0_444, %c0_445], %327 {strides = array<i32>} : memref<8x8xf32, #tpu.memory_space<vmem>>, vector<2x8xf32>,
    %c2_446 = arith.constant 2 : index
    %c0_447 = arith.constant 0 : index
    %329 = vector.load %arg19[%c2_446, %c0_447] : memref<8x32xf32, #tpu.memory_space<vmem>>, vector<2x8xf32>
    %c0_448 = arith.constant 0 : index
    %c0_449 = arith.constant 0 : index
    %330 = vector.load %arg22[%c0_448, %c0_449] : memref<8x8xf32, #tpu.memory_space<vmem>>, vector<2x8xf32>
    tpu.vector_store %arg22[%c0_448, %c0_449], %329 {strides = array<i32>} : memref<8x8xf32, #tpu.memory_space<vmem>>, vector<2x8xf32>,
    %c2_450 = arith.constant 2 : index
    %c0_451 = arith.constant 0 : index
    %331 = vector.load %arg20[%c2_450, %c0_451] : memref<8x32xf32, #tpu.memory_space<vmem>>, vector<2x8xf32>
    %c0_452 = arith.constant 0 : index
    %c0_453 = arith.constant 0 : index
    %332 = vector.load %arg23[%c0_452, %c0_453] : memref<8x8xf32, #tpu.memory_space<vmem>>, vector<2x8xf32>
    tpu.vector_store %arg23[%c0_452, %c0_453], %331 {strides = array<i32>} : memref<8x8xf32, #tpu.memory_space<vmem>>, vector<2x8xf32>,
    %c2_454 = arith.constant 2 : index
    %c8_455 = arith.constant 8 : index
    %333 = vector.load %arg18[%c2_454, %c8_455] : memref<8x32xf32, #tpu.memory_space<vmem>>, vector<2x8xf32>
    %c2_456 = arith.constant 2 : index
    %c0_457 = arith.constant 0 : index
    %334 = vector.load %arg21[%c2_456, %c0_457] : memref<8x8xf32, #tpu.memory_space<vmem>>, vector<2x8xf32>
    tpu.vector_store %arg21[%c2_456, %c0_457], %333 {strides = array<i32>} : memref<8x8xf32, #tpu.memory_space<vmem>>, vector<2x8xf32>,
    %c2_458 = arith.constant 2 : index
    %c8_459 = arith.constant 8 : index
    %335 = vector.load %arg19[%c2_458, %c8_459] : memref<8x32xf32, #tpu.memory_space<vmem>>, vector<2x8xf32>
    %c2_460 = arith.constant 2 : index
    %c0_461 = arith.constant 0 : index
    %336 = vector.load %arg22[%c2_460, %c0_461] : memref<8x8xf32, #tpu.memory_space<vmem>>, vector<2x8xf32>
    tpu.vector_store %arg22[%c2_460, %c0_461], %335 {strides = array<i32>} : memref<8x8xf32, #tpu.memory_space<vmem>>, vector<2x8xf32>,
    %c2_462 = arith.constant 2 : index
    %c8_463 = arith.constant 8 : index
    %337 = vector.load %arg20[%c2_462, %c8_463] : memref<8x32xf32, #tpu.memory_space<vmem>>, vector<2x8xf32>
    %c2_464 = arith.constant 2 : index
    %c0_465 = arith.constant 0 : index
    %338 = vector.load %arg23[%c2_464, %c0_465] : memref<8x8xf32, #tpu.memory_space<vmem>>, vector<2x8xf32>
    tpu.vector_store %arg23[%c2_464, %c0_465], %337 {strides = array<i32>} : memref<8x8xf32, #tpu.memory_space<vmem>>, vector<2x8xf32>,
    %c2_466 = arith.constant 2 : index
    %c16_467 = arith.constant 16 : index
    %339 = vector.load %arg18[%c2_466, %c16_467] : memref<8x32xf32, #tpu.memory_space<vmem>>, vector<2x8xf32>
    %c4_468 = arith.constant 4 : index
    %c0_469 = arith.constant 0 : index
    %340 = vector.load %arg21[%c4_468, %c0_469] : memref<8x8xf32, #tpu.memory_space<vmem>>, vector<2x8xf32>
    tpu.vector_store %arg21[%c4_468, %c0_469], %339 {strides = array<i32>} : memref<8x8xf32, #tpu.memory_space<vmem>>, vector<2x8xf32>,
    %c2_470 = arith.constant 2 : index
    %c16_471 = arith.constant 16 : index
    %341 = vector.load %arg19[%c2_470, %c16_471] : memref<8x32xf32, #tpu.memory_space<vmem>>, vector<2x8xf32>
    %c4_472 = arith.constant 4 : index
    %c0_473 = arith.constant 0 : index
    %342 = vector.load %arg22[%c4_472, %c0_473] : memref<8x8xf32, #tpu.memory_space<vmem>>, vector<2x8xf32>
    tpu.vector_store %arg22[%c4_472, %c0_473], %341 {strides = array<i32>} : memref<8x8xf32, #tpu.memory_space<vmem>>, vector<2x8xf32>,
    %c2_474 = arith.constant 2 : index
    %c16_475 = arith.constant 16 : index
    %343 = vector.load %arg20[%c2_474, %c16_475] : memref<8x32xf32, #tpu.memory_space<vmem>>, vector<2x8xf32>
    %c4_476 = arith.constant 4 : index
    %c0_477 = arith.constant 0 : index
    %344 = vector.load %arg23[%c4_476, %c0_477] : memref<8x8xf32, #tpu.memory_space<vmem>>, vector<2x8xf32>
    tpu.vector_store %arg23[%c4_476, %c0_477], %343 {strides = array<i32>} : memref<8x8xf32, #tpu.memory_space<vmem>>, vector<2x8xf32>,
    %c2_478 = arith.constant 2 : index
    %c24_479 = arith.constant 24 : index
    %345 = vector.load %arg18[%c2_478, %c24_479] : memref<8x32xf32, #tpu.memory_space<vmem>>, vector<2x8xf32>
    %c6_480 = arith.constant 6 : index
    %c0_481 = arith.constant 0 : index
    %346 = vector.load %arg21[%c6_480, %c0_481] : memref<8x8xf32, #tpu.memory_space<vmem>>, vector<2x8xf32>
    tpu.vector_store %arg21[%c6_480, %c0_481], %345 {strides = array<i32>} : memref<8x8xf32, #tpu.memory_space<vmem>>, vector<2x8xf32>,
    %c2_482 = arith.constant 2 : index
    %c24_483 = arith.constant 24 : index
    %347 = vector.load %arg19[%c2_482, %c24_483] : memref<8x32xf32, #tpu.memory_space<vmem>>, vector<2x8xf32>
    %c6_484 = arith.constant 6 : index
    %c0_485 = arith.constant 0 : index
    %348 = vector.load %arg22[%c6_484, %c0_485] : memref<8x8xf32, #tpu.memory_space<vmem>>, vector<2x8xf32>
    tpu.vector_store %arg22[%c6_484, %c0_485], %347 {strides = array<i32>} : memref<8x8xf32, #tpu.memory_space<vmem>>, vector<2x8xf32>,
    %c2_486 = arith.constant 2 : index
    %c24_487 = arith.constant 24 : index
    %349 = vector.load %arg20[%c2_486, %c24_487] : memref<8x32xf32, #tpu.memory_space<vmem>>, vector<2x8xf32>
    %c6_488 = arith.constant 6 : index
    %c0_489 = arith.constant 0 : index
    %350 = vector.load %arg23[%c6_488, %c0_489] : memref<8x8xf32, #tpu.memory_space<vmem>>, vector<2x8xf32>
    tpu.vector_store %arg23[%c6_488, %c0_489], %349 {strides = array<i32>} : memref<8x8xf32, #tpu.memory_space<vmem>>, vector<2x8xf32>,
    %c0_490 = arith.constant 0 : index
    %c0_491 = arith.constant 0 : index
    %351 = vector.load %arg21[%c0_490, %c0_491] : memref<8x8xf32, #tpu.memory_space<vmem>>, vector<8x8xf32>
    %c0_492 = arith.constant 0 : index
    %c0_493 = arith.constant 0 : index
    %352 = vector.load %arg22[%c0_492, %c0_493] : memref<8x8xf32, #tpu.memory_space<vmem>>, vector<8x8xf32>
    %c0_494 = arith.constant 0 : index
    %c0_495 = arith.constant 0 : index
    %353 = vector.load %arg23[%c0_494, %c0_495] : memref<8x8xf32, #tpu.memory_space<vmem>>, vector<8x8xf32>
    %cst_496 = arith.constant dense<0.000000e+00> : vector<8x8xf32>
    %354 = tpu.matmul %351, %352, %cst_496 {dimension_numbers = #tpu.dot_dimension_numbers<[1], [1], [0], [0], [0, 0, 1, 0], [], []>} : vector<8x8xf32>, vector<8x8xf32>, vector<8x8xf32> -> vector<8x8xf32>
    %355 = math.sqrt %354 : vector<8x8xf32>
    %cst_497 = arith.constant -1.000000e+09 : f32
    %356 = vector.broadcast %cst_497 : f32 to vector<1x8xf32>
    %357 = arith.mulf %7, %356 : vector<1x8xf32>
    %358 = vector.broadcast %357 : vector<1x8xf32> to vector<8x8xf32>
    %359 = arith.addf %355, %358 : vector<8x8xf32>
    %cst_498 = arith.constant dense<0xFF800000> : vector<8xf32>
    %360 = vector.multi_reduction <maximumf>, %359, %cst_498 [1] : vector<8x8xf32> to vector<8xf32>
    %361 = vector.shape_cast %360 : vector<8xf32> to vector<8x1xf32>
    %362 = vector.broadcast %361 : vector<8x1xf32> to vector<8x8xf32>
    %363 = arith.subf %359, %362 : vector<8x8xf32>
    %364 = math.exp %363 : vector<8x8xf32>
    %cst_499 = arith.constant dense<0.000000e+00> : vector<8xf32>
    %365 = vector.multi_reduction <add>, %364, %cst_499 [1] : vector<8x8xf32> to vector<8xf32>
    %366 = vector.shape_cast %365 : vector<8xf32> to vector<8x1xf32>
    %367 = tpu.reciprocal %366 : vector<8x1xf32> -> vector<8x1xf32>
    %368 = vector.broadcast %367 : vector<8x1xf32> to vector<8x8xf32>
    %369 = arith.mulf %364, %368 : vector<8x8xf32>
    %c0_500 = arith.constant 0 : index
    %c0_501 = arith.constant 0 : index
    %c8_502 = arith.constant 8 : index
    %370 = vector.load %arg17[%c0_500, %c0_501, %c8_502] : memref<1x8x32xf32, #tpu.memory_space<vmem>>, vector<1x8x8xf32>
    %371 = vector.shape_cast %370 : vector<1x8x8xf32> to vector<8x8xf32>
    %372 = vector.shape_cast %369 : vector<8x8xf32> to vector<1x8x8xf32>
    tpu.vector_store %arg17[%c0_500, %c0_501, %c8_502], %372 {strides = array<i32>} : memref<1x8x32xf32, #tpu.memory_space<vmem>>, vector<1x8x8xf32>,
    %cst_503 = arith.constant dense<0.000000e+00> : vector<8x8xf32>
    %373 = tpu.matmul %369, %353, %cst_503 {dimension_numbers = #tpu.dot_dimension_numbers<[1], [0], [0], [1], [0, 0, 1, 1], [], []>} : vector<8x8xf32>, vector<8x8xf32>, vector<8x8xf32> -> vector<8x8xf32>
    %c0_504 = arith.constant 0 : index
    %c0_505 = arith.constant 0 : index
    %374 = vector.load %arg24[%c0_504, %c0_505] : memref<8x8xf32, #tpu.memory_space<vmem>>, vector<8x8xf32>
    tpu.vector_store %arg24[%c0_504, %c0_505], %373 {strides = array<i32>} : memref<8x8xf32, #tpu.memory_space<vmem>>, vector<8x8xf32>,
    %c0_506 = arith.constant 0 : index
    %c0_507 = arith.constant 0 : index
    %375 = vector.load %arg24[%c0_506, %c0_507] : memref<8x8xf32, #tpu.memory_space<vmem>>, vector<2x8xf32>
    %c2_508 = arith.constant 2 : index
    %c0_509 = arith.constant 0 : index
    %376 = vector.load %arg25[%c2_508, %c0_509] : memref<8x32xf32, #tpu.memory_space<vmem>>, vector<2x8xf32>
    tpu.vector_store %arg25[%c2_508, %c0_509], %375 {strides = array<i32>} : memref<8x32xf32, #tpu.memory_space<vmem>>, vector<2x8xf32>,
    %c2_510 = arith.constant 2 : index
    %c0_511 = arith.constant 0 : index
    %377 = vector.load %arg24[%c2_510, %c0_511] : memref<8x8xf32, #tpu.memory_space<vmem>>, vector<2x8xf32>
    %c2_512 = arith.constant 2 : index
    %c8_513 = arith.constant 8 : index
    %378 = vector.load %arg25[%c2_512, %c8_513] : memref<8x32xf32, #tpu.memory_space<vmem>>, vector<2x8xf32>
    tpu.vector_store %arg25[%c2_512, %c8_513], %377 {strides = array<i32>} : memref<8x32xf32, #tpu.memory_space<vmem>>, vector<2x8xf32>,
    %c4_514 = arith.constant 4 : index
    %c0_515 = arith.constant 0 : index
    %379 = vector.load %arg24[%c4_514, %c0_515] : memref<8x8xf32, #tpu.memory_space<vmem>>, vector<2x8xf32>
    %c2_516 = arith.constant 2 : index
    %c16_517 = arith.constant 16 : index
    %380 = vector.load %arg25[%c2_516, %c16_517] : memref<8x32xf32, #tpu.memory_space<vmem>>, vector<2x8xf32>
    tpu.vector_store %arg25[%c2_516, %c16_517], %379 {strides = array<i32>} : memref<8x32xf32, #tpu.memory_space<vmem>>, vector<2x8xf32>,
    %c6_518 = arith.constant 6 : index
    %c0_519 = arith.constant 0 : index
    %381 = vector.load %arg24[%c6_518, %c0_519] : memref<8x8xf32, #tpu.memory_space<vmem>>, vector<2x8xf32>
    %c2_520 = arith.constant 2 : index
    %c24_521 = arith.constant 24 : index
    %382 = vector.load %arg25[%c2_520, %c24_521] : memref<8x32xf32, #tpu.memory_space<vmem>>, vector<2x8xf32>
    tpu.vector_store %arg25[%c2_520, %c24_521], %381 {strides = array<i32>} : memref<8x32xf32, #tpu.memory_space<vmem>>, vector<2x8xf32>,
    %c4_522 = arith.constant 4 : index
    %c0_523 = arith.constant 0 : index
    %383 = vector.load %arg18[%c4_522, %c0_523] : memref<8x32xf32, #tpu.memory_space<vmem>>, vector<2x8xf32>
    %c0_524 = arith.constant 0 : index
    %c0_525 = arith.constant 0 : index
    %384 = vector.load %arg21[%c0_524, %c0_525] : memref<8x8xf32, #tpu.memory_space<vmem>>, vector<2x8xf32>
    tpu.vector_store %arg21[%c0_524, %c0_525], %383 {strides = array<i32>} : memref<8x8xf32, #tpu.memory_space<vmem>>, vector<2x8xf32>,
    %c4_526 = arith.constant 4 : index
    %c0_527 = arith.constant 0 : index
    %385 = vector.load %arg19[%c4_526, %c0_527] : memref<8x32xf32, #tpu.memory_space<vmem>>, vector<2x8xf32>
    %c0_528 = arith.constant 0 : index
    %c0_529 = arith.constant 0 : index
    %386 = vector.load %arg22[%c0_528, %c0_529] : memref<8x8xf32, #tpu.memory_space<vmem>>, vector<2x8xf32>
    tpu.vector_store %arg22[%c0_528, %c0_529], %385 {strides = array<i32>} : memref<8x8xf32, #tpu.memory_space<vmem>>, vector<2x8xf32>,
    %c4_530 = arith.constant 4 : index
    %c0_531 = arith.constant 0 : index
    %387 = vector.load %arg20[%c4_530, %c0_531] : memref<8x32xf32, #tpu.memory_space<vmem>>, vector<2x8xf32>
    %c0_532 = arith.constant 0 : index
    %c0_533 = arith.constant 0 : index
    %388 = vector.load %arg23[%c0_532, %c0_533] : memref<8x8xf32, #tpu.memory_space<vmem>>, vector<2x8xf32>
    tpu.vector_store %arg23[%c0_532, %c0_533], %387 {strides = array<i32>} : memref<8x8xf32, #tpu.memory_space<vmem>>, vector<2x8xf32>,
    %c4_534 = arith.constant 4 : index
    %c8_535 = arith.constant 8 : index
    %389 = vector.load %arg18[%c4_534, %c8_535] : memref<8x32xf32, #tpu.memory_space<vmem>>, vector<2x8xf32>
    %c2_536 = arith.constant 2 : index
    %c0_537 = arith.constant 0 : index
    %390 = vector.load %arg21[%c2_536, %c0_537] : memref<8x8xf32, #tpu.memory_space<vmem>>, vector<2x8xf32>
    tpu.vector_store %arg21[%c2_536, %c0_537], %389 {strides = array<i32>} : memref<8x8xf32, #tpu.memory_space<vmem>>, vector<2x8xf32>,
    %c4_538 = arith.constant 4 : index
    %c8_539 = arith.constant 8 : index
    %391 = vector.load %arg19[%c4_538, %c8_539] : memref<8x32xf32, #tpu.memory_space<vmem>>, vector<2x8xf32>
    %c2_540 = arith.constant 2 : index
    %c0_541 = arith.constant 0 : index
    %392 = vector.load %arg22[%c2_540, %c0_541] : memref<8x8xf32, #tpu.memory_space<vmem>>, vector<2x8xf32>
    tpu.vector_store %arg22[%c2_540, %c0_541], %391 {strides = array<i32>} : memref<8x8xf32, #tpu.memory_space<vmem>>, vector<2x8xf32>,
    %c4_542 = arith.constant 4 : index
    %c8_543 = arith.constant 8 : index
    %393 = vector.load %arg20[%c4_542, %c8_543] : memref<8x32xf32, #tpu.memory_space<vmem>>, vector<2x8xf32>
    %c2_544 = arith.constant 2 : index
    %c0_545 = arith.constant 0 : index
    %394 = vector.load %arg23[%c2_544, %c0_545] : memref<8x8xf32, #tpu.memory_space<vmem>>, vector<2x8xf32>
    tpu.vector_store %arg23[%c2_544, %c0_545], %393 {strides = array<i32>} : memref<8x8xf32, #tpu.memory_space<vmem>>, vector<2x8xf32>,
    %c4_546 = arith.constant 4 : index
    %c16_547 = arith.constant 16 : index
    %395 = vector.load %arg18[%c4_546, %c16_547] : memref<8x32xf32, #tpu.memory_space<vmem>>, vector<2x8xf32>
    %c4_548 = arith.constant 4 : index
    %c0_549 = arith.constant 0 : index
    %396 = vector.load %arg21[%c4_548, %c0_549] : memref<8x8xf32, #tpu.memory_space<vmem>>, vector<2x8xf32>
    tpu.vector_store %arg21[%c4_548, %c0_549], %395 {strides = array<i32>} : memref<8x8xf32, #tpu.memory_space<vmem>>, vector<2x8xf32>,
    %c4_550 = arith.constant 4 : index
    %c16_551 = arith.constant 16 : index
    %397 = vector.load %arg19[%c4_550, %c16_551] : memref<8x32xf32, #tpu.memory_space<vmem>>, vector<2x8xf32>
    %c4_552 = arith.constant 4 : index
    %c0_553 = arith.constant 0 : index
    %398 = vector.load %arg22[%c4_552, %c0_553] : memref<8x8xf32, #tpu.memory_space<vmem>>, vector<2x8xf32>
    tpu.vector_store %arg22[%c4_552, %c0_553], %397 {strides = array<i32>} : memref<8x8xf32, #tpu.memory_space<vmem>>, vector<2x8xf32>,
    %c4_554 = arith.constant 4 : index
    %c16_555 = arith.constant 16 : index
    %399 = vector.load %arg20[%c4_554, %c16_555] : memref<8x32xf32, #tpu.memory_space<vmem>>, vector<2x8xf32>
    %c4_556 = arith.constant 4 : index
    %c0_557 = arith.constant 0 : index
    %400 = vector.load %arg23[%c4_556, %c0_557] : memref<8x8xf32, #tpu.memory_space<vmem>>, vector<2x8xf32>
    tpu.vector_store %arg23[%c4_556, %c0_557], %399 {strides = array<i32>} : memref<8x8xf32, #tpu.memory_space<vmem>>, vector<2x8xf32>,
    %c4_558 = arith.constant 4 : index
    %c24_559 = arith.constant 24 : index
    %401 = vector.load %arg18[%c4_558, %c24_559] : memref<8x32xf32, #tpu.memory_space<vmem>>, vector<2x8xf32>
    %c6_560 = arith.constant 6 : index
    %c0_561 = arith.constant 0 : index
    %402 = vector.load %arg21[%c6_560, %c0_561] : memref<8x8xf32, #tpu.memory_space<vmem>>, vector<2x8xf32>
    tpu.vector_store %arg21[%c6_560, %c0_561], %401 {strides = array<i32>} : memref<8x8xf32, #tpu.memory_space<vmem>>, vector<2x8xf32>,
    %c4_562 = arith.constant 4 : index
    %c24_563 = arith.constant 24 : index
    %403 = vector.load %arg19[%c4_562, %c24_563] : memref<8x32xf32, #tpu.memory_space<vmem>>, vector<2x8xf32>
    %c6_564 = arith.constant 6 : index
    %c0_565 = arith.constant 0 : index
    %404 = vector.load %arg22[%c6_564, %c0_565] : memref<8x8xf32, #tpu.memory_space<vmem>>, vector<2x8xf32>
    tpu.vector_store %arg22[%c6_564, %c0_565], %403 {strides = array<i32>} : memref<8x8xf32, #tpu.memory_space<vmem>>, vector<2x8xf32>,
    %c4_566 = arith.constant 4 : index
    %c24_567 = arith.constant 24 : index
    %405 = vector.load %arg20[%c4_566, %c24_567] : memref<8x32xf32, #tpu.memory_space<vmem>>, vector<2x8xf32>
    %c6_568 = arith.constant 6 : index
    %c0_569 = arith.constant 0 : index
    %406 = vector.load %arg23[%c6_568, %c0_569] : memref<8x8xf32, #tpu.memory_space<vmem>>, vector<2x8xf32>
    tpu.vector_store %arg23[%c6_568, %c0_569], %405 {strides = array<i32>} : memref<8x8xf32, #tpu.memory_space<vmem>>, vector<2x8xf32>,
    %c0_570 = arith.constant 0 : index
    %c0_571 = arith.constant 0 : index
    %407 = vector.load %arg21[%c0_570, %c0_571] : memref<8x8xf32, #tpu.memory_space<vmem>>, vector<8x8xf32>
    %c0_572 = arith.constant 0 : index
    %c0_573 = arith.constant 0 : index
    %408 = vector.load %arg22[%c0_572, %c0_573] : memref<8x8xf32, #tpu.memory_space<vmem>>, vector<8x8xf32>
    %c0_574 = arith.constant 0 : index
    %c0_575 = arith.constant 0 : index
    %409 = vector.load %arg23[%c0_574, %c0_575] : memref<8x8xf32, #tpu.memory_space<vmem>>, vector<8x8xf32>
    %cst_576 = arith.constant dense<0.000000e+00> : vector<8x8xf32>
    %410 = tpu.matmul %407, %408, %cst_576 {dimension_numbers = #tpu.dot_dimension_numbers<[1], [1], [0], [0], [0, 0, 1, 0], [], []>} : vector<8x8xf32>, vector<8x8xf32>, vector<8x8xf32> -> vector<8x8xf32>
    %411 = math.sqrt %410 : vector<8x8xf32>
    %cst_577 = arith.constant -1.000000e+09 : f32
    %412 = vector.broadcast %cst_577 : f32 to vector<1x8xf32>
    %413 = arith.mulf %7, %412 : vector<1x8xf32>
    %414 = vector.broadcast %413 : vector<1x8xf32> to vector<8x8xf32>
    %415 = arith.addf %411, %414 : vector<8x8xf32>
    %cst_578 = arith.constant dense<0xFF800000> : vector<8xf32>
    %416 = vector.multi_reduction <maximumf>, %415, %cst_578 [1] : vector<8x8xf32> to vector<8xf32>
    %417 = vector.shape_cast %416 : vector<8xf32> to vector<8x1xf32>
    %418 = vector.broadcast %417 : vector<8x1xf32> to vector<8x8xf32>
    %419 = arith.subf %415, %418 : vector<8x8xf32>
    %420 = math.exp %419 : vector<8x8xf32>
    %cst_579 = arith.constant dense<0.000000e+00> : vector<8xf32>
    %421 = vector.multi_reduction <add>, %420, %cst_579 [1] : vector<8x8xf32> to vector<8xf32>
    %422 = vector.shape_cast %421 : vector<8xf32> to vector<8x1xf32>
    %423 = tpu.reciprocal %422 : vector<8x1xf32> -> vector<8x1xf32>
    %424 = vector.broadcast %423 : vector<8x1xf32> to vector<8x8xf32>
    %425 = arith.mulf %420, %424 : vector<8x8xf32>
    %c0_580 = arith.constant 0 : index
    %c0_581 = arith.constant 0 : index
    %c16_582 = arith.constant 16 : index
    %426 = vector.load %arg17[%c0_580, %c0_581, %c16_582] : memref<1x8x32xf32, #tpu.memory_space<vmem>>, vector<1x8x8xf32>
    %427 = vector.shape_cast %426 : vector<1x8x8xf32> to vector<8x8xf32>
    %428 = vector.shape_cast %425 : vector<8x8xf32> to vector<1x8x8xf32>
    tpu.vector_store %arg17[%c0_580, %c0_581, %c16_582], %428 {strides = array<i32>} : memref<1x8x32xf32, #tpu.memory_space<vmem>>, vector<1x8x8xf32>,
    %cst_583 = arith.constant dense<0.000000e+00> : vector<8x8xf32>
    %429 = tpu.matmul %425, %409, %cst_583 {dimension_numbers = #tpu.dot_dimension_numbers<[1], [0], [0], [1], [0, 0, 1, 1], [], []>} : vector<8x8xf32>, vector<8x8xf32>, vector<8x8xf32> -> vector<8x8xf32>
    %c0_584 = arith.constant 0 : index
    %c0_585 = arith.constant 0 : index
    %430 = vector.load %arg24[%c0_584, %c0_585] : memref<8x8xf32, #tpu.memory_space<vmem>>, vector<8x8xf32>
    tpu.vector_store %arg24[%c0_584, %c0_585], %429 {strides = array<i32>} : memref<8x8xf32, #tpu.memory_space<vmem>>, vector<8x8xf32>,
    %c0_586 = arith.constant 0 : index
    %c0_587 = arith.constant 0 : index
    %431 = vector.load %arg24[%c0_586, %c0_587] : memref<8x8xf32, #tpu.memory_space<vmem>>, vector<2x8xf32>
    %c4_588 = arith.constant 4 : index
    %c0_589 = arith.constant 0 : index
    %432 = vector.load %arg25[%c4_588, %c0_589] : memref<8x32xf32, #tpu.memory_space<vmem>>, vector<2x8xf32>
    tpu.vector_store %arg25[%c4_588, %c0_589], %431 {strides = array<i32>} : memref<8x32xf32, #tpu.memory_space<vmem>>, vector<2x8xf32>,
    %c2_590 = arith.constant 2 : index
    %c0_591 = arith.constant 0 : index
    %433 = vector.load %arg24[%c2_590, %c0_591] : memref<8x8xf32, #tpu.memory_space<vmem>>, vector<2x8xf32>
    %c4_592 = arith.constant 4 : index
    %c8_593 = arith.constant 8 : index
    %434 = vector.load %arg25[%c4_592, %c8_593] : memref<8x32xf32, #tpu.memory_space<vmem>>, vector<2x8xf32>
    tpu.vector_store %arg25[%c4_592, %c8_593], %433 {strides = array<i32>} : memref<8x32xf32, #tpu.memory_space<vmem>>, vector<2x8xf32>,
    %c4_594 = arith.constant 4 : index
    %c0_595 = arith.constant 0 : index
    %435 = vector.load %arg24[%c4_594, %c0_595] : memref<8x8xf32, #tpu.memory_space<vmem>>, vector<2x8xf32>
    %c4_596 = arith.constant 4 : index
    %c16_597 = arith.constant 16 : index
    %436 = vector.load %arg25[%c4_596, %c16_597] : memref<8x32xf32, #tpu.memory_space<vmem>>, vector<2x8xf32>
    tpu.vector_store %arg25[%c4_596, %c16_597], %435 {strides = array<i32>} : memref<8x32xf32, #tpu.memory_space<vmem>>, vector<2x8xf32>,
    %c6_598 = arith.constant 6 : index
    %c0_599 = arith.constant 0 : index
    %437 = vector.load %arg24[%c6_598, %c0_599] : memref<8x8xf32, #tpu.memory_space<vmem>>, vector<2x8xf32>
    %c4_600 = arith.constant 4 : index
    %c24_601 = arith.constant 24 : index
    %438 = vector.load %arg25[%c4_600, %c24_601] : memref<8x32xf32, #tpu.memory_space<vmem>>, vector<2x8xf32>
    tpu.vector_store %arg25[%c4_600, %c24_601], %437 {strides = array<i32>} : memref<8x32xf32, #tpu.memory_space<vmem>>, vector<2x8xf32>,
    %c6_602 = arith.constant 6 : index
    %c0_603 = arith.constant 0 : index
    %439 = vector.load %arg18[%c6_602, %c0_603] : memref<8x32xf32, #tpu.memory_space<vmem>>, vector<2x8xf32>
    %c0_604 = arith.constant 0 : index
    %c0_605 = arith.constant 0 : index
    %440 = vector.load %arg21[%c0_604, %c0_605] : memref<8x8xf32, #tpu.memory_space<vmem>>, vector<2x8xf32>
    tpu.vector_store %arg21[%c0_604, %c0_605], %439 {strides = array<i32>} : memref<8x8xf32, #tpu.memory_space<vmem>>, vector<2x8xf32>,
    %c6_606 = arith.constant 6 : index
    %c0_607 = arith.constant 0 : index
    %441 = vector.load %arg19[%c6_606, %c0_607] : memref<8x32xf32, #tpu.memory_space<vmem>>, vector<2x8xf32>
    %c0_608 = arith.constant 0 : index
    %c0_609 = arith.constant 0 : index
    %442 = vector.load %arg22[%c0_608, %c0_609] : memref<8x8xf32, #tpu.memory_space<vmem>>, vector<2x8xf32>
    tpu.vector_store %arg22[%c0_608, %c0_609], %441 {strides = array<i32>} : memref<8x8xf32, #tpu.memory_space<vmem>>, vector<2x8xf32>,
    %c6_610 = arith.constant 6 : index
    %c0_611 = arith.constant 0 : index
    %443 = vector.load %arg20[%c6_610, %c0_611] : memref<8x32xf32, #tpu.memory_space<vmem>>, vector<2x8xf32>
    %c0_612 = arith.constant 0 : index
    %c0_613 = arith.constant 0 : index
    %444 = vector.load %arg23[%c0_612, %c0_613] : memref<8x8xf32, #tpu.memory_space<vmem>>, vector<2x8xf32>
    tpu.vector_store %arg23[%c0_612, %c0_613], %443 {strides = array<i32>} : memref<8x8xf32, #tpu.memory_space<vmem>>, vector<2x8xf32>,
    %c6_614 = arith.constant 6 : index
    %c8_615 = arith.constant 8 : index
    %445 = vector.load %arg18[%c6_614, %c8_615] : memref<8x32xf32, #tpu.memory_space<vmem>>, vector<2x8xf32>
    %c2_616 = arith.constant 2 : index
    %c0_617 = arith.constant 0 : index
    %446 = vector.load %arg21[%c2_616, %c0_617] : memref<8x8xf32, #tpu.memory_space<vmem>>, vector<2x8xf32>
    tpu.vector_store %arg21[%c2_616, %c0_617], %445 {strides = array<i32>} : memref<8x8xf32, #tpu.memory_space<vmem>>, vector<2x8xf32>,
    %c6_618 = arith.constant 6 : index
    %c8_619 = arith.constant 8 : index
    %447 = vector.load %arg19[%c6_618, %c8_619] : memref<8x32xf32, #tpu.memory_space<vmem>>, vector<2x8xf32>
    %c2_620 = arith.constant 2 : index
    %c0_621 = arith.constant 0 : index
    %448 = vector.load %arg22[%c2_620, %c0_621] : memref<8x8xf32, #tpu.memory_space<vmem>>, vector<2x8xf32>
    tpu.vector_store %arg22[%c2_620, %c0_621], %447 {strides = array<i32>} : memref<8x8xf32, #tpu.memory_space<vmem>>, vector<2x8xf32>,
    %c6_622 = arith.constant 6 : index
    %c8_623 = arith.constant 8 : index
    %449 = vector.load %arg20[%c6_622, %c8_623] : memref<8x32xf32, #tpu.memory_space<vmem>>, vector<2x8xf32>
    %c2_624 = arith.constant 2 : index
    %c0_625 = arith.constant 0 : index
    %450 = vector.load %arg23[%c2_624, %c0_625] : memref<8x8xf32, #tpu.memory_space<vmem>>, vector<2x8xf32>
    tpu.vector_store %arg23[%c2_624, %c0_625], %449 {strides = array<i32>} : memref<8x8xf32, #tpu.memory_space<vmem>>, vector<2x8xf32>,
    %c6_626 = arith.constant 6 : index
    %c16_627 = arith.constant 16 : index
    %451 = vector.load %arg18[%c6_626, %c16_627] : memref<8x32xf32, #tpu.memory_space<vmem>>, vector<2x8xf32>
    %c4_628 = arith.constant 4 : index
    %c0_629 = arith.constant 0 : index
    %452 = vector.load %arg21[%c4_628, %c0_629] : memref<8x8xf32, #tpu.memory_space<vmem>>, vector<2x8xf32>
    tpu.vector_store %arg21[%c4_628, %c0_629], %451 {strides = array<i32>} : memref<8x8xf32, #tpu.memory_space<vmem>>, vector<2x8xf32>,
    %c6_630 = arith.constant 6 : index
    %c16_631 = arith.constant 16 : index
    %453 = vector.load %arg19[%c6_630, %c16_631] : memref<8x32xf32, #tpu.memory_space<vmem>>, vector<2x8xf32>
    %c4_632 = arith.constant 4 : index
    %c0_633 = arith.constant 0 : index
    %454 = vector.load %arg22[%c4_632, %c0_633] : memref<8x8xf32, #tpu.memory_space<vmem>>, vector<2x8xf32>
    tpu.vector_store %arg22[%c4_632, %c0_633], %453 {strides = array<i32>} : memref<8x8xf32, #tpu.memory_space<vmem>>, vector<2x8xf32>,
    %c6_634 = arith.constant 6 : index
    %c16_635 = arith.constant 16 : index
    %455 = vector.load %arg20[%c6_634, %c16_635] : memref<8x32xf32, #tpu.memory_space<vmem>>, vector<2x8xf32>
    %c4_636 = arith.constant 4 : index
    %c0_637 = arith.constant 0 : index
    %456 = vector.load %arg23[%c4_636, %c0_637] : memref<8x8xf32, #tpu.memory_space<vmem>>, vector<2x8xf32>
    tpu.vector_store %arg23[%c4_636, %c0_637], %455 {strides = array<i32>} : memref<8x8xf32, #tpu.memory_space<vmem>>, vector<2x8xf32>,
    %c6_638 = arith.constant 6 : index
    %c24_639 = arith.constant 24 : index
    %457 = vector.load %arg18[%c6_638, %c24_639] : memref<8x32xf32, #tpu.memory_space<vmem>>, vector<2x8xf32>
    %c6_640 = arith.constant 6 : index
    %c0_641 = arith.constant 0 : index
    %458 = vector.load %arg21[%c6_640, %c0_641] : memref<8x8xf32, #tpu.memory_space<vmem>>, vector<2x8xf32>
    tpu.vector_store %arg21[%c6_640, %c0_641], %457 {strides = array<i32>} : memref<8x8xf32, #tpu.memory_space<vmem>>, vector<2x8xf32>,
    %c6_642 = arith.constant 6 : index
    %c24_643 = arith.constant 24 : index
    %459 = vector.load %arg19[%c6_642, %c24_643] : memref<8x32xf32, #tpu.memory_space<vmem>>, vector<2x8xf32>
    %c6_644 = arith.constant 6 : index
    %c0_645 = arith.constant 0 : index
    %460 = vector.load %arg22[%c6_644, %c0_645] : memref<8x8xf32, #tpu.memory_space<vmem>>, vector<2x8xf32>
    tpu.vector_store %arg22[%c6_644, %c0_645], %459 {strides = array<i32>} : memref<8x8xf32, #tpu.memory_space<vmem>>, vector<2x8xf32>,
    %c6_646 = arith.constant 6 : index
    %c24_647 = arith.constant 24 : index
    %461 = vector.load %arg20[%c6_646, %c24_647] : memref<8x32xf32, #tpu.memory_space<vmem>>, vector<2x8xf32>
    %c6_648 = arith.constant 6 : index
    %c0_649 = arith.constant 0 : index
    %462 = vector.load %arg23[%c6_648, %c0_649] : memref<8x8xf32, #tpu.memory_space<vmem>>, vector<2x8xf32>
    tpu.vector_store %arg23[%c6_648, %c0_649], %461 {strides = array<i32>} : memref<8x8xf32, #tpu.memory_space<vmem>>, vector<2x8xf32>,
    %c0_650 = arith.constant 0 : index
    %c0_651 = arith.constant 0 : index
    %463 = vector.load %arg21[%c0_650, %c0_651] : memref<8x8xf32, #tpu.memory_space<vmem>>, vector<8x8xf32>
    %c0_652 = arith.constant 0 : index
    %c0_653 = arith.constant 0 : index
    %464 = vector.load %arg22[%c0_652, %c0_653] : memref<8x8xf32, #tpu.memory_space<vmem>>, vector<8x8xf32>
    %c0_654 = arith.constant 0 : index
    %c0_655 = arith.constant 0 : index
    %465 = vector.load %arg23[%c0_654, %c0_655] : memref<8x8xf32, #tpu.memory_space<vmem>>, vector<8x8xf32>
    %cst_656 = arith.constant dense<0.000000e+00> : vector<8x8xf32>
    %466 = tpu.matmul %463, %464, %cst_656 {dimension_numbers = #tpu.dot_dimension_numbers<[1], [1], [0], [0], [0, 0, 1, 0], [], []>} : vector<8x8xf32>, vector<8x8xf32>, vector<8x8xf32> -> vector<8x8xf32>
    %467 = math.sqrt %466 : vector<8x8xf32>
    %cst_657 = arith.constant -1.000000e+09 : f32
    %468 = vector.broadcast %cst_657 : f32 to vector<1x8xf32>
    %469 = arith.mulf %7, %468 : vector<1x8xf32>
    %470 = vector.broadcast %469 : vector<1x8xf32> to vector<8x8xf32>
    %471 = arith.addf %467, %470 : vector<8x8xf32>
    %cst_658 = arith.constant dense<0xFF800000> : vector<8xf32>
    %472 = vector.multi_reduction <maximumf>, %471, %cst_658 [1] : vector<8x8xf32> to vector<8xf32>
    %473 = vector.shape_cast %472 : vector<8xf32> to vector<8x1xf32>
    %474 = vector.broadcast %473 : vector<8x1xf32> to vector<8x8xf32>
    %475 = arith.subf %471, %474 : vector<8x8xf32>
    %476 = math.exp %475 : vector<8x8xf32>
    %cst_659 = arith.constant dense<0.000000e+00> : vector<8xf32>
    %477 = vector.multi_reduction <add>, %476, %cst_659 [1] : vector<8x8xf32> to vector<8xf32>
    %478 = vector.shape_cast %477 : vector<8xf32> to vector<8x1xf32>
    %479 = tpu.reciprocal %478 : vector<8x1xf32> -> vector<8x1xf32>
    %480 = vector.broadcast %479 : vector<8x1xf32> to vector<8x8xf32>
    %481 = arith.mulf %476, %480 : vector<8x8xf32>
    %c0_660 = arith.constant 0 : index
    %c0_661 = arith.constant 0 : index
    %c24_662 = arith.constant 24 : index
    %482 = vector.load %arg17[%c0_660, %c0_661, %c24_662] : memref<1x8x32xf32, #tpu.memory_space<vmem>>, vector<1x8x8xf32>
    %483 = vector.shape_cast %482 : vector<1x8x8xf32> to vector<8x8xf32>
    %484 = vector.shape_cast %481 : vector<8x8xf32> to vector<1x8x8xf32>
    tpu.vector_store %arg17[%c0_660, %c0_661, %c24_662], %484 {strides = array<i32>} : memref<1x8x32xf32, #tpu.memory_space<vmem>>, vector<1x8x8xf32>,
    %cst_663 = arith.constant dense<0.000000e+00> : vector<8x8xf32>
    %485 = tpu.matmul %481, %465, %cst_663 {dimension_numbers = #tpu.dot_dimension_numbers<[1], [0], [0], [1], [0, 0, 1, 1], [], []>} : vector<8x8xf32>, vector<8x8xf32>, vector<8x8xf32> -> vector<8x8xf32>
    %c0_664 = arith.constant 0 : index
    %c0_665 = arith.constant 0 : index
    %486 = vector.load %arg24[%c0_664, %c0_665] : memref<8x8xf32, #tpu.memory_space<vmem>>, vector<8x8xf32>
    tpu.vector_store %arg24[%c0_664, %c0_665], %485 {strides = array<i32>} : memref<8x8xf32, #tpu.memory_space<vmem>>, vector<8x8xf32>,
    %c0_666 = arith.constant 0 : index
    %c0_667 = arith.constant 0 : index
    %487 = vector.load %arg24[%c0_666, %c0_667] : memref<8x8xf32, #tpu.memory_space<vmem>>, vector<2x8xf32>
    %c6_668 = arith.constant 6 : index
    %c0_669 = arith.constant 0 : index
    %488 = vector.load %arg25[%c6_668, %c0_669] : memref<8x32xf32, #tpu.memory_space<vmem>>, vector<2x8xf32>
    tpu.vector_store %arg25[%c6_668, %c0_669], %487 {strides = array<i32>} : memref<8x32xf32, #tpu.memory_space<vmem>>, vector<2x8xf32>,
    %c2_670 = arith.constant 2 : index
    %c0_671 = arith.constant 0 : index
    %489 = vector.load %arg24[%c2_670, %c0_671] : memref<8x8xf32, #tpu.memory_space<vmem>>, vector<2x8xf32>
    %c6_672 = arith.constant 6 : index
    %c8_673 = arith.constant 8 : index
    %490 = vector.load %arg25[%c6_672, %c8_673] : memref<8x32xf32, #tpu.memory_space<vmem>>, vector<2x8xf32>
    tpu.vector_store %arg25[%c6_672, %c8_673], %489 {strides = array<i32>} : memref<8x32xf32, #tpu.memory_space<vmem>>, vector<2x8xf32>,
    %c4_674 = arith.constant 4 : index
    %c0_675 = arith.constant 0 : index
    %491 = vector.load %arg24[%c4_674, %c0_675] : memref<8x8xf32, #tpu.memory_space<vmem>>, vector<2x8xf32>
    %c6_676 = arith.constant 6 : index
    %c16_677 = arith.constant 16 : index
    %492 = vector.load %arg25[%c6_676, %c16_677] : memref<8x32xf32, #tpu.memory_space<vmem>>, vector<2x8xf32>
    tpu.vector_store %arg25[%c6_676, %c16_677], %491 {strides = array<i32>} : memref<8x32xf32, #tpu.memory_space<vmem>>, vector<2x8xf32>,
    %c6_678 = arith.constant 6 : index
    %c0_679 = arith.constant 0 : index
    %493 = vector.load %arg24[%c6_678, %c0_679] : memref<8x8xf32, #tpu.memory_space<vmem>>, vector<2x8xf32>
    %c6_680 = arith.constant 6 : index
    %c24_681 = arith.constant 24 : index
    %494 = vector.load %arg25[%c6_680, %c24_681] : memref<8x32xf32, #tpu.memory_space<vmem>>, vector<2x8xf32>
    tpu.vector_store %arg25[%c6_680, %c24_681], %493 {strides = array<i32>} : memref<8x32xf32, #tpu.memory_space<vmem>>, vector<2x8xf32>,
    %c0_682 = arith.constant 0 : index
    %c0_683 = arith.constant 0 : index
    %495 = vector.load %arg25[%c0_682, %c0_683] : memref<8x32xf32, #tpu.memory_space<vmem>>, vector<8x32xf32>
    %cst_684 = arith.constant dense<0.000000e+00> : vector<8x32xf32>
    %496 = tpu.matmul %495, %11, %cst_684 {dimension_numbers = #tpu.dot_dimension_numbers<[1], [0], [0], [1], [0, 0, 1, 1], [], []>} : vector<8x32xf32>, vector<32x32xf32>, vector<8x32xf32> -> vector<8x32xf32>
    %497 = arith.addf %264, %496 : vector<8x32xf32>
    %cst_685 = arith.constant dense<0.000000e+00> : vector<8xf32>
    %498 = vector.multi_reduction <add>, %497, %cst_685 [1] : vector<8x32xf32> to vector<8xf32>
    %499 = vector.shape_cast %498 : vector<8xf32> to vector<8x1xf32>
    %cst_686 = arith.constant 3.200000e+01 : f32
    %500 = vector.broadcast %cst_686 : f32 to vector<8x1xf32>
    %501 = arith.divf %499, %500 : vector<8x1xf32>
    %502 = vector.broadcast %501 : vector<8x1xf32> to vector<8x32xf32>
    %503 = arith.subf %497, %502 : vector<8x32xf32>
    %504 = arith.mulf %503, %503 : vector<8x32xf32>
    %cst_687 = arith.constant dense<0.000000e+00> : vector<8xf32>
    %505 = vector.multi_reduction <add>, %504, %cst_687 [1] : vector<8x32xf32> to vector<8xf32>
    %506 = vector.shape_cast %505 : vector<8xf32> to vector<8x1xf32>
    %cst_688 = arith.constant 3.200000e+01 : f32
    %507 = vector.broadcast %cst_688 : f32 to vector<8x1xf32>
    %508 = arith.divf %506, %507 : vector<8x1xf32>
    %509 = vector.broadcast %501 : vector<8x1xf32> to vector<8x32xf32>
    %510 = arith.subf %497, %509 : vector<8x32xf32>
    %cst_689 = arith.constant 9.99999997E-7 : f32
    %511 = vector.broadcast %cst_689 : f32 to vector<8x1xf32>
    %512 = arith.addf %508, %511 : vector<8x1xf32>
    %513 = math.rsqrt %512 : vector<8x1xf32>
    %514 = vector.broadcast %513 : vector<8x1xf32> to vector<8x32xf32>
    %515 = arith.mulf %510, %514 : vector<8x32xf32>
    %516 = vector.broadcast %12 : vector<1x32xf32> to vector<8x32xf32>
    %517 = arith.mulf %515, %516 : vector<8x32xf32>
    %518 = vector.broadcast %13 : vector<1x32xf32> to vector<8x32xf32>
    %519 = arith.addf %517, %518 : vector<8x32xf32>
    %c0_690 = arith.constant 0 : index
    %c0_691 = arith.constant 0 : index
    %520 = vector.load %arg11[%c0_690, %c0_691] : memref<32x64xf32, #tpu.memory_space<vmem>>, vector<32x64xf32>
    %cst_692 = arith.constant dense<0.000000e+00> : vector<8x64xf32>
    %521 = tpu.matmul %519, %520, %cst_692 {dimension_numbers = #tpu.dot_dimension_numbers<[1], [0], [0], [1], [0, 0, 1, 1], [], []>} : vector<8x32xf32>, vector<32x64xf32>, vector<8x64xf32> -> vector<8x64xf32>
    %c0_693 = arith.constant 0 : index
    %c0_694 = arith.constant 0 : index
    %522 = vector.load %arg12[%c0_693, %c0_694] : memref<1x64xf32, #tpu.memory_space<vmem>>, vector<1x64xf32>
    %523 = vector.broadcast %522 : vector<1x64xf32> to vector<8x64xf32>
    %524 = arith.addf %521, %523 : vector<8x64xf32>
    %cst_695 = arith.constant 0.000000e+00 : f32
    %525 = vector.broadcast %cst_695 : f32 to vector<8x64xf32>
    %526 = arith.maximumf %524, %525 : vector<8x64xf32>
    %c0_696 = arith.constant 0 : index
    %c0_697 = arith.constant 0 : index
    %527 = vector.load %arg13[%c0_696, %c0_697] : memref<64x32xf32, #tpu.memory_space<vmem>>, vector<64x32xf32>
    %cst_698 = arith.constant dense<0.000000e+00> : vector<8x32xf32>
    %528 = tpu.matmul %526, %527, %cst_698 {dimension_numbers = #tpu.dot_dimension_numbers<[1], [0], [0], [1], [0, 0, 1, 1], [], []>} : vector<8x64xf32>, vector<64x32xf32>, vector<8x32xf32> -> vector<8x32xf32>
    %c0_699 = arith.constant 0 : index
    %c0_700 = arith.constant 0 : index
    %529 = vector.load %arg14[%c0_699, %c0_700] : memref<1x32xf32, #tpu.memory_space<vmem>>, vector<1x32xf32>
    %530 = vector.broadcast %529 : vector<1x32xf32> to vector<8x32xf32>
    %531 = arith.addf %528, %530 : vector<8x32xf32>
    %532 = arith.addf %519, %531 : vector<8x32xf32>
    %cst_701 = arith.constant dense<0.000000e+00> : vector<8xf32>
    %533 = vector.multi_reduction <add>, %532, %cst_701 [1] : vector<8x32xf32> to vector<8xf32>
    %534 = vector.shape_cast %533 : vector<8xf32> to vector<8x1xf32>
    %cst_702 = arith.constant 3.200000e+01 : f32
    %535 = vector.broadcast %cst_702 : f32 to vector<8x1xf32>
    %536 = arith.divf %534, %535 : vector<8x1xf32>
    %537 = vector.broadcast %536 : vector<8x1xf32> to vector<8x32xf32>
    %538 = arith.subf %532, %537 : vector<8x32xf32>
    %539 = arith.mulf %538, %538 : vector<8x32xf32>
    %cst_703 = arith.constant dense<0.000000e+00> : vector<8xf32>
    %540 = vector.multi_reduction <add>, %539, %cst_703 [1] : vector<8x32xf32> to vector<8xf32>
    %541 = vector.shape_cast %540 : vector<8xf32> to vector<8x1xf32>
    %cst_704 = arith.constant 3.200000e+01 : f32
    %542 = vector.broadcast %cst_704 : f32 to vector<8x1xf32>
    %543 = arith.divf %541, %542 : vector<8x1xf32>
    %544 = vector.broadcast %536 : vector<8x1xf32> to vector<8x32xf32>
    %545 = arith.subf %532, %544 : vector<8x32xf32>
    %cst_705 = arith.constant 9.99999997E-7 : f32
    %546 = vector.broadcast %cst_705 : f32 to vector<8x1xf32>
    %547 = arith.addf %543, %546 : vector<8x1xf32>
    %548 = math.rsqrt %547 : vector<8x1xf32>
    %549 = vector.broadcast %548 : vector<8x1xf32> to vector<8x32xf32>
    %550 = arith.mulf %545, %549 : vector<8x32xf32>
    %551 = vector.broadcast %12 : vector<1x32xf32> to vector<8x32xf32>
    %552 = arith.mulf %550, %551 : vector<8x32xf32>
    %553 = vector.broadcast %13 : vector<1x32xf32> to vector<8x32xf32>
    %554 = arith.addf %552, %553 : vector<8x32xf32>
    %c0_706 = arith.constant 0 : index
    %c0_707 = arith.constant 0 : index
    %c0_708 = arith.constant 0 : index
    %555 = vector.load %arg15[%c0_706, %c0_707, %c0_708] : memref<1x8x32xf32, #tpu.memory_space<vmem>>, vector<1x8x32xf32>
    %556 = vector.shape_cast %555 : vector<1x8x32xf32> to vector<8x32xf32>
    %557 = vector.shape_cast %554 : vector<8x32xf32> to vector<1x8x32xf32>
    tpu.vector_store %arg15[%c0_706, %c0_707, %c0_708], %557 {strides = array<i32>} : memref<1x8x32xf32, #tpu.memory_space<vmem>>, vector<1x8x32xf32>,
    return
  }
  func.func @transform_0(%arg0: i32) -> (i32, i32, i32) {
    %c0_i32 = arith.constant 0 : i32
    %c0_i32_0 = arith.constant 0 : i32
    %c0_i32_1 = arith.constant 0 : i32
    return %arg0, %c0_i32, %c0_i32_0 : i32, i32, i32
  }
  func.func @transform_1(%arg0: i32) -> (i32, i32, i32) {
    %c0_i32 = arith.constant 0 : i32
    %c0_i32_0 = arith.constant 0 : i32
    %c0_i32_1 = arith.constant 0 : i32
    return %arg0, %c0_i32, %c0_i32_0 : i32, i32, i32
  }
  func.func @transform_2(%arg0: i32) -> (i32, i32, i32) {
    %c0_i32 = arith.constant 0 : i32
    %c0_i32_0 = arith.constant 0 : i32
    %c0_i32_1 = arith.constant 0 : i32
    %c0_i32_2 = arith.constant 0 : i32
    return %c0_i32, %c0_i32_0, %c0_i32_1 : i32, i32, i32
  }
  func.func @transform_3(%arg0: i32) -> (i32, i32, i32) {
    %c0_i32 = arith.constant 0 : i32
    %c0_i32_0 = arith.constant 0 : i32
    %c0_i32_1 = arith.constant 0 : i32
    return %arg0, %c0_i32, %c0_i32_0 : i32, i32, i32
  }
  func.func @transform_4(%arg0: i32) -> (i32, i32) {
    %c0_i32 = arith.constant 0 : i32
    %c0_i32_0 = arith.constant 0 : i32
    %c0_i32_1 = arith.constant 0 : i32
    return %c0_i32, %c0_i32_0 : i32, i32
  }
  func.func @transform_5(%arg0: i32) -> (i32, i32) {
    %c0_i32 = arith.constant 0 : i32
    %c0_i32_0 = arith.constant 0 : i32
    %c0_i32_1 = arith.constant 0 : i32
    return %c0_i32, %c0_i32_0 : i32, i32
  }
  func.func @transform_6(%arg0: i32) -> (i32, i32) {
    %c0_i32 = arith.constant 0 : i32
    %c0_i32_0 = arith.constant 0 : i32
    %c0_i32_1 = arith.constant 0 : i32
    return %c0_i32, %c0_i32_0 : i32, i32
  }
  func.func @transform_7(%arg0: i32) -> (i32, i32) {
    %c0_i32 = arith.constant 0 : i32
    %c0_i32_0 = arith.constant 0 : i32
    %c0_i32_1 = arith.constant 0 : i32
    return %c0_i32, %c0_i32_0 : i32, i32
  }
  func.func @transform_8(%arg0: i32) -> (i32, i32) {
    %c0_i32 = arith.constant 0 : i32
    %c0_i32_0 = arith.constant 0 : i32
    %c0_i32_1 = arith.constant 0 : i32
    return %c0_i32, %c0_i32_0 : i32, i32
  }
  func.func @transform_9(%arg0: i32) -> (i32, i32) {
    %c0_i32 = arith.constant 0 : i32
    %c0_i32_0 = arith.constant 0 : i32
    %c0_i32_1 = arith.constant 0 : i32
    return %c0_i32, %c0_i32_0 : i32, i32
  }
  func.func @transform_10(%arg0: i32) -> (i32, i32) {
    %c0_i32 = arith.constant 0 : i32
    %c0_i32_0 = arith.constant 0 : i32
    %c0_i32_1 = arith.constant 0 : i32
    return %c0_i32, %c0_i32_0 : i32, i32
  }
  func.func @transform_11(%arg0: i32) -> (i32, i32) {
    %c0_i32 = arith.constant 0 : i32
    %c0_i32_0 = arith.constant 0 : i32
    %c0_i32_1 = arith.constant 0 : i32
    return %c0_i32, %c0_i32_0 : i32, i32
  }
  func.func @transform_12(%arg0: i32) -> (i32, i32) {
    %c0_i32 = arith.constant 0 : i32
    %c0_i32_0 = arith.constant 0 : i32
    %c0_i32_1 = arith.constant 0 : i32
    return %c0_i32, %c0_i32_0 : i32, i32
  }
  func.func @transform_13(%arg0: i32) -> (i32, i32) {
    %c0_i32 = arith.constant 0 : i32
    %c0_i32_0 = arith.constant 0 : i32
    %c0_i32_1 = arith.constant 0 : i32
    return %c0_i32, %c0_i32_0 : i32, i32
  }
  func.func @transform_14(%arg0: i32) -> (i32, i32, i32) {
    %c0_i32 = arith.constant 0 : i32
    %c0_i32_0 = arith.constant 0 : i32
    %c0_i32_1 = arith.constant 0 : i32
    return %arg0, %c0_i32, %c0_i32_0 : i32, i32, i32
  }
  func.func @transform_15(%arg0: i32) -> (i32, i32, i32) {
    %c0_i32 = arith.constant 0 : i32
    %c0_i32_0 = arith.constant 0 : i32
    %c0_i32_1 = arith.constant 0 : i32
    return %arg0, %c0_i32, %c0_i32_0 : i32, i32, i32
  }
  func.func @transform_16(%arg0: i32) -> (i32, i32, i32) {
    %c0_i32 = arith.constant 0 : i32
    %c0_i32_0 = arith.constant 0 : i32
    %c0_i32_1 = arith.constant 0 : i32
    return %arg0, %c0_i32, %c0_i32_0 : i32, i32, i32
  }
}

</mosaic_0001>

<bundles_post_ra>
// kernel: decoder_layer.1
= control target key start
LH: loop header
LB: loop body
LE: loop exit
PB: predicated region body
PF: predicated region fallthrough
CT: control target
= control target key end

     0   :  { %s5003_s0 = inlined_call_operand.vmem [shape: f32[2,8,32], index: 0, kind: input, shape index: {}]   ;;  %s5004_s1 = inlined_call_operand.vmem [shape: f32[2,8,32], index: 1, kind: input, shape index: {}]   ;;  %s5005_s2 = inlined_call_operand.vmem [shape: f32[1,8,8], index: 2, kind: input, shape index: {}]   ;;  %s5006_s3 = inlined_call_operand.vmem [shape: f32[2,1,8], index: 3, kind: input, shape index: {}]   ;;  %s5007_s4 = inlined_call_operand.vmem [shape: f32[32,32], index: 4, kind: input, shape index: {}]   ;;  %s5008_s5 = inlined_call_operand.vmem [shape: f32[32,32], index: 5, kind: input, shape index: {}]   ;;  %s5009_s6 = inlined_call_operand.vmem [shape: f32[32,32], index: 6, kind: input, shape index: {}]   ;;  %s5010_s7 = inlined_call_operand.vmem [shape: f32[32,32], index: 7, kind: input, shape index: {}]   ;;  %s5011_s8 = inlined_call_operand.vmem [shape: f32[1,32], index: 8, kind: input, shape index: {}]   ;;  %s5012_s9 = inlined_call_operand.vmem [shape: f32[1,32], index: 9, kind: input, shape index: {}]   ;;  %s5013_s10 = inlined_call_operand.vmem [shape: f32[32,64], index: 10, kind: input, shape index: {}]   ;;  %s5014_s11 = inlined_call_operand.vmem [shape: f32[1,64], index: 11, kind: input, shape index: {}]   ;;  %s5015_s12 = inlined_call_operand.vmem [shape: f32[64,32], index: 12, kind: input, shape index: {}]   ;;  %s5016_s13 = inlined_call_operand.vmem [shape: f32[1,32], index: 13, kind: input, shape index: {}]   ;;  %s5017_s14 = inlined_call_operand.hbm [shape: f32[2,8,32], index: 14, kind: output, shape index: {0}]   ;;  %s5018_s15 = inlined_call_operand.vmem [shape: f32[2,8,32], index: 15, kind: output, shape index: {1}]   ;;  %s5019_s16 = inlined_call_operand.vmem [shape: f32[2,8,32], index: 16, kind: output, shape index: {2}]  }
   0x1   :  { %5036 = sst [smem:[#allocation17_spill]] %s5003_s0 }
   0x2   :  { %5037 = sst [smem:[#allocation18_spill]] %s5004_s1 }
   0x3   :  { %5038 = sst [smem:[#allocation19_spill]] %s5007_s4 }
   0x4   :  { %5039 = sst [smem:[#allocation20_spill]] %s5008_s5 }
   0x5   :  { %22 = vsyncpa [#allocation11], 0 }
   0x6   :  { %24 = vsyncpa [#allocation11 + $0x1], 0  ;;  %s4287_s21 = smov 0   ;;  %s4289_s22 = smov 0  }
   0x7   :  { %s4291_s23 = smov 0   ;;  %s4293_s24 = smov 0  }
   0x8 LB: > { %5040 = sst [smem:[#allocation13_spill]] %s4186_s23  ;;  %s4308_s25 = sadd.s32 4294967295, %s4190_s24   ;;  %s4190_s24 = sphi %s4293_s24, %s5057_s24   ;;  %s4186_s23 = sphi %s4291_s23, %s5059_s23   ;;  %s4182_s22 = sphi %s4289_s22, %s5061_s22   ;;  %s4178_s21 = sphi %s4287_s21, %s5060_s21  }
   0x9   : > { %s3625_s26 = sadd.s32 4294967294, %s4190_s24   ;;  %s4312_s27 = sadd.s32 1, %s4190_s24  }
   0xa   : > { %5041 = sst [smem:[#allocation14_spill]] %s4312_s27  ;;  %s346_s28 = sadd.s32 1, %s4186_s23 }
   0xb   : > { %s343_s29 = ssub.s32 %s4190_s24, %s4312_s27  ;;  %p356_p0 = scmp.ne.s32.totalorder %s4186_s23, %s4182_s22 }
   0xc   : > { %p344_p1 = scmp.eq.s32.totalorder %s343_s29, 0  ;;  %p357_p2 = scmp.eq.s32.totalorder %s4308_s25, 1 }
   0xd   : > { %p362_p3 = scmp.ne.s32.totalorder %s4182_s22, %s4178_s21  ;;  %p363_p4 = scmp.eq.s32.totalorder %s3625_s26, 1 }
   0xe   : > { %s4323_s30 = scalar_select %p344_p1, %s4186_s23, %s346_s28  }
   0xf   : > { %p4325_p5 = por %p357_p2, %p356_p0  ;;  %p4329_p6 = por %p363_p4, %p362_p3 }
  0x10   : > { %5042 = sst [smem:[#allocation15_spill]] %s4323_s30  ;;  %p3628_p7 = scmp.ge.s32.totalorder %s4190_s24, 1 }
  0x11   : > { %s5044_s17 = scalar_select %p4329_p6, 1, 0 }
  0x12   : > { %p486_p8 = scmp.lt.s32.totalorder %s4190_s24, 3 }
  0x13   : > { %5045 = sst [smem:[#allocation16_spill]] %s5044_s17 }
  0x14   : > { %p487_p9 = pnand %p3628_p7, %p486_p8 }
  0x15   : > { %s5046_s4 = sld [smem:[#allocation19_spill]] (!%p487_p9)  ;;  %v4192_v3 = vmov (!%p487_p9), 0.0|0.0   ;;  %vm4193_vm0 = vmmov (!%p487_p9), 0   ;;  %v4194_v6 = vmov (!%p487_p9), 0.0   ;;  %p550_p10 = scmp.lt.s32.totalorder (!%p487_p9), %s4308_s25, 1  ;;  %vm591_vm1 = vcmask (!%p487_p9), 261120  }
  0x16   : > { %490 = sbr.rel (%p487_p9) target bundleno = 4490 (0x118a), region = 76  ;;  %3960 = vmatprep.subr.bf16.mxu1 (!%p487_p9), %v4192_v3  ;;  %3770 = vmatprep.mubr.msk.f32.mxu1 (!%p487_p9), %vm4193_vm0, %v4194_v6  ;;  %s5047_s5 = sld [smem:[#allocation20_spill]] (!%p487_p9)  ;;  %vm809_vm2 = vcmask (!%p487_p9), 58368   ;;  %v581_v29 = vld [vmem:[%s5009_s6] sm:$0xff] (!%p487_p9)  ;;  %v582_v30 = vld [vmem:[%s5009_s6 + $0x8] sm:$0xff] (!%p487_p9)  ;;  %v583_v32 = vld [vmem:[%s5009_s6 + $0x10] sm:$0xff] (!%p487_p9) }
  0x17   : > { %3972 = vmatprep.subr.bf16.mxu0 (!%p487_p9), %v4192_v3  ;;  %3792 = vmatprep.mubr.msk.f32.mxu0 (!%p487_p9), %vm4193_vm0, %v4194_v6  ;;  %s5026_s28 = smov (!%p487_p9), 104   ;;  %v4420_v31 = vpack.c.bf16 (!%p487_p9), %v582_v30, %v581_v29  ;;  %v584_v33 = vld [vmem:[%s5009_s6 + $0x18] sm:$0xff] (!%p487_p9)  ;;  %vm872_vm3 = vcmask (!%p487_p9), 64512   ;;  %s5034_s19 = smov (!%p487_p9), 8   ;;  %vm1051_vm12 = vcmask (!%p487_p9), 123968   ;;  %vm1058_vm13 = vcmask (!%p487_p9), 189568  }
  0x18   : > { %v4429_v34 = vpack.c.bf16 (!%p487_p9), %v584_v33, %v583_v32  ;;  %s5030_s20 = smov (!%p487_p9), 24   ;;  %s5032_s17 = smov (!%p487_p9), 16   ;;  %vm1065_vm14 = vcmask (!%p487_p9), 255168  }
  0x19   : > { %3974 = vmatpush3.bf16.msra.mxu0 (!%p487_p9), %v4420_v31  ;;  %s5051_s1 = sld [smem:[#allocation18_spill]] (!%p487_p9)  ;;  %s5053_s29 = smov (!%p487_p9), 104  }
  0x1a   : > { %3975 = vmatprep.subr.bf16.mxu0 (!%p487_p9), %v4192_v3 }
  0x1b   : > { %v573_v0 = vld [vmem:[%s5046_s4] sm:$0xff] (!%p487_p9)  ;;  %v574_v1 = vld [vmem:[%s5046_s4 + $0x8] sm:$0xff] (!%p487_p9)  ;;  %v575_v2 = vld [vmem:[%s5046_s4 + $0x10] sm:$0xff] (!%p487_p9) }
  0x1c   : > { %v4345_v4 = vpack.c.bf16 (!%p487_p9), %v574_v1, %v573_v0  ;;  %v576_v5 = vld [vmem:[%s5046_s4 + $0x18] sm:$0xff] (!%p487_p9)  ;;  %v577_v8 = vld [vmem:[%s5047_s5] sm:$0xff] (!%p487_p9)  ;;  %v578_v9 = vld [vmem:[%s5047_s5 + $0x8] sm:$0xff] (!%p487_p9)  ;;  %s5048_s4 = sld [smem:[#allocation17_spill]] (!%p487_p9) }
  0x1d   : > { %v4357_v7 = vpack.c.bf16 %v576_v5, %v575_v2  ;;  %s4360_s18 = scalar_select %p550_p10, %s4308_s25, 1  ;;  %v4379_v11 = vpack.c.bf16 %v578_v9, %v577_v8  ;;  %v579_v12 = vld [vmem:[%s5047_s5 + $0x10] sm:$0xff]  ;;  %v580_v13 = vld [vmem:[%s5047_s5 + $0x18] sm:$0xff]  ;;  %3977 = vmatpush3.bf16.msra.mxu0 %v4429_v34 }
  0x1e   : > { %3962 = vmatpush3.bf16.msra.mxu1 %v4345_v4  ;;  %v4391_v14 = vpack.c.bf16 %v580_v13, %v579_v12  ;;  %3805 = vmatprep.subr.mxu0 %v4194_v6  ;;  %s5049_s5 = smov 120  }
  0x1f   : > { %3963 = vmatprep.subr.bf16.mxu1 %v4192_v3  ;;  %s4370_s26 = sshll.u32 %s4360_s18, 3 }
  0x20   : > { %s4551_s30 = scalar_lea.vmem %s5018_s15, %s4370_s26  ;;  %s557_s23 = scalar_lea.vmem %s5051_s1, %s4370_s26 }
  0x21   : > { %s4201_s1 = smov [#allocation10]  }
  0x22   : > { %s553_s27 = scalar_lea.vmem %s5048_s4, %s4370_s26  ;;  %3965 = vmatpush3.bf16.msra.mxu1 %v4357_v7  ;;  %s5028_s4 = smov 112  }
  0x23   : > { %v4377_v10 = vld [vmem:[%s553_s27] sm:$0xff]  ;;  %3966 = vmatprep.subr.bf16.mxu1 %v4192_v3  ;;  %s5023_s27 = smov 120  }
  0x24   : > { %3793 = vmatmul.mubr.msk.f32.vlgmr.msra.gmra.mrb[0].mxu0 %vm591_vm1, %v4377_v10 }
  0x25   : > { %3771 = vmatmul.mubr.msk.f32.vlgmr.msra.gmra.mrb[0].mxu1 %vm591_vm1, %v4377_v10  ;;  %3807 = vmatprep.mubr.msk.f32.mxu0 %vm4193_vm0, %v4194_v6 }
  0x26   : > { %3968 = vmatpush3.bf16.msra.mxu1 %v4379_v11  ;;  %3781 = vmatprep.mubr.msk.f32.mxu1 %vm4193_vm0, %v4194_v6 }
  0x27   : > { %3969 = vmatprep.subr.bf16.mxu1 %v4192_v3 }
  0x2a   : > { %3971 = vmatpush3.bf16.msra.mxu1 %v4391_v14 }
  0x2b   : > { %3795 = vmatprep.subr.mxu1 %v4194_v6 }
  0x2d   : > { %3782 = vmatmul.mubr.msk.f32.vlgmr.msra.gmra.mrb[2].mxu1 %vm591_vm1, %v4377_v10 }
  0x2e   : > { %3797 = vmatprep.mubr.msk.f32.mxu1 %vm4193_vm0, %v4194_v6 }
  0xf7   : > { %v803_v33 = vpop.f32.mrb[0].mxu0 }
  0xf8   : > { %v661_v15 = vpop.f32.mrb[0].mxu1  ;;  %807 = vst.msk [vmem:[#allocation4] sm:$0xff] %vm591_vm1, %v803_v33 }
  0xf9   : > { %665 = vst.msk [vmem:[#allocation2] sm:$0xff] %vm591_vm1, %v661_v15  ;;  %v3772_v16 = vpop.f32.mrb[1].mxu1 }
 0x100   : > { %v808_v17 = vld [vmem:[#allocation2] sm:$0x3]  ;;  %v732_v18 = vpop.f32.mrb[2].mxu1  ;;  %v1091_v22 = vld [vmem:[#allocation2 + $0x2] sm:$0x3] }
 0x101   : > { %810 = vst.msk [vmem:[#allocation5] sm:$0x3] %vm809_vm2, %v808_v17  ;;  %v833_v19 = vld [vmem:[#allocation2] sm:$0x3]  ;;  %v3783_v21 = vpop.f32.mrb[3].mxu1 }
 0x102   : > { %736 = vst.msk [vmem:[#allocation3] sm:$0xff] %vm591_vm1, %v732_v18  ;;  %835 = vrot.lane.b32.xlu0 %v833_v19, %s5028_s4  ;;  %v815_v20 = vld [vmem:[#allocation2] sm:$0x3]  ;;  %v1073_v25 = vld [vmem:[#allocation2 + $0x2] sm:$0x3] }
 0x103   : > { %817 = vrot.lane.b32.xlu1 %v815_v20, %s5023_s27  ;;  %v851_v23 = vld [vmem:[#allocation2] sm:$0x3]  ;;  %v1109_v28 = vld [vmem:[#allocation2 + $0x2] sm:$0x3]  ;;  %v1348_v36 = vld [vmem:[#allocation2 + $0x4] sm:$0x3] }
 0x104   : > { %v1330_v37 = vld [vmem:[#allocation2 + $0x4] sm:$0x3]  ;;  %v1587_v45 = vld [vmem:[#allocation2 + $0x6] sm:$0x3]  ;;  %v1067_v57 = vld [vmem:[#allocation2 + $0x2] sm:$0x3] }
 0x105   : > { %v1366_v41 = vld [vmem:[#allocation2 + $0x4] sm:$0x3]  ;;  %v1623_v49 = vld [vmem:[#allocation2 + $0x6] sm:$0x3] }
 0x106   : > { %1093 = vrot.lane.b32.xlu0 %v1091_v22, %s5028_s4  ;;  %v1605_v50 = vld [vmem:[#allocation2 + $0x6] sm:$0x3]  ;;  %v1324_v63 = vld [vmem:[#allocation2 + $0x4] sm:$0x3] }
 0x107   : > { %853 = vrot.lane.b32.xlu1 %v851_v23, %s5026_s28  ;;  %v1581_v20 = vld [vmem:[#allocation2 + $0x6] sm:$0x3] }
 0x109   : > { %v811_v24 = vld [vmem:[#allocation3] sm:$0x3]  ;;  %v1079_v38 = vld [vmem:[#allocation3 + $0x2] sm:$0x3]  ;;  %v1336_v42 = vld [vmem:[#allocation3 + $0x4] sm:$0x3] }
 0x10a   : > { %812 = vst.msk [vmem:[#allocation6] sm:$0x3] %vm809_vm2, %v811_v24  ;;  %v821_v26 = vld [vmem:[#allocation3] sm:$0x3]  ;;  %v1097_v39 = vld [vmem:[#allocation3 + $0x2] sm:$0x3] }
 0x10b   : > { %1075 = vrot.lane.b32.xlu1 %v1073_v25, %s5023_s27  ;;  %823 = vrot.lane.b32.xlu0 %v821_v26, %s5023_s27  ;;  %v839_v27 = vld [vmem:[#allocation3] sm:$0x3]  ;;  %v1115_v40 = vld [vmem:[#allocation3 + $0x2] sm:$0x3]  ;;  %v1354_v43 = vld [vmem:[#allocation3 + $0x4] sm:$0x3] }
 0x10c   : > { %v857_v35 = vld [vmem:[#allocation3] sm:$0x3]  ;;  %v1372_v44 = vld [vmem:[#allocation3 + $0x4] sm:$0x3]  ;;  %v1593_v46 = vld [vmem:[#allocation3 + $0x6] sm:$0x3] }
 0x10d   : > { %v1611_v47 = vld [vmem:[#allocation3 + $0x6] sm:$0x3]  ;;  %v1069_v5 = vld [vmem:[#allocation3 + $0x2] sm:$0x3]  ;;  %v1326_v16 = vld [vmem:[#allocation3 + $0x4] sm:$0x3] }
 0x10e   : > { %v1629_v48 = vld [vmem:[#allocation3 + $0x6] sm:$0x3]  ;;  %s5052_s27 = smov 112  }
 0x10f   : > { %1111 = vrot.lane.b32.xlu1 %v1109_v28, %s5026_s28  ;;  %841 = vrot.lane.b32.xlu0 %v839_v27, %s5028_s4  ;;  %v1583_v24 = vld [vmem:[#allocation3 + $0x6] sm:$0x3] }
 0x113   : > { %859 = vrot.lane.b32.xlu1 %v857_v35, %s5026_s28  ;;  %1350 = vrot.lane.b32.xlu0 %v1348_v36, %s5028_s4  ;;  %v3794_v35 = vpop.f32.mrb[1].mxu0  ;;  %v813_v36 = vld [vmem:[#allocation4] sm:$0x3] }
 0x114   : > { %814 = vst.msk [vmem:[#allocation7] sm:$0x3] %vm809_vm2, %v813_v36 }
 0x117   : > { %1332 = vrot.lane.b32.xlu1 %v1330_v37, %s5049_s5  ;;  %1081 = vrot.lane.b32.xlu0 %v1079_v38, %s5049_s5 }
 0x11b   : > { %1099 = vrot.lane.b32.xlu1 %v1097_v39, %s5028_s4  ;;  %1117 = vrot.lane.b32.xlu0 %v1115_v40, %s5026_s28 }
 0x11f   : > { %1368 = vrot.lane.b32.xlu1 %v1366_v41, %s5026_s28  ;;  %1338 = vrot.lane.b32.xlu0 %v1336_v42, %s5049_s5  ;;  %v571_v41 = vld [vmem:[%s5005_s2] sm:$0xff] }
 0x123   : > { %1356 = vrot.lane.b32.xlu1 %v1354_v43, %s5028_s4  ;;  %1374 = vrot.lane.b32.xlu0 %v1372_v44, %s5026_s28  ;;  %v956_v44 = vmul.f32 -1e+09, %v571_v41 }
 0x127   : > { %1589 = vrot.lane.b32.xlu1 %v1587_v45, %s5049_s5  ;;  %1595 = vrot.lane.b32.xlu0 %v1593_v46, %s5049_s5 }
 0x12b   : > { %1613 = vrot.lane.b32.xlu1 %v1611_v47, %s5028_s4  ;;  %1631 = vrot.lane.b32.xlu0 %v1629_v48, %s5026_s28 }
 0x12f   : > { %1625 = vrot.lane.b32.xlu1 %v1623_v49, %s5026_s28  ;;  %1607 = vrot.lane.b32.xlu0 %v1605_v50, %s5028_s4 }
 0x174   : > { %v836_v51 = vpop.permute.xlu0 %835 }
 0x175   : > { %838 = vst.msk [vmem:[#allocation5 + $0x4] sm:$0x3] %vm809_vm2, %v836_v51  ;;  %v818_v52 = vpop.permute.xlu1 %817 }
 0x176   : > { %820 = vst.msk [vmem:[#allocation5 + $0x2] sm:$0x3] %vm809_vm2, %v818_v52 }
 0x178   : > { %v1094_v53 = vpop.permute.xlu0 %1093 }
 0x179   : > { %v854_v54 = vpop.permute.xlu1 %853 }
 0x17a   : > { %856 = vst.msk [vmem:[#allocation5 + $0x6] sm:$0x3] %vm809_vm2, %v854_v54 }
 0x17d   : > { %v1076_v55 = vpop.permute.xlu1 %1075  ;;  %v824_v56 = vpop.permute.xlu0 %823 }
 0x17e   : > { %826 = vst.msk [vmem:[#allocation6 + $0x2] sm:$0x3] %vm809_vm2, %v824_v56 }
 0x181   : > { %v869_v58 = vld [vmem:[#allocation5] sm:$0xff]  ;;  %v1112_v59 = vpop.permute.xlu1 %1111  ;;  %v842_v60 = vpop.permute.xlu0 %841 }
 0x182   : > { %1068 = vst.msk [vmem:[#allocation5] sm:$0x3] %vm809_vm2, %v1067_v57  ;;  %1096 = vst.msk [vmem:[#allocation5 + $0x4] sm:$0x3] %vm809_vm2, %v1094_v53 }
 0x183   : > { %1078 = vst.msk [vmem:[#allocation5 + $0x2] sm:$0x3] %vm809_vm2, %v1076_v55  ;;  %1114 = vst.msk [vmem:[#allocation5 + $0x6] sm:$0x3] %vm809_vm2, %v1112_v59 }
 0x184   : > { %844 = vst.msk [vmem:[#allocation6 + $0x4] sm:$0x3] %vm809_vm2, %v842_v60 }
 0x185   : > { %v860_v61 = vpop.permute.xlu1 %859  ;;  %v1351_v62 = vpop.permute.xlu0 %1350 }
 0x186   : > { %862 = vst.msk [vmem:[#allocation6 + $0x6] sm:$0x3] %vm809_vm2, %v860_v61 }
 0x189   : > { %v1333_v1 = vpop.permute.xlu1 %1332  ;;  %v1082_v2 = vpop.permute.xlu0 %1081 }
 0x18a   : > { %v1127_v0 = vld [vmem:[#allocation5] sm:$0xff] }
 0x18b   : > { %1353 = vst.msk [vmem:[#allocation5 + $0x4] sm:$0x3] %vm809_vm2, %v1351_v62  ;;  %1325 = vst.msk [vmem:[#allocation5] sm:$0x3] %vm809_vm2, %v1324_v63 }
 0x18c   : > { %1335 = vst.msk [vmem:[#allocation5 + $0x2] sm:$0x3] %vm809_vm2, %v1333_v1 }
 0x18d   : > { %v870_v8 = vld [vmem:[#allocation6] sm:$0xff]  ;;  %v1100_v9 = vpop.permute.xlu1 %1099  ;;  %v1118_v12 = vpop.permute.xlu0 %1117 }
 0x18e   : > { %1070 = vst.msk [vmem:[#allocation6] sm:$0x3] %vm809_vm2, %v1069_v5  ;;  %1084 = vst.msk [vmem:[#allocation6 + $0x2] sm:$0x3] %vm809_vm2, %v1082_v2  ;;  %3796 = vmatpush3.xpose.msk.msra.mxu1 %vm872_vm3, %v870_v8 }
 0x18f   : > { %1102 = vst.msk [vmem:[#allocation6 + $0x4] sm:$0x3] %vm809_vm2, %v1100_v9  ;;  %1120 = vst.msk [vmem:[#allocation6 + $0x6] sm:$0x3] %vm809_vm2, %v1118_v12  ;;  %3800 = vmatprep.subr.mxu1 %v4194_v6 }
 0x191   : > { %v1369_v13 = vpop.permute.xlu1 %1368  ;;  %v1339_v15 = vpop.permute.xlu0 %1338  ;;  %3798 = vmatmul.mubr.msk.f32.vlgmr.msra.gmra.mrb[4].mxu1 %vm872_vm3, %v869_v58 }
 0x192   : > { %1371 = vst.msk [vmem:[#allocation5 + $0x6] sm:$0x3] %vm809_vm2, %v1369_v13  ;;  %3802 = vmatprep.mubr.msk.f32.mxu1 %vm4193_vm0, %v4194_v6 }
 0x195   : > { %v1357_v18 = vpop.permute.xlu1 %1356  ;;  %v1375_v19 = vpop.permute.xlu0 %1374 }
 0x196   : > { %v1128_v17 = vld [vmem:[#allocation6] sm:$0xff] }
 0x197   : > { %1327 = vst.msk [vmem:[#allocation6] sm:$0x3] %vm809_vm2, %v1326_v16  ;;  %1341 = vst.msk [vmem:[#allocation6 + $0x2] sm:$0x3] %vm809_vm2, %v1339_v15  ;;  %3806 = vmatpush3.xpose.msk.msra.mxu0 %vm872_vm3, %v1128_v17  ;;  %v845_v16 = vld [vmem:[#allocation4] sm:$0x3] }
 0x198   : > { %1359 = vst.msk [vmem:[#allocation6 + $0x4] sm:$0x3] %vm809_vm2, %v1357_v18  ;;  %1377 = vst.msk [vmem:[#allocation6 + $0x6] sm:$0x3] %vm809_vm2, %v1375_v19  ;;  %3815 = vmatprep.subr.mxu0 %v4194_v6  ;;  %v863_v19 = vld [vmem:[#allocation4] sm:$0x3] }
 0x199   : > { %v1384_v21 = vld [vmem:[#allocation5] sm:$0xff]  ;;  %v1590_v22 = vpop.permute.xlu1 %1589  ;;  %v1596_v23 = vpop.permute.xlu0 %1595 }
 0x19a   : > { %3808 = vmatmul.mubr.msk.f32.vlgmr.msra.gmra.mrb[2].mxu0 %vm872_vm3, %v1127_v0  ;;  %1582 = vst.msk [vmem:[#allocation5] sm:$0x3] %vm809_vm2, %v1581_v20  ;;  %1592 = vst.msk [vmem:[#allocation5 + $0x2] sm:$0x3] %vm809_vm2, %v1590_v22  ;;  %v1085_v20 = vld [vmem:[#allocation4 + $0x2] sm:$0x3] }
 0x19b   : > { %3817 = vmatprep.mubr.msk.f32.mxu0 %vm4193_vm0, %v4194_v6  ;;  %v1121_v22 = vld [vmem:[#allocation4 + $0x2] sm:$0x3] }
 0x19d   : > { %v1614_v26 = vpop.permute.xlu1 %1613  ;;  %v1632_v27 = vpop.permute.xlu0 %1631 }
 0x19f   : > { %v1385_v25 = vld [vmem:[#allocation6] sm:$0xff] }
 0x1a0   : > { %1584 = vst.msk [vmem:[#allocation6] sm:$0x3] %vm809_vm2, %v1583_v24  ;;  %1598 = vst.msk [vmem:[#allocation6 + $0x2] sm:$0x3] %vm809_vm2, %v1596_v23  ;;  %3816 = vmatpush3.xpose.msk.msra.mxu0 %vm872_vm3, %v1385_v25  ;;  %v1342_v23 = vld [vmem:[#allocation4 + $0x4] sm:$0x3] }
 0x1a1   : > { %1616 = vst.msk [vmem:[#allocation6 + $0x4] sm:$0x3] %vm809_vm2, %v1614_v26  ;;  %1634 = vst.msk [vmem:[#allocation6 + $0x6] sm:$0x3] %vm809_vm2, %v1632_v27  ;;  %3825 = vmatprep.subr.mxu0 %v4194_v6  ;;  %v1626_v28 = vpop.permute.xlu1 %1625  ;;  %v1608_v29 = vpop.permute.xlu0 %1607  ;;  %v827_v24 = vld [vmem:[#allocation4] sm:$0x3] }
 0x1a2   : > { %1628 = vst.msk [vmem:[#allocation5 + $0x6] sm:$0x3] %vm809_vm2, %v1626_v28  ;;  %1610 = vst.msk [vmem:[#allocation5 + $0x4] sm:$0x3] %vm809_vm2, %v1608_v29  ;;  %v1360_v25 = vld [vmem:[#allocation4 + $0x4] sm:$0x3] }
 0x1a3   : > { %3818 = vmatmul.mubr.msk.f32.vlgmr.msra.gmra.mrb[4].mxu0 %vm872_vm3, %v1384_v21  ;;  %v1103_v21 = vld [vmem:[#allocation4 + $0x2] sm:$0x3]  ;;  %v1378_v26 = vld [vmem:[#allocation4 + $0x4] sm:$0x3] }
 0x1a4   : > { %3827 = vmatprep.mubr.msk.f32.mxu0 %vm4193_vm0, %v4194_v6 }
 0x1a8   : > { %v1642_v30 = vld [vmem:[#allocation6] sm:$0xff] }
 0x1a9   : > { %3826 = vmatpush3.xpose.msk.msra.mxu0 %vm872_vm3, %v1642_v30  ;;  %v1641_v32 = vld [vmem:[#allocation5] sm:$0xff] }
 0x1aa   : > { %3978 = vmatprep.subr.bf16.mxu0 %v4192_v3 }
 0x1ac   : > { %3828 = vmatmul.mubr.msk.f32.vlgmr.msra.gmra.mrb[6].mxu0 %vm872_vm3, %v1641_v32 }
 0x1ad   : > { %3843 = vmatprep.mubr.msk.f32.mxu0 %vm4193_vm0, %v4194_v6 }
 0x264   : > { %v945_v37 = vpop.f32.mrb[4].mxu1 }
 0x265   : > { %4074 = vrsqrt.f32 %v945_v37  ;;  %v3799_v38 = vpop.f32.mrb[5].mxu1  ;;  %vm951_vm4 = vcmp.eq.f32.partialorder %v945_v37, inf  ;;  %v954_v45 = vand.u32 2147483648, %v945_v37  ;;  %vm953_vm5 = vcmp.eq.f32.partialorder %v945_v37, 0.0 }
 0x26d   : > { %v1202_v39 = vpop.f32.mrb[2].mxu0 }
 0x26e   : > { %4076 = vrsqrt.f32 %v1202_v39  ;;  %v3809_v40 = vpop.f32.mrb[3].mxu0  ;;  %vm1208_vm6 = vcmp.eq.f32.partialorder %v1202_v39, inf  ;;  %v1211_v54 = vand.u32 2147483648, %v1202_v39  ;;  %vm1210_vm7 = vcmp.eq.f32.partialorder %v1202_v39, 0.0 }
 0x26f   : > { %v4075_v42 = vpop.eup %4074 }
 0x270   : > { %v950_v43 = vmul.f32 %v4075_v42, %v945_v37 }
 0x272   : > { %v952_v46 = vsel %vm951_vm4, %v945_v37, %v950_v43 }
 0x273   : > { %v955_v47 = vsel %vm953_vm5, %v954_v45, %v952_v46 }
 0x274   : > { %v957_v49 = vadd.f32 %v956_v44, %v955_v47 }
 0x276   : > { %v1459_v48 = vpop.f32.mrb[4].mxu0  ;;  %v958_v51 = vsel %vm872_vm3, %v957_v49, -inf }
 0x277   : > { %4078 = vrsqrt.f32 %v1459_v48  ;;  %v3819_v50 = vpop.f32.mrb[5].mxu0  ;;  %959 = vmax.xlane.f32.xlu0 %v958_v51  ;;  %vm1465_vm8 = vcmp.eq.f32.partialorder %v1459_v48, inf  ;;  %v1468_v63 = vand.u32 2147483648, %v1459_v48  ;;  %vm1467_vm9 = vcmp.eq.f32.partialorder %v1459_v48, 0.0  ;;  %v1071_v51 = vld [vmem:[#allocation4 + $0x2] sm:$0x3] }
 0x278   : > { %v4077_v52 = vpop.eup %4076  ;;  %v1599_v50 = vld [vmem:[#allocation4 + $0x6] sm:$0x3] }
 0x279   : > { %v1207_v53 = vmul.f32 %v4077_v52, %v1202_v39 }
 0x27b   : > { %v1209_v55 = vsel %vm1208_vm6, %v1202_v39, %v1207_v53 }
 0x27c   : > { %v1212_v56 = vsel %vm1210_vm7, %v1211_v54, %v1209_v55 }
 0x27d   : > { %v1213_v57 = vadd.f32 %v1212_v56, %v956_v44  ;;  %v1328_v56 = vld [vmem:[#allocation4 + $0x4] sm:$0x3] }
 0x27f   : > { %v1716_v58 = vpop.f32.mrb[6].mxu0  ;;  %v1214_v60 = vsel %vm872_vm3, %v1213_v57, -inf }
 0x280   : > { %4080 = vrsqrt.f32 %v1716_v58  ;;  %v3829_v59 = vpop.f32.mrb[7].mxu0  ;;  %1215 = vmax.xlane.f32.xlu1 %v1214_v60  ;;  %vm1722_vm10 = vcmp.eq.f32.partialorder %v1716_v58, inf  ;;  %v1725_v12 = vand.u32 2147483648, %v1716_v58  ;;  %vm1724_vm11 = vcmp.eq.f32.partialorder %v1716_v58, 0.0 }
 0x281   : > { %v4079_v61 = vpop.eup %4078 }
 0x282   : > { %v1464_v62 = vmul.f32 %v4079_v61, %v1459_v48  ;;  %v1585_v61 = vld [vmem:[#allocation4 + $0x6] sm:$0x3] }
 0x284   : > { %v1466_v0 = vsel %vm1465_vm8, %v1459_v48, %v1464_v62 }
 0x285   : > { %v1469_v1 = vsel %vm1467_vm9, %v1468_v63, %v1466_v0  ;;  %v1635_v63 = vld [vmem:[#allocation4 + $0x6] sm:$0x3] }
 0x286   : > { %v4511_v2 = vadd.f32 %v1469_v1, %v956_v44 }
 0x288   : > { %v1471_v5 = vsel %vm872_vm3, %v4511_v2, -inf }
 0x289   : > { %1472 = vmax.xlane.f32.xlu0 %v1471_v5  ;;  %v1617_v5 = vld [vmem:[#allocation4 + $0x6] sm:$0x3] }
 0x28a   : > { %v4081_v8 = vpop.eup %4080 }
 0x28b   : > { %v1721_v9 = vmul.f32 %v4081_v8, %v1716_v58 }
 0x28d   : > { %v1723_v13 = vsel %vm1722_vm10, %v1716_v58, %v1721_v9 }
 0x28e   : > { %v1726_v15 = vsel %vm1724_vm11, %v1725_v12, %v1723_v13  ;;  %vm1743_vm11 = vcmask 261312  }
 0x28f   : > { %v1727_v17 = vadd.f32 %v1726_v15, %v956_v44 }
 0x291   : > { %v1728_v18 = vsel %vm872_vm3, %v1727_v17, -inf  ;;  %847 = vrot.lane.b32.xlu1 %v845_v16, %s5028_s4 }
 0x292   : > { %1729 = vmax.xlane.f32.xlu0 %v1728_v18 }
 0x295   : > { %865 = vrot.lane.b32.xlu1 %v863_v19, %s5026_s28 }
 0x299   : > { %1087 = vrot.lane.b32.xlu1 %v1085_v20, %s5049_s5 }
 0x29d   : > { %1105 = vrot.lane.b32.xlu1 %v1103_v21, %s5028_s4 }
 0x2a1   : > { %1123 = vrot.lane.b32.xlu1 %v1121_v22, %s5026_s28 }
 0x2a5   : > { %1344 = vrot.lane.b32.xlu1 %v1342_v23, %s5049_s5 }
 0x2a8   : > { %829 = vrot.lane.b32.xlu0 %v827_v24, %s5049_s5 }
 0x2a9   : > { %1362 = vrot.lane.b32.xlu1 %v1360_v25, %s5028_s4 }
 0x2ad   : > { %1380 = vrot.lane.b32.xlu1 %v1378_v26, %s5026_s28 }
 0x304   : > { %v960_v27 = vpop.xlane.xlu0 %959 }
 0x305   : > { %v961_v28 = vsub.f32 %v957_v49, %v960_v27 }
 0x307   : > { %v962_v29 = vmul.f32 1.442695, %v961_v28 }
 0x309   : > { %4082 = vpow2.f32 %v962_v29 }
 0x30d   : > { %v1216_v30 = vpop.xlane.xlu1 %1215 }
 0x30e   : > { %v1217_v32 = vsub.f32 %v1213_v57, %v1216_v30 }
 0x310   : > { %v1218_v33 = vmul.f32 1.442695, %v1217_v32 }
 0x311   : > { %v848_v35 = vpop.permute.xlu1 %847 }
 0x312   : > { %4084 = vpow2.f32 %v1218_v33  ;;  %850 = vst.msk [vmem:[#allocation7 + $0x4] sm:$0x3] %vm809_vm2, %v848_v35 }
 0x313   : > { %v4083_v36 = vpop.eup %4082 }
 0x314   : > { %v964_v38 = vsel %vm872_vm3, %v4083_v36, 0.0 }
 0x315   : > { %v866_v37 = vpop.permute.xlu1 %865  ;;  %965 = vadd.xlane.f32.xlu1 %v964_v38 }
 0x316   : > { %868 = vst.msk [vmem:[#allocation7 + $0x6] sm:$0x3] %vm809_vm2, %v866_v37  ;;  %v1473_v40 = vpop.xlane.xlu0 %1472 }
 0x317   : > { %v1474_v59 = vsub.f32 %v4511_v2, %v1473_v40 }
 0x319   : > { %v1088_v39 = vpop.permute.xlu1 %1087  ;;  %v1475_v60 = vmul.f32 1.442695, %v1474_v59 }
 0x31c   : > { %v4085_v41 = vpop.eup %4084 }
 0x31d   : > { %v1106_v42 = vpop.permute.xlu1 %1105  ;;  %v1220_v43 = vsel %vm872_vm3, %v4085_v41, 0.0 }
 0x31e   : > { %1221 = vadd.xlane.f32.xlu0 %v1220_v43 }
 0x31f   : > { %v1730_v44 = vpop.xlane.xlu0 %1729 }
 0x320   : > { %v1731_v45 = vsub.f32 %v1727_v17, %v1730_v44 }
 0x321   : > { %v1124_v47 = vpop.permute.xlu1 %1123 }
 0x322   : > { %v1732_v46 = vmul.f32 1.442695, %v1731_v45 }
 0x323   : > { %v830_v48 = vpop.permute.xlu0 %829 }
 0x324   : > { %4086 = vpow2.f32 %v1732_v46  ;;  %832 = vst.msk [vmem:[#allocation7 + $0x2] sm:$0x3] %vm809_vm2, %v830_v48  ;;  %v585_v46 = vld [vmem:[%s5010_s7] sm:$0xff] }
 0x325   : > { %v1345_v49 = vpop.permute.xlu1 %1344  ;;  %4088 = vpow2.f32 %v1475_v60 }
 0x326   : > { %1601 = vrot.lane.b32.xlu1 %v1599_v50, %s5049_s5 }
 0x329   : > { %v1363_v53 = vpop.permute.xlu1 %1362 }
 0x32b   : > { %v871_v52 = vld [vmem:[#allocation7] sm:$0xff] }
 0x32c   : > { %1090 = vst.msk [vmem:[#allocation7 + $0x2] sm:$0x3] %vm809_vm2, %v1088_v39  ;;  %1072 = vst.msk [vmem:[#allocation7] sm:$0x3] %vm809_vm2, %v1071_v51  ;;  %3801 = vmatpush3.msra.mxu1 %v871_v52  ;;  %v587_v51 = vld [vmem:[%s5010_s7 + $0x10] sm:$0xff]  ;;  %v588_v52 = vld [vmem:[%s5010_s7 + $0x18] sm:$0xff] }
 0x32d   : > { %1108 = vst.msk [vmem:[#allocation7 + $0x4] sm:$0x3] %vm809_vm2, %v1106_v42  ;;  %1126 = vst.msk [vmem:[#allocation7 + $0x6] sm:$0x3] %vm809_vm2, %v1124_v47  ;;  %3810 = vmatprep.subr.mxu1 %v4194_v6  ;;  %v1381_v58 = vpop.permute.xlu1 %1380  ;;  %v586_v47 = vld [vmem:[%s5010_s7 + $0x8] sm:$0xff] }
 0x32e   : > { %v4087_v54 = vpop.eup %4086  ;;  %v4607_v48 = vpack.c.bf16 %v586_v47, %v585_v46 }
 0x32f   : > { %v1734_v55 = vsel %vm872_vm3, %v4087_v54, 0.0  ;;  %v4089_v0 = vpop.eup %4088 }
 0x330   : > { %1735 = vadd.xlane.f32.xlu0 %v1734_v55  ;;  %v1477_v1 = vsel %vm872_vm3, %v4089_v0, 0.0  ;;  %3980 = vmatpush3.bf16.msra.mxu0 %v4607_v48 }
 0x331   : > { %3981 = vmatprep.subr.bf16.mxu0 %v4192_v3 }
 0x334   : > { %v1129_v57 = vld [vmem:[#allocation7] sm:$0xff] }
 0x335   : > { %1347 = vst.msk [vmem:[#allocation7 + $0x2] sm:$0x3] %vm809_vm2, %v1345_v49  ;;  %1329 = vst.msk [vmem:[#allocation7] sm:$0x3] %vm809_vm2, %v1328_v56 }
 0x336   : > { %1365 = vst.msk [vmem:[#allocation7 + $0x4] sm:$0x3] %vm809_vm2, %v1363_v53  ;;  %1383 = vst.msk [vmem:[#allocation7 + $0x6] sm:$0x3] %vm809_vm2, %v1381_v58  ;;  %v4619_v53 = vpack.c.bf16 %v588_v52, %v587_v51 }
 0x338   : > { %3983 = vmatpush3.bf16.msra.mxu0 %v4619_v53 }
 0x339   : > { %3990 = vmatprep.subr.bf16.mxu0 %v4192_v3 }
 0x33d   : > { %v1386_v62 = vld [vmem:[#allocation7] sm:$0xff] }
 0x33e   : > { %1586 = vst.msk [vmem:[#allocation7] sm:$0x3] %vm809_vm2, %v1585_v61 }
 0x346   : > { %1637 = vrot.lane.b32.xlu0 %v1635_v63, %s5026_s28  ;;  %s5050_s28 = smov 24  }
 0x34a   : > { %1478 = vadd.xlane.f32.xlu1 %v1477_v1 }
 0x35b   : > { %1619 = vrot.lane.b32.xlu1 %v1617_v5, %s5028_s4 }
 0x3a2   : > { %v966_v8 = vpop.xlane.xlu1 %965 }
 0x3a3   : > { %4090 = vrcp.f32 %v966_v8 }
 0x3a6   : > { %v1602_v2 = vpop.permute.xlu1 %1601 }
 0x3a7   : > { %1604 = vst.msk [vmem:[#allocation7 + $0x2] sm:$0x3] %vm809_vm2, %v1602_v2 }
 0x3ab   : > { %v1222_v9 = vpop.xlane.xlu0 %1221 }
 0x3ac   : > { %4092 = vrcp.f32 %v1222_v9 }
 0x3ad   : > { %v4091_v12 = vpop.eup %4090 }
 0x3ae   : > { %v968_v13 = vmul.f32 %v4091_v12, %v4083_v36 }
 0x3b0   : > { %3803 = vmatmul.mubr.msk.f32.vlgmr.msra.gmra.mrb[6].mxu1 %vm872_vm3, %v968_v13  ;;  %969 = vst.msk [vmem:[%s4551_s30] sm:$0xff] %vm872_vm3, %v968_v13 }
 0x3b1   : > { %3811 = vmatpush3.msra.mxu1 %v1129_v57  ;;  %3812 = vmatprep.mubr.msk.f32.mxu1 %vm4193_vm0, %v4194_v6 }
 0x3b2   : > { %3820 = vmatprep.subr.mxu1 %v4194_v6 }
 0x3b6   : > { %v4093_v15 = vpop.eup %4092 }
 0x3b7   : > { %v4559_v16 = vmul.f32 %v4093_v15, %v4085_v41 }
 0x3b9   : > { %3813 = vmatmul.mubr.msk.f32.vlgmr.msra.gmra.mrb[8].mxu1 %vm872_vm3, %v4559_v16 }
 0x3ba   : > { %3821 = vmatpush3.msra.mxu1 %v1386_v62  ;;  %3822 = vmatprep.mubr.msk.f32.mxu1 %vm4193_vm0, %v4194_v6 }
 0x3bb   : > { %3830 = vmatprep.subr.mxu1 %v4194_v6 }
 0x3bd   : > { %v1736_v17 = vpop.xlane.xlu0 %1735 }
 0x3c1   : > { %v1638_v18 = vpop.permute.xlu0 %1637 }
 0x3c2   : > { %1640 = vst.msk [vmem:[#allocation7 + $0x6] sm:$0x3] %vm809_vm2, %v1638_v18 }
 0x3d7   : > { %v1479_v19 = vpop.xlane.xlu1 %1478 }
 0x3d8   : > { %4094 = vrcp.f32 %v1479_v19 }
 0x3d9   : > { %4096 = vrcp.f32 %v1736_v17 }
 0x3db   : > { %v1620_v20 = vpop.permute.xlu1 %1619 }
 0x3dc   : > { %1622 = vst.msk [vmem:[#allocation7 + $0x4] sm:$0x3] %vm809_vm2, %v1620_v20 }
 0x3e2   : > { %v4095_v21 = vpop.eup %4094 }
 0x3e3   : > { %v4568_v22 = vmul.f32 %v4095_v21, %v4089_v0  ;;  %v1643_v23 = vld [vmem:[#allocation7] sm:$0xff]  ;;  %v4097_v24 = vpop.eup %4096 }
 0x3e4   : > { %v4574_v25 = vmul.f32 %v4097_v24, %v4087_v54 }
 0x3e5   : > { %3823 = vmatmul.mubr.msk.f32.vlgmr.msra.gmra.mrb[10].mxu1 %vm872_vm3, %v4568_v22 }
 0x3e6   : > { %3831 = vmatpush3.msra.mxu1 %v1643_v23  ;;  %3832 = vmatprep.mubr.msk.f32.mxu1 %vm4193_vm0, %v4194_v6 }
 0x3e7   : > { %3984 = vmatprep.subr.bf16.mxu1 %v4192_v3 }
 0x3e9   : > { %3833 = vmatmul.mubr.msk.f32.vlgmr.msra.gmra.mrb[12].mxu1 %vm872_vm3, %v4574_v25 }
 0x3ea   : > { %3986 = vmatpush3.bf16.msra.mxu1 %v4345_v4  ;;  %3854 = vmatprep.mubr.msk.f32.mxu1 %vm4193_vm0, %v4194_v6 }
 0x3eb   : > { %3987 = vmatprep.subr.bf16.mxu1 %v4192_v3 }
 0x3ee   : > { %3989 = vmatpush3.bf16.msra.mxu1 %v4357_v7 }
 0x3ef   : > { %3996 = vmatprep.subr.bf16.mxu1 %v4192_v3 }
 0x483   : > { %v1039_v26 = vpop.f32.mrb[6].mxu1 }
 0x484   : > { %1043 = vst.msk [vmem:[#allocation8] sm:$0xff] %vm872_vm3, %v1039_v26  ;;  %v3804_v27 = vpop.f32.mrb[7].mxu1 }
 0x48b   : > { %v1044_v28 = vld [vmem:[#allocation8] sm:$0x3]  ;;  %v1046_v29 = vld [vmem:[#allocation8 + $0x2] sm:$0x3]  ;;  %v1053_v30 = vld [vmem:[#allocation8 + $0x4] sm:$0x3] }
 0x48c   : > { %v1060_v32 = vld [vmem:[#allocation8 + $0x6] sm:$0x3]  ;;  %v1299_v33 = vpop.f32.mrb[8].mxu1  ;;  %1045 = vst.msk [vmem:[#allocation9] sm:$0x3] %vm809_vm2, %v1044_v28  ;;  %1048 = vrot.lane.b32.xlu1 %v1046_v29, %s5034_s19 }
 0x48d   : > { %1303 = vst.msk [vmem:[#allocation8] sm:$0xff] %vm872_vm3, %v1299_v33  ;;  %1062 = vrot.lane.b32.xlu0 %v1060_v32, %s5030_s20  ;;  %v3814_v4 = vpop.f32.mrb[9].mxu1 }
 0x490   : > { %1055 = vrot.lane.b32.xlu1 %v1053_v30, %s5032_s17 }
 0x494   : > { %v1304_v7 = vld [vmem:[#allocation8] sm:$0x3]  ;;  %v1306_v35 = vld [vmem:[#allocation8 + $0x2] sm:$0x3]  ;;  %v1312_v36 = vld [vmem:[#allocation8 + $0x4] sm:$0x3] }
 0x495   : > { %1305 = vst.msk [vmem:[#allocation9 + $0x2] sm:$0x3] %vm809_vm2, %v1304_v7  ;;  %1308 = vrot.lane.b32.xlu1 %v1306_v35, %s5034_s19  ;;  %v1318_v37 = vld [vmem:[#allocation8 + $0x6] sm:$0x3] }
 0x499   : > { %1314 = vrot.lane.b32.xlu1 %v1312_v36, %s5032_s17 }
 0x49d   : > { %1320 = vrot.lane.b32.xlu1 %v1318_v37, %s5030_s20  ;;  %v4667_v37 = vld [vmem:[%s5011_s8] ss:$0 sm:$0xff] }
 0x4b8   : > { %v1556_v38 = vpop.f32.mrb[10].mxu1 }
 0x4b9   : > { %1560 = vst.msk [vmem:[#allocation8] sm:$0xff] %vm872_vm3, %v1556_v38  ;;  %v3824_v39 = vpop.f32.mrb[11].mxu1 }
 0x4ba   : > { %v4672_v39 = vld [vmem:[%s5012_s9] ss:$0 sm:$0xff] }
 0x4bc   : > { %v1813_v40 = vpop.f32.mrb[12].mxu1 }
 0x4bd   : > { %v3834_v41 = vpop.f32.mrb[13].mxu1 }
 0x4c0   : > { %v1561_v42 = vld [vmem:[#allocation8] sm:$0x3]  ;;  %v1569_v43 = vld [vmem:[#allocation8 + $0x4] sm:$0x3]  ;;  %v1563_v44 = vld [vmem:[#allocation8 + $0x2] sm:$0x3] }
 0x4c1   : > { %1562 = vst.msk [vmem:[#allocation9 + $0x4] sm:$0x3] %vm809_vm2, %v1561_v42  ;;  %1571 = vrot.lane.b32.xlu0 %v1569_v43, %s5032_s17  ;;  %1565 = vrot.lane.b32.xlu1 %v1563_v44, %s5034_s19  ;;  %v1575_v45 = vld [vmem:[#allocation8 + $0x6] sm:$0x3] }
 0x4c2   : > { %1817 = vst.msk [vmem:[#allocation8] sm:$0xff] %vm872_vm3, %v1813_v40 }
 0x4c5   : > { %1577 = vrot.lane.b32.xlu0 %v1575_v45, %s5030_s20  ;;  %s560_s20 = scalar_lea.vmem %s5006_s3, %s4360_s18 }
 0x4c9   : > { %v1820_v49 = vld [vmem:[#allocation8 + $0x2] sm:$0x3]  ;;  %v1818_v50 = vld [vmem:[#allocation8] sm:$0x3]  ;;  %v1826_v54 = vld [vmem:[#allocation8 + $0x4] sm:$0x3] }
 0x4ca   : > { %1822 = vrot.lane.b32.xlu1 %v1820_v49, %s5034_s19  ;;  %1819 = vst.msk [vmem:[#allocation9 + $0x6] sm:$0x3] %vm809_vm2, %v1818_v50  ;;  %v1832_v55 = vld [vmem:[#allocation8 + $0x6] sm:$0x3] }
 0x4ce   : > { %1828 = vrot.lane.b32.xlu1 %v1826_v54, %s5032_s17  ;;  %s3673_s17 = sshll.u32 %s4308_s25, 7 }
 0x4d2   : > { %1834 = vrot.lane.b32.xlu1 %v1832_v55, %s5050_s28 }
 0x4fe   : > { %v1049_v56 = vpop.permute.xlu1 %1048 }
 0x4ff   : > { %1052 = vst.msk [vmem:[#allocation9] sm:$0x3] %vm1051_vm12, %v1049_v56  ;;  %v1063_v58 = vpop.permute.xlu0 %1062 }
 0x502   : > { %v1056_v57 = vpop.permute.xlu1 %1055 }
 0x503   : > { %1059 = vst.msk [vmem:[#allocation9] sm:$0x3] %vm1058_vm13, %v1056_v57 }
 0x504   : > { %1066 = vst.msk [vmem:[#allocation9] sm:$0x3] %vm1065_vm14, %v1063_v58 }
 0x507   : > { %v1309_v59 = vpop.permute.xlu1 %1308 }
 0x508   : > { %1311 = vst.msk [vmem:[#allocation9 + $0x2] sm:$0x3] %vm1051_vm12, %v1309_v59 }
 0x50b   : > { %v1315_v60 = vpop.permute.xlu1 %1314 }
 0x50c   : > { %1317 = vst.msk [vmem:[#allocation9 + $0x2] sm:$0x3] %vm1058_vm13, %v1315_v60 }
 0x50f   : > { %v1321_v61 = vpop.permute.xlu1 %1320 }
 0x510   : > { %1323 = vst.msk [vmem:[#allocation9 + $0x2] sm:$0x3] %vm1065_vm14, %v1321_v61 }
 0x533   : > { %v1572_v62 = vpop.permute.xlu0 %1571  ;;  %v1566_v63 = vpop.permute.xlu1 %1565 }
 0x534   : > { %1568 = vst.msk [vmem:[#allocation9 + $0x4] sm:$0x3] %vm1051_vm12, %v1566_v63 }
 0x535   : > { %1574 = vst.msk [vmem:[#allocation9 + $0x4] sm:$0x3] %vm1058_vm13, %v1572_v62 }
 0x537   : > { %v1578_v0 = vpop.permute.xlu0 %1577 }
 0x538   : > { %1580 = vst.msk [vmem:[#allocation9 + $0x4] sm:$0x3] %vm1065_vm14, %v1578_v0 }
 0x53c   : > { %v1823_v1 = vpop.permute.xlu1 %1822 }
 0x53d   : > { %1825 = vst.msk [vmem:[#allocation9 + $0x6] sm:$0x3] %vm1051_vm12, %v1823_v1 }
 0x540   : > { %v1829_v5 = vpop.permute.xlu1 %1828 }
 0x541   : > { %1831 = vst.msk [vmem:[#allocation9 + $0x6] sm:$0x3] %vm1058_vm13, %v1829_v5 }
 0x544   : > { %v1835_v8 = vpop.permute.xlu1 %1834 }
 0x545   : > { %1837 = vst.msk [vmem:[#allocation9 + $0x6] sm:$0x3] %vm1065_vm14, %v1835_v8 }
 0x54c   : > { %v1838_v2 = vld [vmem:[#allocation9] sm:$0xff] }
 0x54d   : > { %3844 = vmatmul.mubr.msk.f32.vlgmr.msra.gmra.mrb[8].mxu0 %vm591_vm1, %v1838_v2 }
 0x54e   : > { %3992 = vmatpush3.bf16.msra.mxu0 %v4379_v11  ;;  %3865 = vmatprep.mubr.msk.f32.mxu0 %vm4193_vm0, %v4194_v6  ;;  %v570_v11 = vld [vmem:[%s557_s23] sm:$0xff]  ;;  %s4816_s23 = scalar_lea.vmem %s5019_s16, %s4370_s26  ;;  %s5054_s26 = smov 16  }
 0x54f   : > { %3993 = vmatprep.subr.bf16.mxu0 %v4192_v3 }
 0x552   : > { %3995 = vmatpush3.bf16.msra.mxu0 %v4391_v14 }
 0x553   : > { %3879 = vmatprep.subr.mxu0 %v4194_v6 }
 0x555   : > { %3866 = vmatmul.mubr.msk.f32.vlgmr.msra.gmra.mrb[10].mxu0 %vm591_vm1, %v570_v11 }
 0x556   : > { %3881 = vmatprep.mubr.msk.f32.mxu0 %vm4193_vm0, %v4194_v6 }
 0x620   : > { %v1908_v9 = vpop.f32.mrb[8].mxu0 }
 0x621   : > { %v1912_v12 = vadd.f32 %v1908_v9, %v4377_v10  ;;  %v3845_v13 = vpop.f32.mrb[9].mxu0 }
 0x623   : > { %v1913_v15 = vsel %vm591_vm1, %v1912_v12, 0.0 }
 0x624   : > { %1914 = vadd.xlane.f32.xlu0 %v1913_v15 }
 0x628   : > { %v2084_v20 = vpop.f32.mrb[10].mxu0 }
 0x629   : > { %2088 = vst.msk [vmem:[#allocation3] sm:$0xff] %vm591_vm1, %v2084_v20  ;;  %v3867_v21 = vpop.f32.mrb[11].mxu0 }
 0x630   : > { %v2172_v23 = vld [vmem:[#allocation3] sm:$0x3]  ;;  %v2450_v27 = vld [vmem:[#allocation3 + $0x2] sm:$0x3]  ;;  %v2706_v30 = vld [vmem:[#allocation3 + $0x4] sm:$0x3] }
 0x631   : > { %v2190_v24 = vld [vmem:[#allocation3] sm:$0x3]  ;;  %v2432_v29 = vld [vmem:[#allocation3 + $0x2] sm:$0x3]  ;;  %v2688_v33 = vld [vmem:[#allocation3 + $0x4] sm:$0x3] }
 0x632   : > { %v2208_v26 = vld [vmem:[#allocation3] sm:$0x3]  ;;  %v2468_v32 = vld [vmem:[#allocation3 + $0x2] sm:$0x3]  ;;  %v2678_v50 = vld [vmem:[#allocation3 + $0x4] sm:$0x3] }
 0x633   : > { %v2162_v28 = vld [vmem:[#allocation3] sm:$0x3]  ;;  %v2422_v47 = vld [vmem:[#allocation3 + $0x2] sm:$0x3]  ;;  %v2724_v58 = vld [vmem:[#allocation3 + $0x4] sm:$0x3] }
 0x634   : > { %2163 = vst.msk [vmem:[#allocation6] sm:$0x3] %vm809_vm2, %v2162_v28  ;;  %v2944_v63 = vld [vmem:[#allocation3 + $0x6] sm:$0x3] }
 0x635   : > { %v2962_v0 = vld [vmem:[#allocation3 + $0x6] sm:$0x3] }
 0x636   : > { %v2980_v8 = vld [vmem:[#allocation3 + $0x6] sm:$0x3] }
 0x637   : > { %v2934_v20 = vld [vmem:[#allocation3 + $0x6] sm:$0x3] }
 0x63a   : > { %2174 = vrot.lane.b32.xlu0 %v2172_v23, %s5049_s5 }
 0x63e   : > { %2210 = vrot.lane.b32.xlu0 %v2208_v26, %s5053_s29 }
 0x642   : > { %2434 = vrot.lane.b32.xlu0 %v2432_v29, %s5049_s5 }
 0x646   : > { %2470 = vrot.lane.b32.xlu0 %v2468_v32, %s5053_s29 }
 0x64a   : > { %2690 = vrot.lane.b32.xlu0 %v2688_v33, %s5049_s5 }
 0x6b1   : > { %v1915_v14 = vpop.xlane.xlu0 %1914 }
 0x6b2   : > { %v1917_v17 = vmul.f32 0.03125, %v1915_v14 }
 0x6b4   : > { %v1918_v18 = vsub.f32 %v1912_v12, %v1917_v17 }
 0x6b5   : > { %v2175_v42 = vpop.permute.xlu0 %2174 }
 0x6b6   : > { %v1919_v19 = vmul.f32 %v1918_v18, %v1918_v18  ;;  %2177 = vst.msk [vmem:[#allocation6 + $0x2] sm:$0x3] %vm809_vm2, %v2175_v42 }
 0x6b8   : > { %v1920_v10 = vsel %vm591_vm1, %v1919_v19, 0.0 }
 0x6b9   : > { %1921 = vadd.xlane.f32.xlu1 %v1920_v10 }
 0x6ca   : > { %2192 = vrot.lane.b32.xlu1 %v2190_v24, %s5052_s27 }
 0x6ce   : > { %2452 = vrot.lane.b32.xlu1 %v2450_v27, %s5052_s27 }
 0x6d2   : > { %2708 = vrot.lane.b32.xlu1 %v2706_v30, %s5052_s27 }
 0x746   : > { %v1922_v4 = vpop.xlane.xlu1 %1921 }
 0x747   : > { %v1923_v7 = vmul.f32 0.03125, %v1922_v4 }
 0x749   : > { %v1924_v35 = vadd.f32 1e-06, %v1923_v7 }
 0x74a   : > { %v2193_v43 = vpop.permute.xlu1 %2192 }
 0x74b   : > { %4098 = vrsqrt.f32 %v1924_v35  ;;  %2195 = vst.msk [vmem:[#allocation6 + $0x4] sm:$0x3] %vm809_vm2, %v2193_v43 }
 0x74e   : > { %v2453_v45 = vpop.permute.xlu1 %2452 }
 0x752   : > { %v2709_v51 = vpop.permute.xlu1 %2708 }
 0x755   : > { %v4099_v36 = vpop.eup %4098 }
 0x756   : > { %v1926_v38 = vmul.f32 %v4099_v36, %v1918_v18 }
 0x758   : > { %v1933_v40 = vmul.f32 %v4667_v37, %v1926_v38 }
 0x75a   : > { %v4676_v41 = vadd.f32 %v4672_v39, %v1933_v40 }
 0x75c   : > { %3855 = vmatmul.mubr.msk.f32.vlgmr.msra.gmra.mrb[14].mxu1 %vm591_vm1, %v4676_v41 }
 0x75d   : > { %3998 = vmatpush3.bf16.msra.mxu1 %v4420_v31  ;;  %3876 = vmatprep.mubr.msk.f32.mxu1 %vm4193_vm0, %v4194_v6  ;;  %v2211_v31 = vpop.permute.xlu0 %2210 }
 0x75e   : > { %3999 = vmatprep.subr.bf16.mxu1 %v4192_v3  ;;  %2213 = vst.msk [vmem:[#allocation6 + $0x6] sm:$0x3] %vm809_vm2, %v2211_v31 }
 0x761   : > { %4001 = vmatpush3.bf16.msra.mxu1 %v4429_v34  ;;  %v2435_v44 = vpop.permute.xlu0 %2434 }
 0x762   : > { %3884 = vmatprep.subr.mxu1 %v4194_v6 }
 0x764   : > { %3877 = vmatmul.mubr.msk.f32.vlgmr.msra.gmra.mrb[16].mxu1 %vm591_vm1, %v570_v11 }
 0x765   : > { %3886 = vmatprep.mubr.msk.f32.mxu1 %vm4193_vm0, %v4194_v6  ;;  %v2221_v46 = vld [vmem:[#allocation6] sm:$0xff]  ;;  %v2471_v34 = vpop.permute.xlu0 %2470 }
 0x766   : > { %2437 = vst.msk [vmem:[#allocation6 + $0x2] sm:$0x3] %vm809_vm2, %v2435_v44  ;;  %2455 = vst.msk [vmem:[#allocation6 + $0x4] sm:$0x3] %vm809_vm2, %v2453_v45  ;;  %3880 = vmatpush3.xpose.msk.msra.mxu0 %vm872_vm3, %v2221_v46 }
 0x767   : > { %2473 = vst.msk [vmem:[#allocation6 + $0x6] sm:$0x3] %vm809_vm2, %v2471_v34  ;;  %3889 = vmatprep.subr.mxu0 %v4194_v6  ;;  %2423 = vst.msk [vmem:[#allocation6] sm:$0x3] %vm809_vm2, %v2422_v47  ;;  %v2308_v47 = vlaneseq }
 0x769   : > { %v2691_v52 = vpop.permute.xlu0 %2690 }
 0x76e   : > { %v4698_v49 = vld [vmem:[#allocation6] sm:$0xff] }
 0x76f   : > { %2679 = vst.msk [vmem:[#allocation6] sm:$0x3] %vm809_vm2, %v2678_v50  ;;  %2711 = vst.msk [vmem:[#allocation6 + $0x4] sm:$0x3] %vm809_vm2, %v2709_v51  ;;  %v572_v50 = vld [vmem:[%s560_s20] sm:$0x1] }
 0x770   : > { %2693 = vst.msk [vmem:[#allocation6 + $0x2] sm:$0x3] %vm809_vm2, %v2691_v52 }
 0x82f   : > { %v2010_v54 = vpop.f32.mrb[14].mxu1 }
 0x830   : > { %2014 = vst.msk [vmem:[#allocation2] sm:$0xff] %vm591_vm1, %v2010_v54  ;;  %v3856_v55 = vpop.f32.mrb[15].mxu1 }
 0x837   : > { %v2184_v56 = vld [vmem:[#allocation2] sm:$0x3]  ;;  %v2444_v61 = vld [vmem:[#allocation2 + $0x2] sm:$0x3]  ;;  %v2700_v1 = vld [vmem:[#allocation2 + $0x4] sm:$0x3] }
 0x838   : > { %v2166_v57 = vld [vmem:[#allocation2] sm:$0x3]  ;;  %2186 = vrot.lane.b32.xlu0 %v2184_v56, %s5052_s27  ;;  %v2426_v62 = vld [vmem:[#allocation2 + $0x2] sm:$0x3]  ;;  %v2682_v2 = vld [vmem:[#allocation2 + $0x4] sm:$0x3] }
 0x839   : > { %2168 = vrot.lane.b32.xlu1 %v2166_v57, %s5049_s5  ;;  %v2202_v59 = vld [vmem:[#allocation2] sm:$0x3]  ;;  %v2462_v5 = vld [vmem:[#allocation2 + $0x2] sm:$0x3]  ;;  %v2956_v9 = vld [vmem:[#allocation2 + $0x6] sm:$0x3] }
 0x83a   : > { %v2160_v60 = vld [vmem:[#allocation2] sm:$0x3]  ;;  %v2718_v12 = vld [vmem:[#allocation2 + $0x4] sm:$0x3]  ;;  %v2938_v13 = vld [vmem:[#allocation2 + $0x6] sm:$0x3] }
 0x83b   : > { %2161 = vst.msk [vmem:[#allocation5] sm:$0x3] %vm809_vm2, %v2160_v60  ;;  %v2974_v15 = vld [vmem:[#allocation2 + $0x6] sm:$0x3]  ;;  %v2420_v26 = vld [vmem:[#allocation2 + $0x2] sm:$0x3] }
 0x83c   : > { %2726 = vrot.lane.b32.xlu0 %v2724_v58, %s5053_s29  ;;  %v2676_v7 = vld [vmem:[#allocation2 + $0x4] sm:$0x3]  ;;  %v2932_v42 = vld [vmem:[#allocation2 + $0x6] sm:$0x3]  ;;  %v2155_v44 = vpop.f32.mrb[16].mxu1 }
 0x83d   : > { %2204 = vrot.lane.b32.xlu1 %v2202_v59, %s5053_s29  ;;  %2159 = vst.msk [vmem:[#allocation4] sm:$0xff] %vm591_vm1, %v2155_v44  ;;  %v3878_v45 = vpop.f32.mrb[17].mxu1 }
 0x840   : > { %2446 = vrot.lane.b32.xlu0 %v2444_v61, %s5052_s27 }
 0x841   : > { %2428 = vrot.lane.b32.xlu1 %v2426_v62, %s5049_s5 }
 0x844   : > { %2946 = vrot.lane.b32.xlu0 %v2944_v63, %s5049_s5  ;;  %v2164_v46 = vld [vmem:[#allocation4] sm:$0x3] }
 0x845   : > { %2964 = vrot.lane.b32.xlu1 %v2962_v0, %s5052_s27  ;;  %2165 = vst.msk [vmem:[#allocation7] sm:$0x3] %vm809_vm2, %v2164_v46 }
 0x848   : > { %2702 = vrot.lane.b32.xlu0 %v2700_v1, %s5052_s27 }
 0x849   : > { %2464 = vrot.lane.b32.xlu1 %v2462_v5, %s5053_s29 }
 0x84c   : > { %2982 = vrot.lane.b32.xlu0 %v2980_v8, %s5053_s29 }
 0x84d   : > { %2684 = vrot.lane.b32.xlu1 %v2682_v2, %s5049_s5 }
 0x850   : > { %2958 = vrot.lane.b32.xlu0 %v2956_v9, %s5052_s27 }
 0x851   : > { %2720 = vrot.lane.b32.xlu1 %v2718_v12, %s5053_s29 }
 0x855   : > { %2940 = vrot.lane.b32.xlu1 %v2938_v13, %s5049_s5 }
 0x859   : > { %2976 = vrot.lane.b32.xlu1 %v2974_v15, %s5053_s29 }
 0x8aa   : > { %v2187_v11 = vpop.permute.xlu0 %2186 }
 0x8ab   : > { %v2169_v14 = vpop.permute.xlu1 %2168  ;;  %2189 = vst.msk [vmem:[#allocation5 + $0x4] sm:$0x3] %vm809_vm2, %v2187_v11 }
 0x8ac   : > { %2171 = vst.msk [vmem:[#allocation5 + $0x2] sm:$0x3] %vm809_vm2, %v2169_v14 }
 0x8ae   : > { %v2727_v17 = vpop.permute.xlu0 %2726 }
 0x8af   : > { %v2205_v18 = vpop.permute.xlu1 %2204  ;;  %2729 = vst.msk [vmem:[#allocation6 + $0x6] sm:$0x3] %vm809_vm2, %v2727_v17 }
 0x8b0   : > { %2207 = vst.msk [vmem:[#allocation5 + $0x6] sm:$0x3] %vm809_vm2, %v2205_v18 }
 0x8b2   : > { %v2447_v19 = vpop.permute.xlu0 %2446 }
 0x8b3   : > { %v2429_v10 = vpop.permute.xlu1 %2428 }
 0x8b6   : > { %v2947_v23 = vpop.permute.xlu0 %2946  ;;  %v2737_v27 = vld [vmem:[#allocation6] sm:$0xff] }
 0x8b7   : > { %v2220_v21 = vld [vmem:[#allocation5] sm:$0xff]  ;;  %v2965_v24 = vpop.permute.xlu1 %2964  ;;  %2935 = vst.msk [vmem:[#allocation6] sm:$0x3] %vm809_vm2, %v2934_v20  ;;  %2949 = vst.msk [vmem:[#allocation6 + $0x2] sm:$0x3] %vm809_vm2, %v2947_v23 }
 0x8b8   : > { %2449 = vst.msk [vmem:[#allocation5 + $0x4] sm:$0x3] %vm809_vm2, %v2447_v19  ;;  %2431 = vst.msk [vmem:[#allocation5 + $0x2] sm:$0x3] %vm809_vm2, %v2429_v10  ;;  %3882 = vmatmul.mubr.msk.f32.vlgmr.msra.gmra.mrb[12].mxu0 %vm872_vm3, %v2220_v21  ;;  %v2196_v21 = vld [vmem:[#allocation4] sm:$0x3] }
 0x8b9   : > { %2421 = vst.msk [vmem:[#allocation5] sm:$0x3] %vm809_vm2, %v2420_v26  ;;  %2967 = vst.msk [vmem:[#allocation6 + $0x4] sm:$0x3] %vm809_vm2, %v2965_v24  ;;  %3890 = vmatpush3.xpose.msk.msra.mxu0 %vm872_vm3, %v4698_v49  ;;  %3891 = vmatprep.mubr.msk.f32.mxu0 %vm4193_vm0, %v4194_v6  ;;  %v2309_v49 = vshrl.u32 %v2308_v47, 7 }
 0x8ba   : > { %3899 = vmatprep.subr.mxu0 %v4194_v6  ;;  %v2703_v28 = vpop.permute.xlu0 %2702 }
 0x8bb   : > { %v2465_v29 = vpop.permute.xlu1 %2464  ;;  %v2310_v51 = vsub.s32 0, %v2309_v49 }
 0x8bc   : > { %2467 = vst.msk [vmem:[#allocation5 + $0x6] sm:$0x3] %vm809_vm2, %v2465_v29  ;;  %v2438_v29 = vld [vmem:[#allocation4 + $0x2] sm:$0x3] }
 0x8be   : > { %v2983_v30 = vpop.permute.xlu0 %2982 }
 0x8bf   : > { %v2685_v32 = vpop.permute.xlu1 %2684  ;;  %2985 = vst.msk [vmem:[#allocation6 + $0x6] sm:$0x3] %vm809_vm2, %v2983_v30 }
 0x8c2   : > { %v2959_v36 = vpop.permute.xlu0 %2958 }
 0x8c3   : > { %v2480_v33 = vld [vmem:[#allocation5] sm:$0xff]  ;;  %v2721_v4 = vpop.permute.xlu1 %2720 }
 0x8c4   : > { %2687 = vst.msk [vmem:[#allocation5 + $0x2] sm:$0x3] %vm809_vm2, %v2685_v32  ;;  %2705 = vst.msk [vmem:[#allocation5 + $0x4] sm:$0x3] %vm809_vm2, %v2703_v28  ;;  %3892 = vmatmul.mubr.msk.f32.vlgmr.msra.gmra.mrb[14].mxu0 %vm872_vm3, %v2480_v33  ;;  %v2178_v32 = vld [vmem:[#allocation4] sm:$0x3] }
 0x8c5   : > { %2723 = vst.msk [vmem:[#allocation5 + $0x6] sm:$0x3] %vm809_vm2, %v2721_v4  ;;  %2677 = vst.msk [vmem:[#allocation5] sm:$0x3] %vm809_vm2, %v2676_v7  ;;  %3900 = vmatpush3.xpose.msk.msra.mxu0 %vm872_vm3, %v2737_v27  ;;  %3901 = vmatprep.mubr.msk.f32.mxu0 %vm4193_vm0, %v4194_v6  ;;  %v2456_v33 = vld [vmem:[#allocation4 + $0x2] sm:$0x3] }
 0x8c6   : > { %3909 = vmatprep.subr.mxu0 %v4194_v6  ;;  %v2993_v43 = vld [vmem:[#allocation6] sm:$0xff]  ;;  %v2214_v4 = vld [vmem:[#allocation4] sm:$0x3]  ;;  %v2474_v7 = vld [vmem:[#allocation4 + $0x2] sm:$0x3] }
 0x8c7   : > { %v2941_v35 = vpop.permute.xlu1 %2940 }
 0x8cb   : > { %v2977_v38 = vpop.permute.xlu1 %2976 }
 0x8cc   : > { %v2736_v40 = vld [vmem:[#allocation5] sm:$0xff] }
 0x8cd   : > { %3902 = vmatmul.mubr.msk.f32.vlgmr.msra.gmra.mrb[16].mxu0 %vm872_vm3, %v2736_v40  ;;  %2933 = vst.msk [vmem:[#allocation5] sm:$0x3] %vm809_vm2, %v2932_v42  ;;  %2943 = vst.msk [vmem:[#allocation5 + $0x2] sm:$0x3] %vm809_vm2, %v2941_v35  ;;  %v2694_v35 = vld [vmem:[#allocation4 + $0x4] sm:$0x3] }
 0x8ce   : > { %2961 = vst.msk [vmem:[#allocation5 + $0x4] sm:$0x3] %vm809_vm2, %v2959_v36  ;;  %2979 = vst.msk [vmem:[#allocation5 + $0x6] sm:$0x3] %vm809_vm2, %v2977_v38  ;;  %3910 = vmatpush3.xpose.msk.msra.mxu0 %vm872_vm3, %v2993_v43  ;;  %3911 = vmatprep.mubr.msk.f32.mxu0 %vm4193_vm0, %v4194_v6  ;;  %v2712_v36 = vld [vmem:[#allocation4 + $0x4] sm:$0x3] }
 0x8cf   : > { %4002 = vmatprep.subr.bf16.mxu0 %v4192_v3  ;;  %v2730_v42 = vld [vmem:[#allocation4 + $0x4] sm:$0x3] }
 0x8d5   : > { %v2992_v31 = vld [vmem:[#allocation5] sm:$0xff] }
 0x8d6   : > { %3912 = vmatmul.mubr.msk.f32.vlgmr.msra.gmra.mrb[18].mxu0 %vm872_vm3, %v2992_v31 }
 0x8d7   : > { %4004 = vmatpush3.bf16.msra.mxu0 %v4607_v48  ;;  %3927 = vmatprep.mubr.msk.f32.mxu0 %vm4193_vm0, %v4194_v6 }
 0x8d8   : > { %4005 = vmatprep.subr.bf16.mxu0 %v4192_v3 }
 0x8db   : > { %4007 = vmatpush3.bf16.msra.mxu0 %v4619_v53  ;;  %v2306_v53 = vmul.f32 -1e+09, %v572_v50 }
 0x8dc   : > { %4014 = vmatprep.subr.bf16.mxu0 %v4192_v3 }
 0x8dd   : > { %v2311_v56 = vrot.slane %v2306_v53, %v2310_v51 }
 0x98b   : > { %v2295_v34 = vpop.f32.mrb[12].mxu0 }
 0x98c   : > { %4100 = vrsqrt.f32 %v2295_v34  ;;  %v3883_v48 = vpop.f32.mrb[13].mxu0  ;;  %vm2301_vm15 = vcmp.eq.f32.partialorder %v2295_v34, inf  ;;  %v2304_v58 = vand.u32 2147483648, %v2295_v34  ;;  %vm2303_vm4 = vcmp.eq.f32.partialorder %v2295_v34, 0.0 }
 0x996   : > { %v4101_v52 = vpop.eup %4100 }
 0x997   : > { %v2555_v54 = vpop.f32.mrb[14].mxu0  ;;  %v2300_v55 = vmul.f32 %v4101_v52, %v2295_v34 }
 0x998   : > { %4102 = vrsqrt.f32 %v2555_v54  ;;  %v3893_v57 = vpop.f32.mrb[15].mxu0  ;;  %vm2561_vm5 = vcmp.eq.f32.partialorder %v2555_v54, inf  ;;  %v2564_v8 = vand.u32 2147483648, %v2555_v54  ;;  %vm2563_vm6 = vcmp.eq.f32.partialorder %v2555_v54, 0.0 }
 0x999   : > { %v2302_v59 = vsel %vm2301_vm15, %v2295_v34, %v2300_v55  ;;  %v2424_v57 = vld [vmem:[#allocation4 + $0x2] sm:$0x3] }
 0x99a   : > { %v2305_v60 = vsel %vm2303_vm4, %v2304_v58, %v2302_v59 }
 0x99b   : > { %v2313_v61 = vadd.f32 %v2311_v56, %v2305_v60 }
 0x99d   : > { %v2314_v62 = vsel %vm872_vm3, %v2313_v61, -inf }
 0x99e   : > { %2315 = vmax.xlane.f32.xlu0 %v2314_v62  ;;  %v2680_v62 = vld [vmem:[#allocation4 + $0x4] sm:$0x3] }
 0x9a0   : > { %v2811_v63 = vpop.f32.mrb[16].mxu0 }
 0x9a1   : > { %4104 = vrsqrt.f32 %v2811_v63  ;;  %v3903_v0 = vpop.f32.mrb[17].mxu0  ;;  %vm2817_vm7 = vcmp.eq.f32.partialorder %v2811_v63, inf  ;;  %v2820_v18 = vand.u32 2147483648, %v2811_v63  ;;  %vm2819_vm8 = vcmp.eq.f32.partialorder %v2811_v63, 0.0 }
 0x9a2   : > { %v4103_v1 = vpop.eup %4102 }
 0x9a3   : > { %v2560_v5 = vmul.f32 %v4103_v1, %v2555_v54 }
 0x9a5   : > { %v2562_v2 = vsel %vm2561_vm5, %v2555_v54, %v2560_v5 }
 0x9a6   : > { %v2565_v9 = vsel %vm2563_vm6, %v2564_v8, %v2562_v2 }
 0x9a7   : > { %v2566_v13 = vadd.f32 %v2565_v9, %v2311_v56 }
 0x9a9   : > { %v3067_v12 = vpop.f32.mrb[18].mxu0  ;;  %v2567_v11 = vsel %vm872_vm3, %v2566_v13, -inf }
 0x9aa   : > { %4106 = vrsqrt.f32 %v3067_v12  ;;  %v3913_v15 = vpop.f32.mrb[19].mxu0  ;;  %2568 = vmax.xlane.f32.xlu1 %v2567_v11  ;;  %vm3073_vm9 = vcmp.eq.f32.partialorder %v3067_v12, inf  ;;  %v3076_v26 = vand.u32 2147483648, %v3067_v12  ;;  %vm3075_vm10 = vcmp.eq.f32.partialorder %v3067_v12, 0.0 }
 0x9ab   : > { %v4105_v14 = vpop.eup %4104 }
 0x9ac   : > { %v2816_v17 = vmul.f32 %v4105_v14, %v2811_v63  ;;  %v2936_v14 = vld [vmem:[#allocation4 + $0x6] sm:$0x3] }
 0x9ae   : > { %v2818_v19 = vsel %vm2817_vm7, %v2811_v63, %v2816_v17  ;;  %v2950_v63 = vld [vmem:[#allocation4 + $0x6] sm:$0x3] }
 0x9af   : > { %v2821_v10 = vsel %vm2819_vm8, %v2820_v18, %v2818_v19  ;;  %v2986_v19 = vld [vmem:[#allocation4 + $0x6] sm:$0x3] }
 0x9b0   : > { %v4772_v20 = vadd.f32 %v2821_v10, %v2311_v56  ;;  %v2968_v10 = vld [vmem:[#allocation4 + $0x6] sm:$0x3] }
 0x9b2   : > { %v2823_v38 = vsel %vm872_vm3, %v4772_v20, -inf }
 0x9b4   : > { %v4107_v23 = vpop.eup %4106  ;;  %2198 = vrot.lane.b32.xlu0 %v2196_v21, %s5052_s27 }
 0x9b5   : > { %v3072_v24 = vmul.f32 %v4107_v23, %v3067_v12 }
 0x9b7   : > { %v3074_v27 = vsel %vm3073_vm9, %v3067_v12, %v3072_v24 }
 0x9b8   : > { %v3077_v28 = vsel %vm3075_vm10, %v3076_v26, %v3074_v27  ;;  %2440 = vrot.lane.b32.xlu0 %v2438_v29, %s5049_s5 }
 0x9b9   : > { %v4775_v30 = vadd.f32 %v3077_v28, %v2311_v56 }
 0x9bb   : > { %2180 = vrot.lane.b32.xlu1 %v2178_v32, %s5049_s5  ;;  %v3079_v40 = vsel %vm872_vm3, %v4775_v30, -inf }
 0x9bc   : > { %2458 = vrot.lane.b32.xlu0 %v2456_v33, %s5052_s27 }
 0x9bf   : > { %2216 = vrot.lane.b32.xlu1 %v2214_v4, %s5053_s29 }
 0x9c0   : > { %2476 = vrot.lane.b32.xlu0 %v2474_v7, %s5053_s29 }
 0x9c4   : > { %2696 = vrot.lane.b32.xlu0 %v2694_v35, %s5049_s5 }
 0x9c8   : > { %2714 = vrot.lane.b32.xlu0 %v2712_v36, %s5052_s27 }
 0x9e7   : > { %2824 = vmax.xlane.f32.xlu0 %v2823_v38 }
 0x9eb   : > { %3080 = vmax.xlane.f32.xlu0 %v3079_v40 }
 0xa01   : > { %2732 = vrot.lane.b32.xlu0 %v2730_v42, %s5053_s29 }
 0xa2b   : > { %v2316_v43 = vpop.xlane.xlu0 %2315 }
 0xa2c   : > { %v2317_v31 = vsub.f32 %v2313_v61, %v2316_v43 }
 0xa2e   : > { %v2318_v44 = vmul.f32 1.442695, %v2317_v31 }
 0xa2f   : > { %v2199_v45 = vpop.permute.xlu0 %2198 }
 0xa30   : > { %4108 = vpow2.f32 %v2318_v44  ;;  %2201 = vst.msk [vmem:[#allocation7 + $0x4] sm:$0x3] %vm809_vm2, %v2199_v45 }
 0xa33   : > { %v2441_v46 = vpop.permute.xlu0 %2440 }
 0xa37   : > { %v2569_v34 = vpop.xlane.xlu1 %2568  ;;  %v2459_v51 = vpop.permute.xlu0 %2458 }
 0xa38   : > { %v2570_v47 = vsub.f32 %v2566_v13, %v2569_v34 }
 0xa3a   : > { %v4109_v48 = vpop.eup %4108  ;;  %v2571_v49 = vmul.f32 1.442695, %v2570_v47 }
 0xa3b   : > { %v2181_v50 = vpop.permute.xlu1 %2180  ;;  %v2320_v53 = vsel %vm872_vm3, %v4109_v48, 0.0  ;;  %v2477_v54 = vpop.permute.xlu0 %2476 }
 0xa3c   : > { %4110 = vpow2.f32 %v2571_v49  ;;  %2183 = vst.msk [vmem:[#allocation7 + $0x2] sm:$0x3] %vm809_vm2, %v2181_v50  ;;  %2321 = vadd.xlane.f32.xlu0 %v2320_v53 }
 0xa3f   : > { %v2217_v52 = vpop.permute.xlu1 %2216  ;;  %v2697_v59 = vpop.permute.xlu0 %2696 }
 0xa40   : > { %2219 = vst.msk [vmem:[#allocation7 + $0x6] sm:$0x3] %vm809_vm2, %v2217_v52 }
 0xa43   : > { %v2715_v60 = vpop.permute.xlu0 %2714 }
 0xa46   : > { %v4111_v55 = vpop.eup %4110 }
 0xa47   : > { %v2222_v56 = vld [vmem:[#allocation7] sm:$0xff]  ;;  %v2573_v58 = vsel %vm872_vm3, %v4111_v55, 0.0 }
 0xa48   : > { %2479 = vst.msk [vmem:[#allocation7 + $0x6] sm:$0x3] %vm809_vm2, %v2477_v54  ;;  %2443 = vst.msk [vmem:[#allocation7 + $0x2] sm:$0x3] %vm809_vm2, %v2441_v46  ;;  %2574 = vadd.xlane.f32.xlu1 %v2573_v58  ;;  %3885 = vmatpush3.msra.mxu1 %v2222_v56 }
 0xa49   : > { %2461 = vst.msk [vmem:[#allocation7 + $0x4] sm:$0x3] %vm809_vm2, %v2459_v51  ;;  %2425 = vst.msk [vmem:[#allocation7] sm:$0x3] %vm809_vm2, %v2424_v57  ;;  %3894 = vmatprep.subr.mxu1 %v4194_v6 }
 0xa50   : > { %v2482_v61 = vld [vmem:[#allocation7] sm:$0xff] }
 0xa51   : > { %2717 = vst.msk [vmem:[#allocation7 + $0x4] sm:$0x3] %vm809_vm2, %v2715_v60  ;;  %2699 = vst.msk [vmem:[#allocation7 + $0x2] sm:$0x3] %vm809_vm2, %v2697_v59 }
 0xa52   : > { %2681 = vst.msk [vmem:[#allocation7] sm:$0x3] %vm809_vm2, %v2680_v62  ;;  %2952 = vrot.lane.b32.xlu0 %v2950_v63, %s5049_s5  ;;  %s4132_s5 = sshll.u32 %s4201_s1, 4  ;;  %s4133_s5 = int_to_ptr.vmem [resolvable:$false] %s4132_s5 }
 0xa74   : > { %v2825_v0 = vpop.xlane.xlu0 %2824 }
 0xa75   : > { %v2826_v1 = vsub.f32 %v4772_v20, %v2825_v0 }
 0xa77   : > { %v2827_v5 = vmul.f32 1.442695, %v2826_v1 }
 0xa78   : > { %v3081_v8 = vpop.xlane.xlu0 %3080 }
 0xa79   : > { %4112 = vpow2.f32 %v2827_v5  ;;  %v3082_v2 = vsub.f32 %v4775_v30, %v3081_v8 }
 0xa7b   : > { %v3083_v9 = vmul.f32 1.442695, %v3082_v2 }
 0xa7c   : > { %v2733_v12 = vpop.permute.xlu0 %2732 }
 0xa7d   : > { %4114 = vpow2.f32 %v3083_v9  ;;  %2735 = vst.msk [vmem:[#allocation7 + $0x6] sm:$0x3] %vm809_vm2, %v2733_v12 }
 0xa83   : > { %v4113_v13 = vpop.eup %4112 }
 0xa84   : > { %v2829_v15 = vsel %vm872_vm3, %v4113_v13, 0.0  ;;  %v2738_v11 = vld [vmem:[#allocation7] sm:$0xff] }
 0xa85   : > { %2830 = vadd.xlane.f32.xlu0 %v2829_v15  ;;  %2937 = vst.msk [vmem:[#allocation7] sm:$0x3] %vm809_vm2, %v2936_v14 }
 0xa87   : > { %v4115_v17 = vpop.eup %4114 }
 0xa88   : > { %v3085_v18 = vsel %vm872_vm3, %v4115_v17, 0.0 }
 0xa89   : > { %3086 = vadd.xlane.f32.xlu1 %v3085_v18 }
 0xa9a   : > { %2988 = vrot.lane.b32.xlu1 %v2986_v19, %s5053_s29  ;;  %s5055_s29 = smov 8  }
 0xa9b   : > { %2970 = vrot.lane.b32.xlu0 %v2968_v10, %s5052_s27  ;;  %s4134_s27 = scalar_lea.vmem %s4133_s5, 256 }
 0xac9   : > { %v2322_v20 = vpop.xlane.xlu0 %2321 }
 0xaca   : > { %4116 = vrcp.f32 %v2322_v20 }
 0xacd   : > { %v2953_v21 = vpop.permute.xlu0 %2952 }
 0xace   : > { %2955 = vst.msk [vmem:[#allocation7 + $0x2] sm:$0x3] %vm809_vm2, %v2953_v21 }
 0xad4   : > { %v4117_v23 = vpop.eup %4116 }
 0xad5   : > { %v2324_v24 = vmul.f32 %v4117_v23, %v4109_v48  ;;  %v2575_v26 = vpop.xlane.xlu1 %2574 }
 0xad6   : > { %4118 = vrcp.f32 %v2575_v26 }
 0xad7   : > { %3887 = vmatmul.mubr.msk.f32.vlgmr.msra.gmra.mrb[18].mxu1 %vm872_vm3, %v2324_v24  ;;  %2325 = vst.msk [vmem:[%s4816_s23] sm:$0xff] %vm872_vm3, %v2324_v24 }
 0xad8   : > { %3895 = vmatpush3.msra.mxu1 %v2482_v61  ;;  %3896 = vmatprep.mubr.msk.f32.mxu1 %vm4193_vm0, %v4194_v6 }
 0xad9   : > { %3904 = vmatprep.subr.mxu1 %v4194_v6 }
 0xae0   : > { %v4119_v27 = vpop.eup %4118 }
 0xae1   : > { %v4824_v28 = vmul.f32 %v4119_v27, %v4111_v55 }
 0xae3   : > { %3897 = vmatmul.mubr.msk.f32.vlgmr.msra.gmra.mrb[20].mxu1 %vm872_vm3, %v4824_v28 }
 0xae4   : > { %3905 = vmatpush3.msra.mxu1 %v2738_v11  ;;  %3906 = vmatprep.mubr.msk.f32.mxu1 %vm4193_vm0, %v4194_v6 }
 0xae5   : > { %3914 = vmatprep.subr.mxu1 %v4194_v6 }
 0xb12   : > { %v2831_v29 = vpop.xlane.xlu0 %2830 }
 0xb13   : > { %4120 = vrcp.f32 %v2831_v29  ;;  %v3280_v29 = vld [vmem:[%s5013_s10 + $0x10] sm:$0xff] }
 0xb16   : > { %v2971_v30 = vpop.permute.xlu0 %2970  ;;  %v3087_v32 = vpop.xlane.xlu1 %3086 }
 0xb17   : > { %2973 = vst.msk [vmem:[#allocation7 + $0x4] sm:$0x3] %vm809_vm2, %v2971_v30  ;;  %4122 = vrcp.f32 %v3087_v32  ;;  %v3281_v32 = vld [vmem:[%s5013_s10 + $0x18] sm:$0xff] }
 0xb1a   : > { %v2989_v33 = vpop.permute.xlu1 %2988 }
 0xb1b   : > { %2991 = vst.msk [vmem:[#allocation7 + $0x6] sm:$0x3] %vm809_vm2, %v2989_v33  ;;  %v4012_v33 = vpack.c.bf16 %v3281_v32, %v3280_v29 }
 0xb1d   : > { %v4121_v4 = vpop.eup %4120 }
 0xb1e   : > { %v4833_v7 = vmul.f32 %v4121_v4, %v4113_v13  ;;  %v3364_v4 = vld [vmem:[%s5015_s12 + $0x8] sm:$0xff] }
 0xb20   : > { %3907 = vmatmul.mubr.msk.f32.vlgmr.msra.gmra.mrb[22].mxu1 %vm872_vm3, %v4833_v7 }
 0xb21   : > { %v4123_v35 = vpop.eup %4122  ;;  %3916 = vmatprep.mubr.msk.f32.mxu1 %vm4193_vm0, %v4194_v6 }
 0xb22   : > { %v4839_v36 = vmul.f32 %v4123_v35, %v4115_v17  ;;  %v2994_v38 = vld [vmem:[#allocation7] sm:$0xff]  ;;  %v3365_v35 = vld [vmem:[%s5015_s12 + $0x10] sm:$0xff] }
 0xb23   : > { %3915 = vmatpush3.msra.mxu1 %v2994_v38 }
 0xb24   : > { %3917 = vmatmul.mubr.msk.f32.vlgmr.msra.gmra.mrb[24].mxu1 %vm872_vm3, %v4839_v36  ;;  %4008 = vmatprep.subr.bf16.mxu1 %v4192_v3 }
 0xb25   : > { %3938 = vmatprep.mubr.msk.f32.mxu1 %vm4193_vm0, %v4194_v6 }
 0xbaa   : > { %v2395_v40 = vpop.f32.mrb[18].mxu1 }
 0xbab   : > { %2399 = vst.msk [vmem:[#allocation8] sm:$0xff] %vm872_vm3, %v2395_v40  ;;  %v3888_v42 = vpop.f32.mrb[19].mxu1  ;;  %v3366_v40 = vld [vmem:[%s5015_s12 + $0x18] sm:$0xff] }
 0xbac   : > { %v4018_v42 = vpack.c.bf16 %v3366_v40, %v3365_v35 }
 0xbb2   : > { %v2400_v43 = vld [vmem:[#allocation8] sm:$0x3]  ;;  %v2402_v31 = vld [vmem:[#allocation8 + $0x2] sm:$0x3]  ;;  %v2408_v45 = vld [vmem:[#allocation8 + $0x4] sm:$0x3] }
 0xbb3   : > { %2401 = vst.msk [vmem:[#allocation9] sm:$0x3] %vm809_vm2, %v2400_v43  ;;  %2404 = vrot.lane.b32.xlu0 %v2402_v31, %s5034_s19  ;;  %v2414_v46 = vld [vmem:[#allocation8 + $0x6] sm:$0x3]  ;;  %v3367_v43 = vld [vmem:[%s5015_s12 + $0x20] sm:$0xff]  ;;  %v3368_v31 = vld [vmem:[%s5015_s12 + $0x28] sm:$0xff] }
 0xbb6   : > { %v2651_v44 = vpop.f32.mrb[20].mxu1 }
 0xbb7   : > { %2410 = vrot.lane.b32.xlu0 %v2408_v45, %s5054_s26  ;;  %v3898_v34 = vpop.f32.mrb[21].mxu1  ;;  %2655 = vst.msk [vmem:[#allocation8] sm:$0xff] %vm872_vm3, %v2651_v44  ;;  %v4021_v44 = vpack.c.bf16 %v3368_v31, %v3367_v43 }
 0xbbb   : > { %2416 = vrot.lane.b32.xlu0 %v2414_v46, %s5050_s28 }
 0xbbe   : > { %v2656_v47 = vld [vmem:[#allocation8] sm:$0x3]  ;;  %v2664_v48 = vld [vmem:[#allocation8 + $0x4] sm:$0x3]  ;;  %v2658_v49 = vld [vmem:[#allocation8 + $0x2] sm:$0x3] }
 0xbbf   : > { %2657 = vst.msk [vmem:[#allocation9 + $0x2] sm:$0x3] %vm809_vm2, %v2656_v47  ;;  %2666 = vrot.lane.b32.xlu1 %v2664_v48, %s5054_s26  ;;  %2660 = vrot.lane.b32.xlu0 %v2658_v49, %s5034_s19  ;;  %v2670_v50 = vld [vmem:[#allocation8 + $0x6] sm:$0x3] }
 0xbc3   : > { %2672 = vrot.lane.b32.xlu1 %v2670_v50, %s5050_s28 }
 0xbf3   : > { %v2907_v53 = vpop.f32.mrb[22].mxu1 }
 0xbf4   : > { %2911 = vst.msk [vmem:[#allocation8] sm:$0xff] %vm872_vm3, %v2907_v53  ;;  %v3908_v51 = vpop.f32.mrb[23].mxu1  ;;  %v3369_v53 = vld [vmem:[%s5015_s12 + $0x30] sm:$0xff] }
 0xbf7   : > { %v3163_v52 = vpop.f32.mrb[24].mxu1 }
 0xbf8   : > { %v3918_v54 = vpop.f32.mrb[25].mxu1 }
 0xbfb   : > { %v2912_v55 = vld [vmem:[#allocation8] sm:$0x3]  ;;  %v2926_v56 = vld [vmem:[#allocation8 + $0x6] sm:$0x3]  ;;  %v2914_v57 = vld [vmem:[#allocation8 + $0x2] sm:$0x3] }
 0xbfc   : > { %2913 = vst.msk [vmem:[#allocation9 + $0x4] sm:$0x3] %vm809_vm2, %v2912_v55  ;;  %2916 = vrot.lane.b32.xlu0 %v2914_v57, %s5034_s19  ;;  %v2920_v58 = vld [vmem:[#allocation8 + $0x4] sm:$0x3] }
 0xbfd   : > { %3167 = vst.msk [vmem:[#allocation8] sm:$0xff] %vm872_vm3, %v3163_v52  ;;  %v3668_v52 = vld [vmem:[%s5014_s11] ss:$0 sm:$0xff]  ;;  %vm1486_vm3 = vcmask 195712  }
 0xc00   : > { %2922 = vrot.lane.b32.xlu0 %v2920_v58, %s5054_s26  ;;  %v3670_v58 = vld [vmem:[%s5016_s13] ss:$0 sm:$0xff] }
 0xc04   : > { %v3176_v59 = vld [vmem:[#allocation8 + $0x4] sm:$0x3]  ;;  %v3170_v60 = vld [vmem:[#allocation8 + $0x2] sm:$0x3]  ;;  %v3168_v61 = vld [vmem:[#allocation8] sm:$0x3] }
 0xc05   : > { %3178 = vrot.lane.b32.xlu1 %v3176_v59, %s5054_s26  ;;  %3172 = vrot.lane.b32.xlu0 %v3170_v60, %s5034_s19  ;;  %3169 = vst.msk [vmem:[#allocation9 + $0x6] sm:$0x3] %vm809_vm2, %v3168_v61  ;;  %v3182_v62 = vld [vmem:[#allocation8 + $0x6] sm:$0x3]  ;;  %vm1229_vm2 = vcmask 130112  }
 0xc09   : > { %3184 = vrot.lane.b32.xlu1 %v3182_v62, %s5050_s28  ;;  %2928 = vrot.lane.b32.xlu0 %v2926_v56, %s5050_s28 }
 0xc25   : > { %v2405_v63 = vpop.permute.xlu0 %2404 }
 0xc26   : > { %2407 = vst.msk [vmem:[#allocation9] sm:$0x3] %vm1051_vm12, %v2405_v63 }
 0xc29   : > { %v2411_v0 = vpop.permute.xlu0 %2410 }
 0xc2a   : > { %2413 = vst.msk [vmem:[#allocation9] sm:$0x3] %vm1058_vm13, %v2411_v0 }
 0xc2d   : > { %v2417_v1 = vpop.permute.xlu0 %2416 }
 0xc2e   : > { %2419 = vst.msk [vmem:[#allocation9] sm:$0x3] %vm1065_vm14, %v2417_v1 }
 0xc31   : > { %v2667_v5 = vpop.permute.xlu1 %2666  ;;  %v2661_v8 = vpop.permute.xlu0 %2660 }
 0xc32   : > { %2663 = vst.msk [vmem:[#allocation9 + $0x2] sm:$0x3] %vm1051_vm12, %v2661_v8 }
 0xc33   : > { %2669 = vst.msk [vmem:[#allocation9 + $0x2] sm:$0x3] %vm1058_vm13, %v2667_v5 }
 0xc35   : > { %v2673_v2 = vpop.permute.xlu1 %2672 }
 0xc36   : > { %2675 = vst.msk [vmem:[#allocation9 + $0x2] sm:$0x3] %vm1065_vm14, %v2673_v2 }
 0xc6e   : > { %v2917_v9 = vpop.permute.xlu0 %2916 }
 0xc6f   : > { %2919 = vst.msk [vmem:[#allocation9 + $0x4] sm:$0x3] %vm1051_vm12, %v2917_v9 }
 0xc72   : > { %v2923_v12 = vpop.permute.xlu0 %2922 }
 0xc73   : > { %2925 = vst.msk [vmem:[#allocation9 + $0x4] sm:$0x3] %vm1058_vm13, %v2923_v12 }
 0xc77   : > { %v3179_v13 = vpop.permute.xlu1 %3178  ;;  %v3173_v15 = vpop.permute.xlu0 %3172 }
 0xc78   : > { %3175 = vst.msk [vmem:[#allocation9 + $0x6] sm:$0x3] %vm1051_vm12, %v3173_v15 }
 0xc79   : > { %3181 = vst.msk [vmem:[#allocation9 + $0x6] sm:$0x3] %vm1058_vm13, %v3179_v13 }
 0xc7b   : > { %v3185_v11 = vpop.permute.xlu1 %3184  ;;  %v2929_v14 = vpop.permute.xlu0 %2928 }
 0xc7c   : > { %3187 = vst.msk [vmem:[#allocation9 + $0x6] sm:$0x3] %vm1065_vm14, %v3185_v11  ;;  %2931 = vst.msk [vmem:[#allocation9 + $0x4] sm:$0x3] %vm1065_vm14, %v2929_v14 }
 0xc83   : > { %v3188_v17 = vld [vmem:[#allocation9] sm:$0xff] }
 0xc84   : > { %3928 = vmatmul.mubr.msk.f32.vlgmr.msra.gmra.mrb[20].mxu0 %vm591_vm1, %v3188_v17 }
 0xc85   : > { %3957 = vmatprep.mubr.msk.f32.mxu0 %vm4193_vm0, %v4194_v6  ;;  %v3278_v6 = vld [vmem:[%s5013_s10] sm:$0xff]  ;;  %vm3378_vm0 = vcmask 523264  }
 0xd57   : > { %v3258_v18 = vpop.f32.mrb[20].mxu0 }
 0xd58   : > { %v3262_v19 = vadd.f32 %v3258_v18, %v4676_v41  ;;  %v3929_v10 = vpop.f32.mrb[21].mxu0  ;;  %v3279_v41 = vld [vmem:[%s5013_s10 + $0x8] sm:$0xff] }
 0xd59   : > { %v4009_v30 = vpack.c.bf16 %v3279_v41, %v3278_v6 }
 0xd5a   : > { %v3263_v20 = vsel %vm591_vm1, %v3262_v19, 0.0 }
 0xd5b   : > { %3264 = vadd.xlane.f32.xlu0 %v3263_v20  ;;  %4010 = vmatpush3.bf16.msra.mxu1 %v4009_v30 }
 0xd5c   : > { %4011 = vmatprep.subr.bf16.mxu1 %v4192_v3 }
 0xd5f   : > { %4013 = vmatpush3.bf16.msra.mxu1 %v4012_v33 }
 0xde8   : > { %v3265_v21 = vpop.xlane.xlu0 %3264 }
 0xde9   : > { %v3266_v23 = vmul.f32 0.03125, %v3265_v21 }
 0xdeb   : > { %v3267_v24 = vsub.f32 %v3262_v19, %v3266_v23 }
 0xded   : > { %v3268_v26 = vmul.f32 %v3267_v24, %v3267_v24 }
 0xdef   : > { %v3269_v27 = vsel %vm591_vm1, %v3268_v26, 0.0 }
 0xdf0   : > { %3270 = vadd.xlane.f32.xlu1 %v3269_v27 }
 0xe01   : > { %1483 = vrot.lane.b32.xlu1 %v4568_v22, %s5054_s26  ;;  %v3363_v22 = vld [vmem:[%s5015_s12] sm:$0xff] }
 0xe02   : > { %v4015_v38 = vpack.c.bf16 %v3364_v4, %v3363_v22 }
 0xe04   : > { %4016 = vmatpush3.bf16.msra.mxu0 %v4015_v38 }
 0xe05   : > { %4017 = vmatprep.subr.bf16.mxu0 %v4192_v3 }
 0xe08   : > { %4019 = vmatpush3.bf16.msra.mxu0 %v4018_v42 }
 0xe09   : > { %4020 = vmatprep.subr.bf16.mxu0 %v4192_v3 }
 0xe0c   : > { %4022 = vmatpush3.bf16.msra.mxu0 %v4021_v44 }
 0xe0d   : > { %4023 = vmatprep.subr.bf16.mxu0 %v4192_v3  ;;  %v3370_v3 = vld [vmem:[%s5015_s12 + $0x38] sm:$0xff] }
 0xe0e   : > { %v4024_v51 = vpack.c.bf16 %v3370_v3, %v3369_v53 }
 0xe10   : > { %4025 = vmatpush3.bf16.msra.mxu0 %v4024_v51 }
 0xe7d   : > { %v3271_v45 = vpop.xlane.xlu1 %3270 }
 0xe7e   : > { %v3272_v46 = vmul.f32 0.03125, %v3271_v45 }
 0xe80   : > { %v3273_v34 = vadd.f32 1e-06, %v3272_v46 }
 0xe82   : > { %4124 = vrsqrt.f32 %v3273_v34 }
 0xe8c   : > { %v4125_v47 = vpop.eup %4124 }
 0xe8d   : > { %v3275_v48 = vmul.f32 %v4125_v47, %v3267_v24 }
 0xe8f   : > { %v3276_v49 = vmul.f32 %v4667_v37, %v3275_v48 }
 0xe91   : > { %v3277_v50 = vadd.f32 %v4672_v39, %v3276_v49 }
 0xe93   : > { %3939 = vmatmul.mubr.msk.f32.vlgmr.msra.gmra.mrb[26].mxu1 %vm591_vm1, %v3277_v50 }
 0xf66   : > { %v3358_v54 = vpop.f32.mrb[26].mxu1 }
 0xf67   : > { %v3359_v55 = vadd.f32 %v3668_v52, %v3358_v54  ;;  %v3940_v56 = vpop.f32.mrb[27].mxu1 }
 0xf69   : > { %v3362_v57 = vmax.f32 %v3359_v55, 0.0 }
 0xf6b   : > { %3958 = vmatmul.mubr.msk.f32.vlgmr.msra.gmra.mrb[22].mxu0 %vm3378_vm0, %v3362_v57 }
0x103e   : > { %v3448_v59 = vpop.f32.mrb[22].mxu0 }
0x103f   : > { %v3449_v60 = vadd.f32 %v3670_v58, %v3448_v59  ;;  %v3959_v61 = vpop.f32.mrb[23].mxu0 }
0x1041   : > { %v3452_v62 = vadd.f32 %v3449_v60, %v3277_v50 }
0x1043   : > { %v3453_v63 = vsel %vm591_vm1, %v3452_v62, 0.0 }
0x1044   : > { %3454 = vadd.xlane.f32.xlu0 %v3453_v63 }
0x105a   : > { %1226 = vrot.lane.b32.xlu0 %v4559_v16, %s5055_s29 }
0x105e   : > { %1740 = vrot.lane.b32.xlu0 %v4574_v25, %s5050_s28  ;;  %v1484_v25 = vpop.permute.xlu1 %1483 }
0x1062   : > { %2579 = vrot.lane.b32.xlu0 %v4824_v28, %s5055_s29 }
0x1066   : > { %2835 = vrot.lane.b32.xlu0 %v4833_v7, %s5054_s26 }
0x106a   : > { %3091 = vrot.lane.b32.xlu0 %v4839_v36, %s5050_s28  ;;  %s535_s28 = sand.u32 1, %s4182_s22  }
0x106b   : > { %s3629_s26 = sshll.u32 %s535_s28, 3  ;;  %s3470_s18 = scalar_lea.sflag [#allocation11], %s535_s28 }
0x106c   : > { %s537_s4 = scalar_lea.vmem [#allocation10], %s3629_s26 }
0x106d   : > { %s3491_s20 = sshll.u32 %s537_s4, 4  ;;  %s4962_s20 = int_to_ptr.vmem [resolvable:$true] %s3491_s20 }
0x106e   : > { %s4128_s25 = scalar_lea.vmem %s4962_s20, 128  ;;  %p4135_p0 = scmp.lt.s32.totalorder %s4962_s20, %s4133_s5 }
0x106f   : > { %p4129_p11 = scmp.ne.s32.totalorder %s4962_s20, %s4128_s25  ;;  %p4136_p1 = scmp.lt.s32.totalorder %s4134_s27, %s4128_s25 }
0x1071   : > { %p4130_p12 = pnand %p4129_p11, %p4325_p5  ;;  %p4137_p2 = por %p4136_p1, %p4135_p0 }
0x1073   : > { %p4131_p13 = pneg %p4130_p12 }
0x1075   : > { %p4138_p3 = pnand %p4137_p2, %p4131_p13 }
0x10d1   : > { %v3455_v0 = vpop.xlane.xlu0 %3454 }
0x10d2   : > { %v3456_v1 = vmul.f32 0.03125, %v3455_v0 }
0x10d4   : > { %v3457_v5 = vsub.f32 %v3452_v62, %v3456_v1 }
0x10d5   : > { %v1227_v16 = vpop.permute.xlu0 %1226 }
0x10d6   : > { %1230 = vst.msk [vmem:[%s4551_s30] sm:$0xff] %vm1229_vm2, %v1227_v16  ;;  %v3458_v8 = vmul.f32 %v3457_v5, %v3457_v5 }
0x10d7   : > { %1487 = vst.msk [vmem:[%s4551_s30] sm:$0xff] %vm1486_vm3, %v1484_v25 }
0x10d8   : > { %v3459_v28 = vsel %vm591_vm1, %v3458_v8, 0.0 }
0x10d9   : > { %3460 = vadd.xlane.f32.xlu1 %v3459_v28  ;;  %v1741_v7 = vpop.permute.xlu0 %1740 }
0x10da   : > { %1744 = vst.msk [vmem:[%s4551_s30] sm:$0xff] %vm1743_vm11, %v1741_v7 }
0x10dd   : > { %v2580_v36 = vpop.permute.xlu0 %2579 }
0x10de   : > { %2582 = vst.msk [vmem:[%s4816_s23] sm:$0xff] %vm1229_vm2, %v2580_v36 }
0x10e1   : > { %v2836_v2 = vpop.permute.xlu0 %2835 }
0x10e2   : > { %2838 = vst.msk [vmem:[%s4816_s23] sm:$0xff] %vm1486_vm3, %v2836_v2 }
0x10e5   : > { %v3092_v9 = vpop.permute.xlu0 %3091 }
0x10e6   : > { %3094 = vst.msk [vmem:[%s4816_s23] sm:$0xff] %vm1743_vm11, %v3092_v9  ;;  %s4960_s23 = scalar_lea.hbm %s5017_s14, %s3673_s17 }
0x1166   : > { %v3461_v12 = vpop.xlane.xlu1 %3460 }
0x1167   : > { %v3462_v13 = vmul.f32 0.03125, %v3461_v12 }
0x1169   : > { %v3463_v15 = vadd.f32 1e-06, %v3462_v13 }
0x116b   : > { %4126 = vrsqrt.f32 %v3463_v15 }
0x1175   : > { %v4127_v11 = vpop.eup %4126 }
0x1176   : > { %v3465_v14 = vmul.f32 %v4127_v11, %v3457_v5 }
0x1178   : > { %v3466_v17 = vmul.f32 %v4667_v37, %v3465_v14 }
0x117a   : > { %v3467_v18 = vadd.f32 %v4672_v39, %v3466_v17 }
0x117c   : > { %3468 = vst.msk [vmem:[%s537_s4] sm:$0xff] %vm591_vm1, %v3467_v18 }
0x117d   : > { %4141 = shalt.err (!%p4138_p3)
}
0x117e   : > { %s4142_s29 = scalar_lea.hbm %s4960_s23, 128  ;;  %s4146_s17 = scalar_lea.hbm %s5017_s14, 256 }
0x117f   : > { %p4143_p4 = scmp.ne.s32.totalorder %s4960_s23, %s4142_s29  ;;  %p4147_p9 = scmp.lt.u32.totalorder %s4960_s23, %s5017_s14 }
0x1180   : > { %p4148_p10 = scmp.lt.u32.totalorder %s4146_s17, %s4142_s29  ;;  %p4150_p12 = scmp.lt.u32.totalorder %s4142_s29, %s4960_s23 }
0x1181   : > { %p4144_p7 = pnand %p4143_p4, %p4325_p5 }
0x1182   : > { %p4149_p11 = por %p4148_p10, %p4147_p9 }
0x1183   : > { %p4145_p8 = pneg %p4144_p7 }
0x1184   : > { %p4151_p13 = por %p4150_p12, %p4149_p11 }
0x1186   : > { %p4152_p0 = pnand %p4151_p13, %p4145_p8 }
0x1188   : > { %4155 = shalt.err (!%p4152_p0)
}
0x1189   : > { %4026 = dma.vmem_to_hbm [thread:$0]  (%p4325_p5), %s4962_s20, 128, %s4960_s23, %s3470_s18  }
0x118a PF: > { %p4032_p1 = scmp.ge.s32.totalorder %s4190_s24, 2  ;;  %s3509_s25 = sand.u32 1, %s4178_s21  }
0x118b   : > { %s3510_s1 = scalar_lea.sflag [#allocation11], %s3509_s25 }
0x118c   : > { %p4029_p2 = pnand %p4032_p1, %p4329_p6 }
0x118e   : > { %4173 = dma.done.wait (!%p4029_p2), %s3510_s1, 128  }
0x118f   : > { %4175 = vsyncadd (!%p4029_p2), %s3510_s1, 4294967168  ;;  %s5057_s24 = sld [smem:[#allocation14_spill]]  ;;  %s5058_s5 = sld [smem:[#allocation13_spill]] }
0x1190   : > { %s5059_s23 = sld [smem:[#allocation15_spill]]  ;;  %s5060_s21 = smov %s4182_s22 }
0x1195   : > { %p27_p3 = scmp.ge.s32.totalorder %s5057_s24, 4   ;;  %s5061_s22 = smov %s5058_s5 }
0x1197   :  { %29 = sbr.rel (!%p27_p3) target bundleno = 8 (0x8), region = 141 }
0x119e   :  { %3529 = vsyncpa [#allocation11], 1 }
0x119f   :  { %3531 = vsyncpa [#allocation11 + $0x1], 1 }

</bundles_post_ra>
